<compile_context>
chip_gen: v6e
topology: v6e:2x2x1
jax: 0.10.0
libtpu: 0.0.40
codegen_flags: <defaults>
</compile_context>

<pallas_src>
import functools

import jax
import jax.numpy as jnp
from jax.experimental import pallas as pl
from jax.experimental.pallas import tpu as pltpu


# --------------------------- fused SPPF kernel (per image) -------------------

def _sppf_fused_kernel(x_ref, w1_ref, b1_ref, w2t_ref, b2_ref, o_ref, ypad_ref,
                       *, H, W):
    """Fused SPPF for one image.

    x_ref   : (c1, H*W)     channel-major image (NCHW block, batch squeezed)
    w1_ref  : (c1, c_)      BN-folded cv1 weight
    b1_ref  : (1, c_)       BN-folded cv1 bias
    w2t_ref : (4, c2, c_)   BN-folded cv2 weight, one (c2, c_) chunk per concat input
    b2_ref  : (c2, 1)       BN-folded cv2 bias
    o_ref   : (c2, H*W)     channel-major output
    ypad_ref: (H+4, W+4, c_) VMEM pool scratch with a 2-wide -inf border
    """
    c_ = w1_ref.shape[1]
    hw = H * W
    NT = (((1,), (1,)), ((), ()))   # contract last dims: (c2,c_) x (hw,c_) -> (c2,hw)

    # ---- cv1: 1x1 conv (BN folded) + SiLU -----------------------------------
    # Small in-kernel 2-D transpose (XLU) + plain NN dot; y0 is pixel-major so the
    # channel axis sits in lanes for the pooling stages.
    x_t = x_ref[...].T                                          # (hw, c1)
    y0 = jnp.dot(x_t, w1_ref[...], preferred_element_type=jnp.float32)
    y0 = y0 + b1_ref[...]
    y0 = y0 * jax.nn.sigmoid(y0)                                # (hw, c_)

    # ---- -inf border strips (MaxPool2d(k=5, s=1, p=2) padding) --------------
    # Re-written every grid step (cheap) so each megacore's private scratch is valid.
    ninf = -jnp.inf
    ypad_ref[0:2, :, :] = jnp.full((2, W + 4, c_), ninf, jnp.float32)
    ypad_ref[H + 2:H + 4, :, :] = jnp.full((2, W + 4, c_), ninf, jnp.float32)
    ypad_ref[2:H + 2, 0:2, :] = jnp.full((H, 2, c_), ninf, jnp.float32)
    ypad_ref[2:H + 2, W + 2:W + 4, :] = jnp.full((H, 2, c_), ninf, jnp.float32)
    ypad_ref[2:H + 2, 2:W + 2, :] = y0.reshape(H, W, c_)

    # ---- cv2 = SiLU(BN(Conv1x1(cat[y0,y1,y2,y3]))) == sum_k W2_k . y_k -------
    acc = jax.lax.dot_general(w2t_ref[0], y0, NT,
                              preferred_element_type=jnp.float32)   # (c2, hw)

    for k in range(1, 4):
        xp = ypad_ref[...]                                      # (H+4, W+4, c_)
        # Log-structured separable 5-tap max: 3 maxima along W, then 3 along H.
        m1 = jnp.maximum(xp[:, 0:W + 3, :], xp[:, 1:W + 4, :])
        m2 = jnp.maximum(m1[:, 0:W + 1, :], m1[:, 2:W + 3, :])
        t = jnp.maximum(m2[:, 0:W, :], xp[:, 4:W + 4, :])       # (H+4, W, c_)
        n1 = jnp.maximum(t[0:H + 3, :, :], t[1:H + 4, :, :])
        n2 = jnp.maximum(n1[0:H + 1, :, :], n1[2:H + 3, :, :])
        p = jnp.maximum(n2[0:H, :, :], t[4:H + 4, :, :])        # (H, W, c_)
        if k < 3:                                               # last stage never re-read
            ypad_ref[2:H + 2, 2:W + 2, :] = p
        acc = acc + jax.lax.dot_general(w2t_ref[k], p.reshape(hw, c_), NT,
                                        preferred_element_type=jnp.float32)

    y = acc + b2_ref[...]
    o_ref[...] = (y * jax.nn.sigmoid(y)).astype(o_ref.dtype)


def _vmem_limit_bytes(c1, c_, c2, H, W):
    """Derive the scoped-VMEM budget from actual block / scratch / live bytes."""
    hw = H * W
    f32 = 4
    blocks = f32 * (c1 * hw + c2 * hw + c1 * c_ + 4 * c2 * c_ + c_ + c2)
    scratch = f32 * (H + 4) * (W + 4) * c_
    live = f32 * (6 * hw * c_ + 2 * hw * c2)     # y0, pool temporaries, acc, out value
    est = 2 * blocks + scratch + live            # inputs/outputs are double-buffered
    return int(min(max(est * 3 // 2, 16 << 20), 64 << 20))


def sppf_pallas(x_nchw, w1, b1, w2t, b2):
    """SPPF forward. x_nchw: (B, c1, H, W) NCHW; returns (B, c2, H, W) NCHW."""
    B, c1, H, W = x_nchw.shape
    c_ = w1.shape[1]
    c2 = w2t.shape[1]
    hw = H * W
    x3 = x_nchw.reshape(B, c1, hw)               # contiguous merge: metadata only

    kernel = functools.partial(_sppf_fused_kernel, H=H, W=W)
    out3 = pl.pallas_call(
        kernel,
        out_shape=jax.ShapeDtypeStruct((B, c2, hw), jnp.float32),
        grid_spec=pltpu.PrefetchScalarGridSpec(
            num_scalar_prefetch=0,
            grid=(B,),
            in_specs=[
                pl.BlockSpec((None, c1, hw), lambda b: (b, 0, 0)),   # x, per image
                pl.BlockSpec((c1, c_), lambda b: (0, 0)),            # w1
                pl.BlockSpec((1, c_), lambda b: (0, 0)),             # b1
                pl.BlockSpec((4, c2, c_), lambda b: (0, 0, 0)),      # w2 (chunked)
                pl.BlockSpec((c2, 1), lambda b: (0, 0)),             # b2
            ],
            out_specs=pl.BlockSpec((None, c2, hw), lambda b: (b, 0, 0)),
            scratch_shapes=[pltpu.VMEM((H + 4, W + 4, c_), jnp.float32)],
        ),
        compiler_params=pltpu.CompilerParams(
            dimension_semantics=("parallel",),
            vmem_limit_bytes=_vmem_limit_bytes(c1, c_, c2, H, W),
        ),
    )(x3, w1, b1, w2t, b2)

    return out3.reshape(B, c2, H, W)             # contiguous split: metadata only


sppf_forward = jax.jit(sppf_pallas)


# ------------------------------ parameter folding ----------------------------

def fold_bn(conv_w, gamma, beta, mean, var, eps=1e-3):
    """conv_w: (Cout, Cin, 1, 1). Returns BN-folded (Cout, Cin) weight and (Cout,) bias.
    eps=1e-3 matches Ultralytics' BatchNorm2d(eps=0.001)."""
    scale = gamma / jnp.sqrt(var + eps)
    w_oi = conv_w[:, :, 0, 0] * scale[:, None]
    b = beta - mean * scale
    return w_oi.astype(jnp.float32), b.astype(jnp.float32)


def prepare_sppf_params(cv1_raw, cv2_raw):
    """Fold BN into cv1/cv2 and lay the weights out for the fused kernel."""
    w1_oi, b1v = fold_bn(*cv1_raw)               # (c_, c1), (c_,)
    w2_oi, b2v = fold_bn(*cv2_raw)               # (c2, 4*c_), (c2,)
    c_, c1 = w1_oi.shape
    c2 = w2_oi.shape[0]
    w1 = w1_oi.T                                 # (c1, c_)   used as x^T @ w1
    b1 = b1v[None, :]                            # (1, c_)
    w2t = w2_oi.reshape(c2, 4, c_).transpose(1, 0, 2)   # (4, c2, c_): per-concat chunk
    b2 = b2v[:, None]                            # (c2, 1)
    return w1, b1, w2t, b2


# --------------------------- pure-JAX reference ------------------------------

def _ref_conv_bn_silu(x_nchw, conv_w, gamma, beta, mean, var, eps=1e-3):
    y = jnp.einsum('bchw,oc->bohw', x_nchw, conv_w[:, :, 0, 0])
    scale = gamma / jnp.sqrt(var + eps)
    y = y * scale[None, :, None, None] + (beta - mean * scale)[None, :, None, None]
    return y * jax.nn.sigmoid(y)


def _ref_maxpool5(x_nchw):
    return jax.lax.reduce_window(
        x_nchw, -jnp.inf, jax.lax.max,
        window_dimensions=(1, 1, 5, 5), window_strides=(1, 1, 1, 1),
        padding=((0, 0), (0, 0), (2, 2), (2, 2)))


def sppf_reference(x_nchw, cv1_raw, cv2_raw):
    y0 = _ref_conv_bn_silu(x_nchw, *cv1_raw)
    y1 = _ref_maxpool5(y0)
    y2 = _ref_maxpool5(y1)
    y3 = _ref_maxpool5(y2)
    return _ref_conv_bn_silu(jnp.concatenate([y0, y1, y2, y3], 1), *cv2_raw)


# ---------------------------------- main --------------------------------------

if __name__ == "__main__":
    B, c1, H, W = 2, 8, 16, 16
    c2 = 16
    c_ = c1 // 2

    key = jax.random.PRNGKey(0)
    ks = jax.random.split(key, 11)

    # cv1: Conv2d(c1, c_, 1, bias=False) + BatchNorm2d(c_, eps=1e-3)
    cv1_convw = 0.1 * jax.random.normal(ks[0], (c_, c1, 1, 1), jnp.float32)
    cv1_gamma = 1.0 + 0.1 * jax.random.normal(ks[1], (c_,), jnp.float32)
    cv1_beta = 0.1 * jax.random.normal(ks[2], (c_,), jnp.float32)
    cv1_mean = 0.1 * jax.random.normal(ks[3], (c_,), jnp.float32)
    cv1_var = jnp.abs(jax.random.normal(ks[4], (c_,), jnp.float32)) + 0.5

    # cv2: Conv2d(4*c_, c2, 1, bias=False) + BatchNorm2d(c2, eps=1e-3)
    cv2_convw = 0.1 * jax.random.normal(ks[5], (c2, 4 * c_, 1, 1), jnp.float32)
    cv2_gamma = 1.0 + 0.1 * jax.random.normal(ks[6], (c2,), jnp.float32)
    cv2_beta = 0.1 * jax.random.normal(ks[7], (c2,), jnp.float32)
    cv2_mean = 0.1 * jax.random.normal(ks[8], (c2,), jnp.float32)
    cv2_var = jnp.abs(jax.random.normal(ks[9], (c2,), jnp.float32)) + 0.5

    cv1_raw = (cv1_convw, cv1_gamma, cv1_beta, cv1_mean, cv1_var)
    cv2_raw = (cv2_convw, cv2_gamma, cv2_beta, cv2_mean, cv2_var)
    w1, b1, w2t, b2 = prepare_sppf_params(cv1_raw, cv2_raw)

    x = jax.random.normal(ks[10], (B, c1, H, W), jnp.float32)

    out = sppf_forward(x, w1, b1, w2t, b2)
    out = jax.block_until_ready(out)
    assert out.shape == (B, c2, H, W), out.shape

    ref = sppf_reference(x, cv1_raw, cv2_raw)
    assert jnp.allclose(out, ref, rtol=1e-4, atol=1e-4), \
        float(jnp.max(jnp.abs(out - ref)))

    print("KERNEL_OK")
</pallas_src>

<mosaic_0001>
module attributes {stable_mosaic.version = 11 : i64} {
  func.func @_sppf_fused_kernel(%arg0: i32, %arg1: memref<1x8x256xf32, #tpu.memory_space<vmem>>, %arg2: memref<8x4xf32, #tpu.memory_space<vmem>>, %arg3: memref<1x4xf32, #tpu.memory_space<vmem>>, %arg4: memref<4x16x4xf32, #tpu.memory_space<vmem>>, %arg5: memref<16x1xf32, #tpu.memory_space<vmem>>, %arg6: memref<1x16x256xf32, #tpu.memory_space<vmem>>, %arg7: memref<20x20x4xf32, #tpu.memory_space<vmem>>) attributes {dimension_semantics = [#tpu.dimension_semantics<parallel>], iteration_bounds = array<i64: 2>, scalar_prefetch = 0 : i64, scratch_operands = 1 : i64, tpu.core_type = #tpu.core_type<tc>, window_params = [{transform_indices = @transform_0, window_bounds = array<i64: 1, 8, 256>}, {pipeline_mode = #tpu.pipeline_mode<synchronous>, transform_indices = @transform_1, window_bounds = array<i64: 8, 4>}, {pipeline_mode = #tpu.pipeline_mode<synchronous>, transform_indices = @transform_2, window_bounds = array<i64: 1, 4>}, {pipeline_mode = #tpu.pipeline_mode<synchronous>, transform_indices = @transform_3, window_bounds = array<i64: 4, 16, 4>}, {pipeline_mode = #tpu.pipeline_mode<synchronous>, transform_indices = @transform_4, window_bounds = array<i64: 16, 1>}, {transform_indices = @transform_5, window_bounds = array<i64: 1, 16, 256>}]} {
    %c0 = arith.constant 0 : index
    %c0_0 = arith.constant 0 : index
    %c0_1 = arith.constant 0 : index
    %0 = vector.load %arg1[%c0, %c0_0, %c0_1] : memref<1x8x256xf32, #tpu.memory_space<vmem>>, vector<1x8x256xf32>
    %1 = vector.shape_cast %0 : vector<1x8x256xf32> to vector<8x256xf32>
    %2 = tpu.transpose %1, [1, 0] : vector<8x256xf32> -> vector<256x8xf32>
    %c0_2 = arith.constant 0 : index
    %c0_3 = arith.constant 0 : index
    %3 = vector.load %arg2[%c0_2, %c0_3] : memref<8x4xf32, #tpu.memory_space<vmem>>, vector<8x4xf32>
    %cst = arith.constant dense<0.000000e+00> : vector<256x4xf32>
    %4 = tpu.matmul %2, %3, %cst {dimension_numbers = #tpu.dot_dimension_numbers<[1], [0], [0], [1], [0, 0, 1, 1], [], []>} : vector<256x8xf32>, vector<8x4xf32>, vector<256x4xf32> -> vector<256x4xf32>
    %c0_4 = arith.constant 0 : index
    %c0_5 = arith.constant 0 : index
    %5 = vector.load %arg3[%c0_4, %c0_5] : memref<1x4xf32, #tpu.memory_space<vmem>>, vector<1x4xf32>
    %6 = vector.broadcast %5 : vector<1x4xf32> to vector<256x4xf32>
    %7 = arith.addf %4, %6 : vector<256x4xf32>
    %8 = arith.negf %7 : vector<256x4xf32>
    %9 = math.exp %8 : vector<256x4xf32>
    %cst_6 = arith.constant 1.000000e+00 : f32
    %10 = vector.broadcast %cst_6 : f32 to vector<256x4xf32>
    %11 = arith.addf %10, %9 : vector<256x4xf32>
    %12 = arith.divf %10, %11 : vector<256x4xf32>
    %13 = arith.mulf %7, %12 : vector<256x4xf32>
    %cst_7 = arith.constant 0xFF800000 : f32
    %14 = vector.broadcast %cst_7 : f32 to vector<2x20x4xf32>
    %c0_8 = arith.constant 0 : index
    %c0_9 = arith.constant 0 : index
    %c0_10 = arith.constant 0 : index
    %15 = vector.load %arg7[%c0_8, %c0_9, %c0_10] : memref<20x20x4xf32, #tpu.memory_space<vmem>>, vector<2x20x4xf32>
    tpu.vector_store %arg7[%c0_8, %c0_9, %c0_10], %14 {strides = array<i32>} : memref<20x20x4xf32, #tpu.memory_space<vmem>>, vector<2x20x4xf32>,
    %cst_11 = arith.constant 0xFF800000 : f32
    %16 = vector.broadcast %cst_11 : f32 to vector<2x20x4xf32>
    %c18 = arith.constant 18 : index
    %c0_12 = arith.constant 0 : index
    %c0_13 = arith.constant 0 : index
    %17 = vector.load %arg7[%c18, %c0_12, %c0_13] : memref<20x20x4xf32, #tpu.memory_space<vmem>>, vector<2x20x4xf32>
    tpu.vector_store %arg7[%c18, %c0_12, %c0_13], %16 {strides = array<i32>} : memref<20x20x4xf32, #tpu.memory_space<vmem>>, vector<2x20x4xf32>,
    %cst_14 = arith.constant 0xFF800000 : f32
    %18 = vector.broadcast %cst_14 : f32 to vector<16x2x4xf32>
    %c2 = arith.constant 2 : index
    %c0_15 = arith.constant 0 : index
    %c0_16 = arith.constant 0 : index
    %19 = vector.load %arg7[%c2, %c0_15, %c0_16] : memref<20x20x4xf32, #tpu.memory_space<vmem>>, vector<16x2x4xf32>
    tpu.vector_store %arg7[%c2, %c0_15, %c0_16], %18 {strides = array<i32>} : memref<20x20x4xf32, #tpu.memory_space<vmem>>, vector<16x2x4xf32>,
    %cst_17 = arith.constant 0xFF800000 : f32
    %20 = vector.broadcast %cst_17 : f32 to vector<16x2x4xf32>
    %c2_18 = arith.constant 2 : index
    %c18_19 = arith.constant 18 : index
    %c0_20 = arith.constant 0 : index
    %21 = vector.load %arg7[%c2_18, %c18_19, %c0_20] : memref<20x20x4xf32, #tpu.memory_space<vmem>>, vector<16x2x4xf32>
    tpu.vector_store %arg7[%c2_18, %c18_19, %c0_20], %20 {strides = array<i32>} : memref<20x20x4xf32, #tpu.memory_space<vmem>>, vector<16x2x4xf32>,
    %22 = vector.shape_cast %13 : vector<256x4xf32> to vector<16x16x4xf32>
    %c2_21 = arith.constant 2 : index
    %c2_22 = arith.constant 2 : index
    %c0_23 = arith.constant 0 : index
    %23 = vector.load %arg7[%c2_21, %c2_22, %c0_23] : memref<20x20x4xf32, #tpu.memory_space<vmem>>, vector<16x16x4xf32>
    tpu.vector_store %arg7[%c2_21, %c2_22, %c0_23], %22 {strides = array<i32>} : memref<20x20x4xf32, #tpu.memory_space<vmem>>, vector<16x16x4xf32>,
    %c0_24 = arith.constant 0 : index
    %c0_25 = arith.constant 0 : index
    %c0_26 = arith.constant 0 : index
    %24 = vector.load %arg4[%c0_24, %c0_25, %c0_26] : memref<4x16x4xf32, #tpu.memory_space<vmem>>, vector<1x16x4xf32>
    %25 = vector.shape_cast %24 : vector<1x16x4xf32> to vector<16x4xf32>
    %cst_27 = arith.constant dense<0.000000e+00> : vector<16x256xf32>
    %26 = tpu.matmul %25, %13, %cst_27 {dimension_numbers = #tpu.dot_dimension_numbers<[1], [1], [0], [0], [0, 0, 1, 0], [], []>} : vector<16x4xf32>, vector<256x4xf32>, vector<16x256xf32> -> vector<16x256xf32>
    %c0_28 = arith.constant 0 : index
    %c0_29 = arith.constant 0 : index
    %c0_30 = arith.constant 0 : index
    %27 = vector.load %arg7[%c0_28, %c0_29, %c0_30] : memref<20x20x4xf32, #tpu.memory_space<vmem>>, vector<20x20x4xf32>
    %28 = vector.extract_strided_slice %27 {offsets = [0, 0, 0], sizes = [20, 19, 4], strides = [1, 1, 1]} : vector<20x20x4xf32> to vector<20x19x4xf32>
    %29 = vector.extract_strided_slice %27 {offsets = [0, 1, 0], sizes = [20, 19, 4], strides = [1, 1, 1]} : vector<20x20x4xf32> to vector<20x19x4xf32>
    %30 = arith.maximumf %28, %29 : vector<20x19x4xf32>
    %31 = vector.extract_strided_slice %30 {offsets = [0, 0, 0], sizes = [20, 17, 4], strides = [1, 1, 1]} : vector<20x19x4xf32> to vector<20x17x4xf32>
    %32 = vector.extract_strided_slice %30 {offsets = [0, 2, 0], sizes = [20, 17, 4], strides = [1, 1, 1]} : vector<20x19x4xf32> to vector<20x17x4xf32>
    %33 = arith.maximumf %31, %32 : vector<20x17x4xf32>
    %34 = vector.extract_strided_slice %33 {offsets = [0, 0, 0], sizes = [20, 16, 4], strides = [1, 1, 1]} : vector<20x17x4xf32> to vector<20x16x4xf32>
    %35 = vector.extract_strided_slice %27 {offsets = [0, 4, 0], sizes = [20, 16, 4], strides = [1, 1, 1]} : vector<20x20x4xf32> to vector<20x16x4xf32>
    %36 = arith.maximumf %34, %35 : vector<20x16x4xf32>
    %37 = vector.extract_strided_slice %36 {offsets = [0, 0, 0], sizes = [19, 16, 4], strides = [1, 1, 1]} : vector<20x16x4xf32> to vector<19x16x4xf32>
    %38 = vector.extract_strided_slice %36 {offsets = [1, 0, 0], sizes = [19, 16, 4], strides = [1, 1, 1]} : vector<20x16x4xf32> to vector<19x16x4xf32>
    %39 = arith.maximumf %37, %38 : vector<19x16x4xf32>
    %40 = vector.extract_strided_slice %39 {offsets = [0, 0, 0], sizes = [17, 16, 4], strides = [1, 1, 1]} : vector<19x16x4xf32> to vector<17x16x4xf32>
    %41 = vector.extract_strided_slice %39 {offsets = [2, 0, 0], sizes = [17, 16, 4], strides = [1, 1, 1]} : vector<19x16x4xf32> to vector<17x16x4xf32>
    %42 = arith.maximumf %40, %41 : vector<17x16x4xf32>
    %43 = vector.extract_strided_slice %42 {offsets = [0, 0, 0], sizes = [16, 16, 4], strides = [1, 1, 1]} : vector<17x16x4xf32> to vector<16x16x4xf32>
    %44 = vector.extract_strided_slice %36 {offsets = [4, 0, 0], sizes = [16, 16, 4], strides = [1, 1, 1]} : vector<20x16x4xf32> to vector<16x16x4xf32>
    %45 = arith.maximumf %43, %44 : vector<16x16x4xf32>
    %c2_31 = arith.constant 2 : index
    %c2_32 = arith.constant 2 : index
    %c0_33 = arith.constant 0 : index
    %46 = vector.load %arg7[%c2_31, %c2_32, %c0_33] : memref<20x20x4xf32, #tpu.memory_space<vmem>>, vector<16x16x4xf32>
    tpu.vector_store %arg7[%c2_31, %c2_32, %c0_33], %45 {strides = array<i32>} : memref<20x20x4xf32, #tpu.memory_space<vmem>>, vector<16x16x4xf32>,
    %c1 = arith.constant 1 : index
    %c0_34 = arith.constant 0 : index
    %c0_35 = arith.constant 0 : index
    %47 = vector.load %arg4[%c1, %c0_34, %c0_35] : memref<4x16x4xf32, #tpu.memory_space<vmem>>, vector<1x16x4xf32>
    %48 = vector.shape_cast %47 : vector<1x16x4xf32> to vector<16x4xf32>
    %49 = vector.shape_cast %45 : vector<16x16x4xf32> to vector<256x4xf32>
    %cst_36 = arith.constant dense<0.000000e+00> : vector<16x256xf32>
    %50 = tpu.matmul %48, %49, %cst_36 {dimension_numbers = #tpu.dot_dimension_numbers<[1], [1], [0], [0], [0, 0, 1, 0], [], []>} : vector<16x4xf32>, vector<256x4xf32>, vector<16x256xf32> -> vector<16x256xf32>
    %51 = arith.addf %26, %50 : vector<16x256xf32>
    %c0_37 = arith.constant 0 : index
    %c0_38 = arith.constant 0 : index
    %c0_39 = arith.constant 0 : index
    %52 = vector.load %arg7[%c0_37, %c0_38, %c0_39] : memref<20x20x4xf32, #tpu.memory_space<vmem>>, vector<20x20x4xf32>
    %53 = vector.extract_strided_slice %52 {offsets = [0, 0, 0], sizes = [20, 19, 4], strides = [1, 1, 1]} : vector<20x20x4xf32> to vector<20x19x4xf32>
    %54 = vector.extract_strided_slice %52 {offsets = [0, 1, 0], sizes = [20, 19, 4], strides = [1, 1, 1]} : vector<20x20x4xf32> to vector<20x19x4xf32>
    %55 = arith.maximumf %53, %54 : vector<20x19x4xf32>
    %56 = vector.extract_strided_slice %55 {offsets = [0, 0, 0], sizes = [20, 17, 4], strides = [1, 1, 1]} : vector<20x19x4xf32> to vector<20x17x4xf32>
    %57 = vector.extract_strided_slice %55 {offsets = [0, 2, 0], sizes = [20, 17, 4], strides = [1, 1, 1]} : vector<20x19x4xf32> to vector<20x17x4xf32>
    %58 = arith.maximumf %56, %57 : vector<20x17x4xf32>
    %59 = vector.extract_strided_slice %58 {offsets = [0, 0, 0], sizes = [20, 16, 4], strides = [1, 1, 1]} : vector<20x17x4xf32> to vector<20x16x4xf32>
    %60 = vector.extract_strided_slice %52 {offsets = [0, 4, 0], sizes = [20, 16, 4], strides = [1, 1, 1]} : vector<20x20x4xf32> to vector<20x16x4xf32>
    %61 = arith.maximumf %59, %60 : vector<20x16x4xf32>
    %62 = vector.extract_strided_slice %61 {offsets = [0, 0, 0], sizes = [19, 16, 4], strides = [1, 1, 1]} : vector<20x16x4xf32> to vector<19x16x4xf32>
    %63 = vector.extract_strided_slice %61 {offsets = [1, 0, 0], sizes = [19, 16, 4], strides = [1, 1, 1]} : vector<20x16x4xf32> to vector<19x16x4xf32>
    %64 = arith.maximumf %62, %63 : vector<19x16x4xf32>
    %65 = vector.extract_strided_slice %64 {offsets = [0, 0, 0], sizes = [17, 16, 4], strides = [1, 1, 1]} : vector<19x16x4xf32> to vector<17x16x4xf32>
    %66 = vector.extract_strided_slice %64 {offsets = [2, 0, 0], sizes = [17, 16, 4], strides = [1, 1, 1]} : vector<19x16x4xf32> to vector<17x16x4xf32>
    %67 = arith.maximumf %65, %66 : vector<17x16x4xf32>
    %68 = vector.extract_strided_slice %67 {offsets = [0, 0, 0], sizes = [16, 16, 4], strides = [1, 1, 1]} : vector<17x16x4xf32> to vector<16x16x4xf32>
    %69 = vector.extract_strided_slice %61 {offsets = [4, 0, 0], sizes = [16, 16, 4], strides = [1, 1, 1]} : vector<20x16x4xf32> to vector<16x16x4xf32>
    %70 = arith.maximumf %68, %69 : vector<16x16x4xf32>
    %c2_40 = arith.constant 2 : index
    %c2_41 = arith.constant 2 : index
    %c0_42 = arith.constant 0 : index
    %71 = vector.load %arg7[%c2_40, %c2_41, %c0_42] : memref<20x20x4xf32, #tpu.memory_space<vmem>>, vector<16x16x4xf32>
    tpu.vector_store %arg7[%c2_40, %c2_41, %c0_42], %70 {strides = array<i32>} : memref<20x20x4xf32, #tpu.memory_space<vmem>>, vector<16x16x4xf32>,
    %c2_43 = arith.constant 2 : index
    %c0_44 = arith.constant 0 : index
    %c0_45 = arith.constant 0 : index
    %72 = vector.load %arg4[%c2_43, %c0_44, %c0_45] : memref<4x16x4xf32, #tpu.memory_space<vmem>>, vector<1x16x4xf32>
    %73 = vector.shape_cast %72 : vector<1x16x4xf32> to vector<16x4xf32>
    %74 = vector.shape_cast %70 : vector<16x16x4xf32> to vector<256x4xf32>
    %cst_46 = arith.constant dense<0.000000e+00> : vector<16x256xf32>
    %75 = tpu.matmul %73, %74, %cst_46 {dimension_numbers = #tpu.dot_dimension_numbers<[1], [1], [0], [0], [0, 0, 1, 0], [], []>} : vector<16x4xf32>, vector<256x4xf32>, vector<16x256xf32> -> vector<16x256xf32>
    %76 = arith.addf %51, %75 : vector<16x256xf32>
    %c0_47 = arith.constant 0 : index
    %c0_48 = arith.constant 0 : index
    %c0_49 = arith.constant 0 : index
    %77 = vector.load %arg7[%c0_47, %c0_48, %c0_49] : memref<20x20x4xf32, #tpu.memory_space<vmem>>, vector<20x20x4xf32>
    %78 = vector.extract_strided_slice %77 {offsets = [0, 0, 0], sizes = [20, 19, 4], strides = [1, 1, 1]} : vector<20x20x4xf32> to vector<20x19x4xf32>
    %79 = vector.extract_strided_slice %77 {offsets = [0, 1, 0], sizes = [20, 19, 4], strides = [1, 1, 1]} : vector<20x20x4xf32> to vector<20x19x4xf32>
    %80 = arith.maximumf %78, %79 : vector<20x19x4xf32>
    %81 = vector.extract_strided_slice %80 {offsets = [0, 0, 0], sizes = [20, 17, 4], strides = [1, 1, 1]} : vector<20x19x4xf32> to vector<20x17x4xf32>
    %82 = vector.extract_strided_slice %80 {offsets = [0, 2, 0], sizes = [20, 17, 4], strides = [1, 1, 1]} : vector<20x19x4xf32> to vector<20x17x4xf32>
    %83 = arith.maximumf %81, %82 : vector<20x17x4xf32>
    %84 = vector.extract_strided_slice %83 {offsets = [0, 0, 0], sizes = [20, 16, 4], strides = [1, 1, 1]} : vector<20x17x4xf32> to vector<20x16x4xf32>
    %85 = vector.extract_strided_slice %77 {offsets = [0, 4, 0], sizes = [20, 16, 4], strides = [1, 1, 1]} : vector<20x20x4xf32> to vector<20x16x4xf32>
    %86 = arith.maximumf %84, %85 : vector<20x16x4xf32>
    %87 = vector.extract_strided_slice %86 {offsets = [0, 0, 0], sizes = [19, 16, 4], strides = [1, 1, 1]} : vector<20x16x4xf32> to vector<19x16x4xf32>
    %88 = vector.extract_strided_slice %86 {offsets = [1, 0, 0], sizes = [19, 16, 4], strides = [1, 1, 1]} : vector<20x16x4xf32> to vector<19x16x4xf32>
    %89 = arith.maximumf %87, %88 : vector<19x16x4xf32>
    %90 = vector.extract_strided_slice %89 {offsets = [0, 0, 0], sizes = [17, 16, 4], strides = [1, 1, 1]} : vector<19x16x4xf32> to vector<17x16x4xf32>
    %91 = vector.extract_strided_slice %89 {offsets = [2, 0, 0], sizes = [17, 16, 4], strides = [1, 1, 1]} : vector<19x16x4xf32> to vector<17x16x4xf32>
    %92 = arith.maximumf %90, %91 : vector<17x16x4xf32>
    %93 = vector.extract_strided_slice %92 {offsets = [0, 0, 0], sizes = [16, 16, 4], strides = [1, 1, 1]} : vector<17x16x4xf32> to vector<16x16x4xf32>
    %94 = vector.extract_strided_slice %86 {offsets = [4, 0, 0], sizes = [16, 16, 4], strides = [1, 1, 1]} : vector<20x16x4xf32> to vector<16x16x4xf32>
    %95 = arith.maximumf %93, %94 : vector<16x16x4xf32>
    %c3 = arith.constant 3 : index
    %c0_50 = arith.constant 0 : index
    %c0_51 = arith.constant 0 : index
    %96 = vector.load %arg4[%c3, %c0_50, %c0_51] : memref<4x16x4xf32, #tpu.memory_space<vmem>>, vector<1x16x4xf32>
    %97 = vector.shape_cast %96 : vector<1x16x4xf32> to vector<16x4xf32>
    %98 = vector.shape_cast %95 : vector<16x16x4xf32> to vector<256x4xf32>
    %cst_52 = arith.constant dense<0.000000e+00> : vector<16x256xf32>
    %99 = tpu.matmul %97, %98, %cst_52 {dimension_numbers = #tpu.dot_dimension_numbers<[1], [1], [0], [0], [0, 0, 1, 0], [], []>} : vector<16x4xf32>, vector<256x4xf32>, vector<16x256xf32> -> vector<16x256xf32>
    %100 = arith.addf %76, %99 : vector<16x256xf32>
    %c0_53 = arith.constant 0 : index
    %c0_54 = arith.constant 0 : index
    %101 = vector.load %arg5[%c0_53, %c0_54] : memref<16x1xf32, #tpu.memory_space<vmem>>, vector<16x1xf32>
    %102 = vector.broadcast %101 : vector<16x1xf32> to vector<16x256xf32>
    %103 = arith.addf %100, %102 : vector<16x256xf32>
    %104 = arith.negf %103 : vector<16x256xf32>
    %105 = math.exp %104 : vector<16x256xf32>
    %cst_55 = arith.constant 1.000000e+00 : f32
    %106 = vector.broadcast %cst_55 : f32 to vector<16x256xf32>
    %107 = arith.addf %106, %105 : vector<16x256xf32>
    %108 = arith.divf %106, %107 : vector<16x256xf32>
    %109 = arith.mulf %103, %108 : vector<16x256xf32>
    %c0_56 = arith.constant 0 : index
    %c0_57 = arith.constant 0 : index
    %c0_58 = arith.constant 0 : index
    %110 = vector.load %arg6[%c0_56, %c0_57, %c0_58] : memref<1x16x256xf32, #tpu.memory_space<vmem>>, vector<1x16x256xf32>
    %111 = vector.shape_cast %110 : vector<1x16x256xf32> to vector<16x256xf32>
    %112 = vector.shape_cast %109 : vector<16x256xf32> to vector<1x16x256xf32>
    tpu.vector_store %arg6[%c0_56, %c0_57, %c0_58], %112 {strides = array<i32>} : memref<1x16x256xf32, #tpu.memory_space<vmem>>, vector<1x16x256xf32>,
    return
  }
  func.func @transform_0(%arg0: i32) -> (i32, i32, i32) {
    %c0_i32 = arith.constant 0 : i32
    %c0_i32_0 = arith.constant 0 : i32
    %c0_i32_1 = arith.constant 0 : i32
    return %arg0, %c0_i32, %c0_i32_0 : i32, i32, i32
  }
  func.func @transform_1(%arg0: i32) -> (i32, i32) {
    %c0_i32 = arith.constant 0 : i32
    %c0_i32_0 = arith.constant 0 : i32
    %c0_i32_1 = arith.constant 0 : i32
    return %c0_i32, %c0_i32_0 : i32, i32
  }
  func.func @transform_2(%arg0: i32) -> (i32, i32) {
    %c0_i32 = arith.constant 0 : i32
    %c0_i32_0 = arith.constant 0 : i32
    %c0_i32_1 = arith.constant 0 : i32
    return %c0_i32, %c0_i32_0 : i32, i32
  }
  func.func @transform_3(%arg0: i32) -> (i32, i32, i32) {
    %c0_i32 = arith.constant 0 : i32
    %c0_i32_0 = arith.constant 0 : i32
    %c0_i32_1 = arith.constant 0 : i32
    %c0_i32_2 = arith.constant 0 : i32
    return %c0_i32, %c0_i32_0, %c0_i32_1 : i32, i32, i32
  }
  func.func @transform_4(%arg0: i32) -> (i32, i32) {
    %c0_i32 = arith.constant 0 : i32
    %c0_i32_0 = arith.constant 0 : i32
    %c0_i32_1 = arith.constant 0 : i32
    return %c0_i32, %c0_i32_0 : i32, i32
  }
  func.func @transform_5(%arg0: i32) -> (i32, i32, i32) {
    %c0_i32 = arith.constant 0 : i32
    %c0_i32_0 = arith.constant 0 : i32
    %c0_i32_1 = arith.constant 0 : i32
    return %arg0, %c0_i32, %c0_i32_0 : i32, i32, i32
  }
}

</mosaic_0001>

<bundles_post_ra>
// kernel: sppf_pallas.1
= control target key start
LH: loop header
LB: loop body
LE: loop exit
PB: predicated region body
PF: predicated region fallthrough
CT: control target
= control target key end

     0   :  { %s5065_s18 = smov 0   ;;  %s8301_s0 = inlined_call_operand.vmem [shape: f32[2,8,256], index: 0, kind: input, shape index: {}]   ;;  %s8302_s1 = inlined_call_operand.vmem [shape: f32[8,4], index: 1, kind: input, shape index: {}]   ;;  %s8303_s2 = inlined_call_operand.vmem [shape: f32[1,4], index: 2, kind: input, shape index: {}]   ;;  %s8304_s3 = inlined_call_operand.vmem [shape: f32[4,16,4], index: 3, kind: input, shape index: {}]   ;;  %s8305_s4 = inlined_call_operand.vmem [shape: f32[16,1], index: 4, kind: input, shape index: {}]   ;;  %s8306_s5 = inlined_call_operand.vmem [shape: f32[2,16,256], index: 5, kind: output, shape index: {}]  }
   0x1 LB: > { %s4411_s19 = sadd.s32 4294967295, %s5031_s18   ;;  %p4415_p0 = scmp.ge.s32.totalorder %s5031_s18, 1  ;;  %s5031_s18 = sphi %s5065_s18, %s15_s18  }
   0x2   : > { %p187_p1 = scmp.lt.s32.totalorder %s5031_s18, 3 }
   0x4   : > { %p188_p2 = pnand %p4415_p0, %p187_p1 }
   0x6   : > { %191 = sbr.rel (%p188_p2) target bundleno = 1099 (0x44b), region = 40 }
   0xb   : > { %p215_p3 = scmp.lt.s32.totalorder %s4411_s19, 1  ;;  %v291_v0 = vld [vmem:[%s8302_s1] sm:$0xff]  ;;  %vm299_vm0 = vcmask 64512   ;;  %vm845_vm1 = vcmask 31744   ;;  %vm861_vm2 = vcmask 25600   ;;  %v5033_v30 = vmov -inf  }
   0xc   : > { %4812 = vmatprep.subr.mxu0 %v291_v0  ;;  %855 = vst.msk [vmem:[#allocation2 + $0x1b8] sm:$0xff] %vm845_vm1, %v5033_v30  ;;  %858 = vst.msk [vmem:[#allocation2 + $0x1d0] sm:$0xff] %vm845_vm1, %v5033_v30  ;;  %vm848_vm3 = vcmask 27648   ;;  %v5157_v36 = vld [vmem:[%s8303_s2] ss:$0 sm:$0xff]  ;;  %vm1048_vm4 = vcmask 1046528  }
   0xd   : > { %s8905_s19 = smov (!%p215_p3, %s4411_s19), 1  ;;  %4813 = vmatpush3.msra.mxu0 %v291_v0  ;;  %889 = vst.msk [vmem:[#allocation2 + $0x14a] sm:$0x3] %vm861_vm2, %v5033_v30  ;;  %890 = vst.msk [vmem:[#allocation2 + $0x162] sm:$0x3] %vm861_vm2, %v5033_v30  ;;  %vm1329_vm5 = vcmask 1045504  }
   0xe   : > { %s4633_s20 = sshll.u32 %s8905_s19, 4  ;;  %891 = vst.msk [vmem:[#allocation2 + $0x17a] sm:$0x3] %vm861_vm2, %v5033_v30  ;;  %892 = vst.msk [vmem:[#allocation2 + $0x192] sm:$0x3] %vm861_vm2, %v5033_v30  ;;  %vm1510_vm6 = vcmask 1043456  }
   0xf   : > { %s219_s25 = scalar_lea.vmem %s8301_s0, %s4633_s20  ;;  %893 = vst.msk [vmem:[#allocation2 + $0x1aa] sm:$0x3] %vm861_vm2, %v5033_v30  ;;  %862 = vst.msk [vmem:[#allocation2 + $0x30] sm:$0x3] %vm861_vm2, %v5033_v30  ;;  %s4634_s27 = sshll.u32 %s8905_s19, 5 }
  0x10   : > { %v225_v1 = vld [vmem:[%s219_s25] sm:$0xff]  ;;  %v226_v2 = vld [vmem:[%s219_s25 + $0x8] sm:$0xff]  ;;  %846 = vst.msk [vmem:[#allocation2] sm:$0xff] %vm845_vm1, %v5033_v30  ;;  %847 = vst.msk [vmem:[#allocation2 + $0x8] sm:$0xff] %vm845_vm1, %v5033_v30  ;;  %s224_s30 = scalar_lea.vmem %s8306_s5, %s4634_s27 }
  0x11   : > { %227 = vxpose.xlu0.b32.start.end [1/1] (short) %v225_v1, 128  ;;  %850 = vst.msk [vmem:[#allocation2 + $0x18] sm:$0xff] %vm845_vm1, %v5033_v30  ;;  %851 = vst.msk [vmem:[#allocation2 + $0x20] sm:$0xff] %vm845_vm1, %v5033_v30 }
  0x12   : > { %854 = vst.msk [vmem:[#allocation2 + $0x1b0] sm:$0xff] %vm845_vm1, %v5033_v30  ;;  %857 = vst.msk [vmem:[#allocation2 + $0x1c8] sm:$0xff] %vm845_vm1, %v5033_v30 }
  0x13   : > { %863 = vst.msk [vmem:[#allocation2 + $0x48] sm:$0x3] %vm861_vm2, %v5033_v30  ;;  %864 = vst.msk [vmem:[#allocation2 + $0x60] sm:$0x3] %vm861_vm2, %v5033_v30 }
  0x14   : > { %865 = vst.msk [vmem:[#allocation2 + $0x78] sm:$0x3] %vm861_vm2, %v5033_v30  ;;  %866 = vst.msk [vmem:[#allocation2 + $0x90] sm:$0x3] %vm861_vm2, %v5033_v30 }
  0x15   : > { %867 = vst.msk [vmem:[#allocation2 + $0xa8] sm:$0x3] %vm861_vm2, %v5033_v30  ;;  %868 = vst.msk [vmem:[#allocation2 + $0xc0] sm:$0x3] %vm861_vm2, %v5033_v30 }
  0x16   : > { %869 = vst.msk [vmem:[#allocation2 + $0xd8] sm:$0x3] %vm861_vm2, %v5033_v30  ;;  %870 = vst.msk [vmem:[#allocation2 + $0xf0] sm:$0x3] %vm861_vm2, %v5033_v30 }
  0x17   : > { %871 = vst.msk [vmem:[#allocation2 + $0x108] sm:$0x3] %vm861_vm2, %v5033_v30  ;;  %872 = vst.msk [vmem:[#allocation2 + $0x120] sm:$0x3] %vm861_vm2, %v5033_v30 }
  0x18   : > { %873 = vst.msk [vmem:[#allocation2 + $0x138] sm:$0x3] %vm861_vm2, %v5033_v30  ;;  %874 = vst.msk [vmem:[#allocation2 + $0x150] sm:$0x3] %vm861_vm2, %v5033_v30 }
  0x19   : > { %875 = vst.msk [vmem:[#allocation2 + $0x168] sm:$0x3] %vm861_vm2, %v5033_v30  ;;  %876 = vst.msk [vmem:[#allocation2 + $0x180] sm:$0x3] %vm861_vm2, %v5033_v30 }
  0x1a   : > { %877 = vst.msk [vmem:[#allocation2 + $0x198] sm:$0x3] %vm861_vm2, %v5033_v30  ;;  %878 = vst.msk [vmem:[#allocation2 + $0x42] sm:$0x3] %vm861_vm2, %v5033_v30 }
  0x1b   : > { %879 = vst.msk [vmem:[#allocation2 + $0x5a] sm:$0x3] %vm861_vm2, %v5033_v30  ;;  %880 = vst.msk [vmem:[#allocation2 + $0x72] sm:$0x3] %vm861_vm2, %v5033_v30 }
  0x1c   : > { %881 = vst.msk [vmem:[#allocation2 + $0x8a] sm:$0x3] %vm861_vm2, %v5033_v30  ;;  %882 = vst.msk [vmem:[#allocation2 + $0xa2] sm:$0x3] %vm861_vm2, %v5033_v30 }
  0x1d   : > { %883 = vst.msk [vmem:[#allocation2 + $0xba] sm:$0x3] %vm861_vm2, %v5033_v30  ;;  %884 = vst.msk [vmem:[#allocation2 + $0xd2] sm:$0x3] %vm861_vm2, %v5033_v30 }
  0x1e   : > { %885 = vst.msk [vmem:[#allocation2 + $0xea] sm:$0x3] %vm861_vm2, %v5033_v30  ;;  %886 = vst.msk [vmem:[#allocation2 + $0x102] sm:$0x3] %vm861_vm2, %v5033_v30 }
  0x1f   : > { %887 = vst.msk [vmem:[#allocation2 + $0x11a] sm:$0x3] %vm861_vm2, %v5033_v30  ;;  %888 = vst.msk [vmem:[#allocation2 + $0x132] sm:$0x3] %vm861_vm2, %v5033_v30 }
  0x20   : > { %849 = vst.msk [vmem:[#allocation2 + $0x10] sm:$0xf] %vm848_vm3, %v5033_v30  ;;  %852 = vst.msk [vmem:[#allocation2 + $0x28] sm:$0xf] %vm848_vm3, %v5033_v30 }
  0x21   : > { %856 = vst.msk [vmem:[#allocation2 + $0x1c0] sm:$0xf] %vm848_vm3, %v5033_v30  ;;  %859 = vst.msk [vmem:[#allocation2 + $0x1d8] sm:$0xf] %vm848_vm3, %v5033_v30 }
  0x4e   : > { %259 = vxpose.xlu0.b32.start.end [1/1] (short) %v226_v2, 128 }
  0x8d   : > { %v243_v3 = vpop.trf.xlu0 }
  0x8e   : > { %4814 = vmatprep.mubr.msk.f32.mxu0 %vm299_vm0, %v243_v3 }
  0x91   : > { %v244_v4 = vpop.trf.xlu0 }
  0x92   : > { %4815 = vmatmul.mubr.msk.f32.vlgmr.msra.gmra.mxu0 %vm299_vm0, %v244_v4 }
  0x95   : > { %v245_v5 = vpop.trf.xlu0 }
  0x96   : > { %4817 = vmatprep.mubr.msk.f32.mxu0 %vm299_vm0, %v245_v5 }
  0x99   : > { %v246_v6 = vpop.trf.xlu0 }
  0x9a   : > { %4818 = vmatmul.mubr.msk.f32.gmra.mxu0 %vm299_vm0, %v246_v6 }
  0x9d   : > { %v247_v7 = vpop.trf.xlu0 }
  0x9e   : > { %4820 = vmatprep.mubr.msk.f32.mxu0 %vm299_vm0, %v247_v7 }
  0xa1   : > { %v248_v8 = vpop.trf.xlu0 }
  0xa2   : > { %4821 = vmatmul.mubr.msk.f32.gmra.mxu0 %vm299_vm0, %v248_v8 }
  0xa5   : > { %v249_v9 = vpop.trf.xlu0 }
  0xa6   : > { %4823 = vmatprep.mubr.msk.f32.mxu0 %vm299_vm0, %v249_v9 }
  0xa9   : > { %v250_v10 = vpop.trf.xlu0 }
  0xaa   : > { %4824 = vmatmul.mubr.msk.f32.gmra.mxu0 %vm299_vm0, %v250_v10 }
  0xad   : > { %v251_v11 = vpop.trf.xlu0 }
  0xae   : > { %4826 = vmatprep.mubr.msk.f32.mxu0 %vm299_vm0, %v251_v11 }
  0xb1   : > { %v252_v12 = vpop.trf.xlu0 }
  0xb2   : > { %4827 = vmatmul.mubr.msk.f32.gmra.mxu0 %vm299_vm0, %v252_v12 }
  0xb5   : > { %v253_v13 = vpop.trf.xlu0 }
  0xb6   : > { %4829 = vmatprep.mubr.msk.f32.mxu0 %vm299_vm0, %v253_v13 }
  0xb9   : > { %v254_v14 = vpop.trf.xlu0 }
  0xba   : > { %4830 = vmatmul.mubr.msk.f32.gmra.mxu0 %vm299_vm0, %v254_v14 }
  0xbd   : > { %v255_v15 = vpop.trf.xlu0 }
  0xbe   : > { %4832 = vmatprep.mubr.msk.f32.mxu0 %vm299_vm0, %v255_v15 }
  0xc1   : > { %v256_v16 = vpop.trf.xlu0 }
  0xc2   : > { %4833 = vmatmul.mubr.msk.f32.gmra.mxu0 %vm299_vm0, %v256_v16 }
  0xc5   : > { %v257_v17 = vpop.trf.xlu0 }
  0xc6   : > { %4835 = vmatprep.mubr.msk.f32.mxu0 %vm299_vm0, %v257_v17 }
  0xc9   : > { %v258_v18 = vpop.trf.xlu0 }
  0xca   : > { %4836 = vmatmul.mubr.msk.f32.gmra.mxu0 %vm299_vm0, %v258_v18 }
  0xcd   : > { %v275_v19 = vpop.trf.xlu0 }
  0xce   : > { %4838 = vmatprep.mubr.msk.f32.mxu0 %vm299_vm0, %v275_v19  ;;  %v5201_v19 = vld [vmem:[#allocation2 + $0x1b8] sm:$0xff] }
  0xd1   : > { %v276_v20 = vpop.trf.xlu0 }
  0xd2   : > { %4839 = vmatmul.mubr.msk.f32.gmra.mxu0 %vm299_vm0, %v276_v20  ;;  %v5203_v20 = vld [vmem:[#allocation2 + $0x1c0] sm:$0xf] }
  0xd5   : > { %v277_v21 = vpop.trf.xlu0 }
  0xd6   : > { %4841 = vmatprep.mubr.msk.f32.mxu0 %vm299_vm0, %v277_v21 }
  0xd9   : > { %v278_v22 = vpop.trf.xlu0 }
  0xda   : > { %4842 = vmatmul.mubr.msk.f32.gmra.mxu0 %vm299_vm0, %v278_v22  ;;  %v5206_v22 = vrot.slane %v5201_v19, 1 }
  0xdd   : > { %v279_v23 = vpop.trf.xlu0 }
  0xde   : > { %4844 = vmatprep.mubr.msk.f32.mxu0 %vm299_vm0, %v279_v23  ;;  %v1142_v23 = vrot.slane %v5203_v20, 1 }
  0xe1   : > { %v280_v24 = vpop.trf.xlu0 }
  0xe2   : > { %4845 = vmatmul.mubr.msk.f32.gmra.mxu0 %vm299_vm0, %v280_v24 }
  0xe5   : > { %v281_v25 = vpop.trf.xlu0 }
  0xe6   : > { %4847 = vmatprep.mubr.msk.f32.mxu0 %vm299_vm0, %v281_v25  ;;  %v5212_v25 = vld [vmem:[#allocation2 + $0x1b0] sm:$0xff] }
  0xe9   : > { %v282_v26 = vpop.trf.xlu0 }
  0xea   : > { %4848 = vmatmul.mubr.msk.f32.gmra.mxu0 %vm299_vm0, %v282_v26 }
  0xed   : > { %v283_v27 = vpop.trf.xlu0 }
  0xee   : > { %4850 = vmatprep.mubr.msk.f32.mxu0 %vm299_vm0, %v283_v27 }
  0xf1   : > { %v284_v28 = vpop.trf.xlu0 }
  0xf2   : > { %4851 = vmatmul.mubr.msk.f32.gmra.mxu0 %vm299_vm0, %v284_v28  ;;  %v1143_v28 = vsel %vm1048_vm4, %v5206_v22, %v1142_v23 }
  0xf5   : > { %v285_v29 = vpop.trf.xlu0 }
  0xf6   : > { %4853 = vmatprep.mubr.msk.f32.mxu0 %vm299_vm0, %v285_v29 }
  0xf9   : > { %v286_v31 = vpop.trf.xlu0 }
  0xfa   : > { %4854 = vmatmul.mubr.msk.f32.gmra.mxu0 %vm299_vm0, %v286_v31 }
  0xfd   : > { %v287_v32 = vpop.trf.xlu0 }
  0xfe   : > { %4856 = vmatprep.mubr.msk.f32.mxu0 %vm299_vm0, %v287_v32 }
 0x101   : > { %v288_v33 = vpop.trf.xlu0 }
 0x102   : > { %4857 = vmatmul.mubr.msk.f32.gmra.mxu0 %vm299_vm0, %v288_v33  ;;  %v5223_v33 = vld [vmem:[#allocation2 + $0x1d0] sm:$0xff] }
 0x105   : > { %v289_v34 = vpop.trf.xlu0 }
 0x106   : > { %4859 = vmatprep.mubr.msk.f32.mxu0 %vm299_vm0, %v289_v34  ;;  %v5225_v34 = vld [vmem:[#allocation2 + $0x1d8] sm:$0xf] }
 0x109   : > { %v290_v35 = vpop.trf.xlu0 }
 0x10a   : > { %4860 = vmatmul.mubr.msk.f32.gmra.mxu0 %vm299_vm0, %v290_v35 }
 0x152   : > { %v4816_v37 = vpop.f32.mrf.mxu0 }
 0x153   : > { %v468_v38 = vadd.f32 %v4816_v37, %v5157_v36 }
 0x154   : > { %v462_v39 = vpop.f32.mrf.mxu0 }
 0x155   : > { %v4454_v40 = vmul.f32 -1.442695, %v468_v38  ;;  %v463_v41 = vadd.f32 %v5157_v36, %v462_v39  ;;  %v1147_v39 = vrot.slane %v5225_v34, 1 }
 0x157   : > { %4875 = vpow2.f32 %v4454_v40  ;;  %v4453_v42 = vmul.f32 -1.442695, %v463_v41  ;;  %v1139_v40 = vrot.slane %v5212_v25, 1 }
 0x159   : > { %4877 = vpow2.f32 %v4453_v42 }
 0x15a   : > { %v4819_v43 = vpop.f32.mrf.mxu0 }
 0x15b   : > { %v5162_v44 = vadd.f32 %v4819_v43, %v5157_v36 }
 0x15c   : > { %v472_v45 = vpop.f32.mrf.mxu0 }
 0x15d   : > { %v4456_v46 = vmul.f32 -1.442695, %v5162_v44  ;;  %v5166_v47 = vadd.f32 %v5157_v36, %v472_v45 }
 0x15f   : > { %4879 = vpow2.f32 %v4456_v46  ;;  %v4455_v48 = vmul.f32 -1.442695, %v5166_v47 }
 0x161   : > { %4881 = vpow2.f32 %v4455_v48  ;;  %v1265_v48 = vmax.f32 %v5203_v20, %v1142_v23  ;;  %v1604_v23 = vrot.slane %v5203_v20, 4 }
 0x162   : > { %v4822_v49 = vpop.f32.mrf.mxu0 }
 0x163   : > { %v5170_v50 = vadd.f32 %v4822_v49, %v5157_v36  ;;  %v5246_v49 = vld [vmem:[#allocation2 + $0x1c8] sm:$0xff] }
 0x164   : > { %v4876_v51 = vpop.eup %4875  ;;  %v482_v52 = vpop.f32.mrf.mxu0  ;;  %8510 = vst [vmem:[#allocation7_spill] sm:$0xff] %v5246_v49 }
 0x165   : > { %v718_v53 = vadd.f32 1.0, %v4876_v51  ;;  %v4458_v54 = vmul.f32 -1.442695, %v5170_v50  ;;  %v5174_v55 = vadd.f32 %v5157_v36, %v482_v52  ;;  %v1141_v52 = vsel %vm1048_vm4, %v1139_v40, %v5206_v22 }
 0x166   : > { %v4878_v56 = vpop.eup %4877  ;;  %v1601_v40 = vrot.slane %v5212_v25, 4 }
 0x167   : > { %4883 = vrcp.f32 %v718_v53  ;;  %v717_v57 = vadd.f32 1.0, %v4878_v56  ;;  %v4457_v58 = vmul.f32 -1.442695, %v5174_v55 }
 0x168   : > { %4885 = vpow2.f32 %v4458_v54  ;;  %v1268_v54 = vmax.f32 %v5225_v34, %v1147_v39 }
 0x169   : > { %4887 = vrcp.f32 %v717_v57 }
 0x16a   : > { %4889 = vpow2.f32 %v4457_v58  ;;  %v4825_v59 = vpop.f32.mrf.mxu0 }
 0x16b   : > { %v5178_v60 = vadd.f32 %v4825_v59, %v5157_v36  ;;  %v1423_v59 = vrot.slane %v1265_v48, 2 }
 0x16c   : > { %v4880_v61 = vpop.eup %4879  ;;  %v492_v62 = vpop.f32.mrf.mxu0 }
 0x16d   : > { %v720_v63 = vadd.f32 1.0, %v4880_v61  ;;  %v4460_v0 = vmul.f32 -1.442695, %v5178_v60  ;;  %v5182_v1 = vadd.f32 %v5157_v36, %v492_v62  ;;  %v1144_v61 = vrot.slane %v5246_v49, 1 }
 0x16e   : > { %v4882_v2 = vpop.eup %4881 }
 0x16f   : > { %4891 = vrcp.f32 %v720_v63  ;;  %v719_v3 = vadd.f32 1.0, %v4882_v2  ;;  %v4459_v4 = vmul.f32 -1.442695, %v5182_v1 }
 0x170   : > { %4893 = vpow2.f32 %v4460_v0 }
 0x171   : > { %4895 = vrcp.f32 %v719_v3  ;;  %v5264_v3 = vmax.f32 %v5212_v25, %v1141_v52 }
 0x172   : > { %4897 = vpow2.f32 %v4459_v4  ;;  %v4828_v5 = vpop.f32.mrf.mxu0 }
 0x173   : > { %v5186_v6 = vadd.f32 %v4828_v5, %v5157_v36 }
 0x174   : > { %v4884_v7 = vpop.eup %4883  ;;  %v502_v8 = vpop.f32.mrf.mxu0 }
 0x175   : > { %v4886_v9 = vpop.eup %4885  ;;  %v5188_v10 = vmul.f32 %v4884_v7, %v468_v38  ;;  %v4462_v11 = vmul.f32 -1.442695, %v5186_v6  ;;  %v5192_v12 = vadd.f32 %v5157_v36, %v502_v8  ;;  %v5228_v38 = vrot.slane %v5223_v33, 1 }
 0x176   : > { %v4888_v13 = vpop.eup %4887  ;;  %v722_v14 = vadd.f32 1.0, %v4886_v9 }
 0x177   : > { %8506 = vst [vmem:[#allocation3_spill] sm:$0xff] %v5188_v10  ;;  %v4890_v15 = vpop.eup %4889  ;;  %895 = vst.msk [vmem:[#allocation2 + $0x3a] sm:$0xff] %vm845_vm1, %v5188_v10  ;;  %v5196_v16 = vmul.f32 %v4888_v13, %v463_v41  ;;  %4899 = vpow2.f32 %v4462_v11  ;;  %v4461_v17 = vmul.f32 -1.442695, %v5192_v12  ;;  %v1148_v46 = vsel %vm1048_vm4, %v5228_v38, %v1147_v39 }
 0x178   : > { %4901 = vrcp.f32 %v722_v14  ;;  %v721_v18 = vadd.f32 1.0, %v4890_v15  ;;  %v5249_v51 = vmax.f32 %v5223_v33, %v1148_v46  ;;  %v1428_v13 = vrot.slane %v1268_v54, 2 }
 0x179   : > { %8507 = vst [vmem:[#allocation4_spill] sm:$0xff] %v5196_v16  ;;  %894 = vst.msk [vmem:[#allocation2 + $0x32] sm:$0xff] %vm845_vm1, %v5196_v16  ;;  %4903 = vpow2.f32 %v4461_v17  ;;  %v5277_v15 = vrot.slane %v5201_v19, 4 }
 0x17a   : > { %4905 = vrcp.f32 %v721_v18  ;;  %v4831_v21 = vpop.f32.mrf.mxu0  ;;  %v1426_v7 = vrot.slane %v5249_v51, 2 }
 0x17b   : > { %v5210_v24 = vadd.f32 %v4831_v21, %v5157_v36  ;;  %v1420_v21 = vrot.slane %v5264_v3, 2  ;;  %v1605_v25 = vsel %vm1510_vm6, %v5277_v15, %v1604_v23 }
 0x17c   : > { %v4892_v26 = vpop.eup %4891  ;;  %v512_v27 = vpop.f32.mrf.mxu0 }
 0x17d   : > { %v4894_v29 = vpop.eup %4893  ;;  %v5217_v30 = vmul.f32 %v4892_v26, %v5162_v44  ;;  %v4464_v31 = vmul.f32 -1.442695, %v5210_v24  ;;  %v5221_v32 = vadd.f32 %v5157_v36, %v512_v27  ;;  %v5239_v44 = vmax.f32 %v5201_v19, %v1143_v28 }
 0x17e   : > { %v4896_v35 = vpop.eup %4895  ;;  %v724_v37 = vadd.f32 1.0, %v4894_v29  ;;  %v1607_v26 = vrot.slane %v5223_v33, 4  ;;  %v1609_v27 = vrot.slane %v5225_v34, 4  ;;  %v1429_v29 = vsel %vm1329_vm5, %v1426_v7, %v1428_v13 }
 0x17f   : > { %8508 = vst [vmem:[#allocation5_spill] sm:$0xff] %v5217_v30  ;;  %v4898_v41 = vpop.eup %4897  ;;  %897 = vst.msk [vmem:[#allocation2 + $0x52] sm:$0xff] %vm845_vm1, %v5217_v30  ;;  %v5235_v42 = vmul.f32 %v4896_v35, %v5166_v47  ;;  %4907 = vpow2.f32 %v4464_v31  ;;  %v4463_v43 = vmul.f32 -1.442695, %v5221_v32  ;;  %v1421_v58 = vrot.slane %v5239_v44, 2 }
 0x180   : > { %4909 = vrcp.f32 %v724_v37  ;;  %v723_v45 = vadd.f32 1.0, %v4898_v41  ;;  %v8308_v34 = vrot.slane %v5246_v49, 4  ;;  %v1509_v52 = vmax.f32 %v5249_v51, %v1429_v29 }
 0x181   : > { %8509 = vst [vmem:[#allocation6_spill] sm:$0xff] %v5235_v42  ;;  %896 = vst.msk [vmem:[#allocation2 + $0x4a] sm:$0xff] %vm845_vm1, %v5235_v42  ;;  %4911 = vpow2.f32 %v4463_v43  ;;  %v1424_v17 = vsel %vm1329_vm5, %v1421_v58, %v1423_v59  ;;  %v1422_v20 = vsel %vm1329_vm5, %v1420_v21, %v1421_v58  ;;  %v1610_v54 = vsel %vm1510_vm6, %v1607_v26, %v1609_v27 }
 0x182   : > { %4913 = vrcp.f32 %v723_v45  ;;  %v4834_v47 = vpop.f32.mrf.mxu0  ;;  %v1507_v39 = vmax.f32 %v5239_v44, %v1424_v17  ;;  %v1506_v59 = vmax.f32 %v5264_v3, %v1422_v20  ;;  %v5343_v13 = vmax.f32 %v1509_v52, %v1610_v54 }
 0x183   : > { %v5254_v53 = vadd.f32 %v4834_v47, %v5157_v36 }
 0x184   : > { %v4900_v56 = vpop.eup %4899  ;;  %v522_v57 = vpop.f32.mrf.mxu0  ;;  %8518 = vst [vmem:[#allocation15_spill] sm:$0xff] %v5343_v13 }
 0x185   : > { %v4902_v62 = vpop.eup %4901  ;;  %v726_v63 = vadd.f32 1.0, %v4900_v56  ;;  %v4466_v0 = vmul.f32 -1.442695, %v5254_v53  ;;  %v5261_v2 = vadd.f32 %v5157_v36, %v522_v57 }
 0x186   : > { %v4904_v4 = vpop.eup %4903  ;;  %v5267_v5 = vmul.f32 %v4902_v62, %v5170_v50  ;;  %v1146_v50 = vsel %vm1048_vm4, %v1144_v61, %v5228_v38 }
 0x187   : > { %v4906_v8 = vpop.eup %4905  ;;  %4915 = vrcp.f32 %v726_v63  ;;  %v725_v9 = vadd.f32 1.0, %v4904_v4  ;;  %v4465_v11 = vmul.f32 -1.442695, %v5261_v2  ;;  %v5283_v18 = vmax.f32 %v5246_v49, %v1146_v50  ;;  %v5345_v50 = vld [vmem:[#allocation2 + $0x1d8] sm:$0xf] }
 0x188   : > { %8511 = vst [vmem:[#allocation8_spill] sm:$0xff] %v5267_v5  ;;  %899 = vst.msk [vmem:[#allocation2 + $0x6a] sm:$0xff] %vm845_vm1, %v5267_v5  ;;  %v5274_v14 = vmul.f32 %v4906_v8, %v5174_v55  ;;  %4917 = vpow2.f32 %v4466_v0  ;;  %v5326_v63 = vsel %vm1510_vm6, %v1601_v40, %v5277_v15  ;;  %v1608_v0 = vsel %vm1510_vm6, %v8308_v34, %v1607_v26  ;;  %v5363_v40 = vld [vmem:[#allocation2 + $0x1c0] sm:$0xf] }
 0x189   : > { %4919 = vrcp.f32 %v725_v9  ;;  %v8310_v31 = vrot.slane %v5283_v18, 2  ;;  %8519 = vst [vmem:[#allocation16_spill] sm:$0xff] %v5345_v50  ;;  %v2402_v23 = vrot.slane %v5345_v50, 1  ;;  %v5349_v26 = vmax.f32 %v1506_v59, %v5326_v63 }
 0x18a   : > { %8512 = vst [vmem:[#allocation9_spill] sm:$0xff] %v5274_v14  ;;  %898 = vst.msk [vmem:[#allocation2 + $0x62] sm:$0xff] %vm845_vm1, %v5274_v14  ;;  %4921 = vpow2.f32 %v4465_v11  ;;  %v4837_v55 = vpop.f32.mrf.mxu0  ;;  %v5341_v11 = vmax.f32 %v1507_v39, %v1605_v25 }
 0x18b   : > { %v5292_v28 = vadd.f32 %v4837_v55, %v5157_v36  ;;  %v1427_v48 = vsel %vm1329_vm5, %v8310_v31, %v1426_v7  ;;  %8520 = vst [vmem:[#allocation17_spill] sm:$0xff] %v5349_v26 }
 0x18c   : > { %v4908_v35 = vpop.eup %4907  ;;  %v532_v37 = vpop.f32.mrf.mxu0  ;;  %v1508_v51 = vmax.f32 %v5283_v18, %v1427_v48  ;;  %8517 = vst [vmem:[#allocation14_spill] sm:$0xff] %v5341_v11  ;;  %v2403_v48 = vsel %vm1048_vm4, %v5228_v38, %v2402_v23 }
 0x18d   : > { %v4910_v41 = vpop.eup %4909  ;;  %v728_v43 = vadd.f32 1.0, %v4908_v35  ;;  %v4468_v45 = vmul.f32 -1.442695, %v5292_v28  ;;  %v5304_v46 = vadd.f32 %v5157_v36, %v532_v37 }
 0x18e   : > { %v4912_v44 = vpop.eup %4911  ;;  %v5310_v47 = vmul.f32 %v4910_v41, %v5178_v60  ;;  %v5351_v27 = vmax.f32 %v1508_v51, %v1608_v0 }
 0x18f   : > { %v4914_v56 = vpop.eup %4913  ;;  %4923 = vrcp.f32 %v728_v43  ;;  %v727_v57 = vadd.f32 1.0, %v4912_v44  ;;  %v4467_v58 = vmul.f32 -1.442695, %v5304_v46  ;;  %v942_v61 = vld [vmem:[#allocation2 + $0x70] sm:$0xf]  ;;  %v5369_v44 = vmax.f32 %v5345_v50, %v2402_v23 }
 0x190   : > { %8513 = vst [vmem:[#allocation10_spill] sm:$0xff] %v5310_v47  ;;  %901 = vst.msk [vmem:[#allocation2 + $0x82] sm:$0xff] %vm845_vm1, %v5310_v47  ;;  %v5321_v60 = vmul.f32 %v4914_v56, %v5182_v1  ;;  %4925 = vpow2.f32 %v4468_v45  ;;  %v1072_v62 = vrot.slane %v942_v61, 1 }
 0x191   : > { %4927 = vrcp.f32 %v727_v57  ;;  %v5331_v4 = vld [vmem:[#allocation2 + $0x68] sm:$0xff]  ;;  %8521 = vst [vmem:[#allocation18_spill] sm:$0xff] %v5351_v27  ;;  %8523 = vst [vmem:[#allocation20_spill] sm:$0xff] %v5369_v44 }
 0x192   : > { %8514 = vst [vmem:[#allocation11_spill] sm:$0xff] %v5321_v60  ;;  %8515 = vst [vmem:[#allocation12_spill] sm:$0xff] %v5331_v4  ;;  %4929 = vpow2.f32 %v4467_v58  ;;  %v4840_v1 = vpop.f32.mrf.mxu0  ;;  %v8307_v7 = vrot.slane %v5331_v4, 1  ;;  %v5336_v8 = vmax.f32 %v942_v61, %v1072_v62  ;;  %v5384_v58 = vmax.f32 %v5223_v33, %v2403_v48 }
 0x193   : > { %900 = vst.msk [vmem:[#allocation2 + $0x7a] sm:$0xff] %vm845_vm1, %v5321_v60  ;;  %v5339_v9 = vadd.f32 %v4840_v1, %v5157_v36 }
 0x194   : > { %8516 = vst [vmem:[#allocation13_spill] sm:$0xff] %v5336_v8  ;;  %v4916_v17 = vpop.eup %4915  ;;  %v542_v55 = vpop.f32.mrf.mxu0  ;;  %v1073_v29 = vsel %vm1048_vm4, %v8307_v7, %v1072_v62 }
 0x195   : > { %v4918_v35 = vpop.eup %4917  ;;  %v5357_v37 = vmul.f32 %v4916_v17, %v5186_v6  ;;  %v4470_v39 = vmul.f32 -1.442695, %v5339_v9  ;;  %v5361_v20 = vadd.f32 %v5157_v36, %v542_v55  ;;  %v2397_v6 = vrot.slane %v5363_v40, 1 }
 0x196   : > { %v4920_v43 = vpop.eup %4919  ;;  %v730_v45 = vadd.f32 1.0, %v4918_v35  ;;  %v5381_v57 = vmax.f32 %v5331_v4, %v1073_v29 }
 0x197   : > { %8522 = vst [vmem:[#allocation19_spill] sm:$0xff] %v5357_v37  ;;  %v4922_v52 = vpop.eup %4921  ;;  %903 = vst.msk [vmem:[#allocation2 + $0x9a] sm:$0xff] %vm845_vm1, %v5357_v37  ;;  %v5375_v25 = vmul.f32 %v4920_v43, %v5192_v12  ;;  %4931 = vpow2.f32 %v4470_v39  ;;  %v4469_v54 = vmul.f32 -1.442695, %v5361_v20  ;;  %v5378_v56 = vld [vmem:[#allocation2 + $0x88] sm:$0xf]  ;;  %v2398_v12 = vsel %vm1048_vm4, %v5206_v22, %v2397_v6 }
 0x198   : > { %8525 = vst [vmem:[#allocation22_spill] sm:$0xff] %v5381_v57  ;;  %4933 = vrcp.f32 %v730_v45  ;;  %v729_v38 = vadd.f32 1.0, %v4922_v52  ;;  %v2520_v61 = vmax.f32 %v5363_v40, %v2397_v6  ;;  %v1077_v62 = vrot.slane %v5378_v56, 1 }
 0x199   : > { %8524 = vst [vmem:[#allocation21_spill] sm:$0xff] %v5375_v25  ;;  %902 = vst.msk [vmem:[#allocation2 + $0x92] sm:$0xff] %vm845_vm1, %v5375_v25  ;;  %4935 = vpow2.f32 %v4469_v54  ;;  %v2519_v17 = vmax.f32 %v5201_v19, %v2398_v12 }
 0x19a   : > { %v5392_v51 = vld [vmem:[#allocation2 + $0x80] sm:$0xff]  ;;  %v5395_v0 = vld [vmem:[#allocation2 + $0x78] sm:$0xff]  ;;  %4937 = vrcp.f32 %v729_v38  ;;  %v4843_v33 = vpop.f32.mrf.mxu0  ;;  %v2677_v22 = vrot.slane %v2520_v61, 2  ;;  %v5404_v29 = vmax.f32 %v5378_v56, %v1077_v62  ;;  %v2857_v61 = vrot.slane %v5363_v40, 4 }
 0x19b   : > { %8526 = vst [vmem:[#allocation23_spill] sm:$0xff] %v5395_v0  ;;  %v8309_v55 = vrot.slane %v5392_v51, 1  ;;  %v5401_v23 = vadd.f32 %v4843_v33, %v5157_v36  ;;  %v2675_v45 = vrot.slane %v2519_v17, 2 }
 0x19c   : > { %v4924_v39 = vpop.eup %4923  ;;  %v552_v43 = vpop.f32.mrf.mxu0 }
 0x19d   : > { %v1078_v48 = vsel %vm1048_vm4, %v8309_v55, %v1077_v62  ;;  %v4926_v52 = vpop.eup %4925  ;;  %v5413_v54 = vmul.f32 %v4924_v39, %v5210_v24  ;;  %v4472_v38 = vmul.f32 -1.442695, %v5401_v23  ;;  %v5417_v12 = vadd.f32 %v5157_v36, %v552_v43 }
 0x19e   : > { %v4928_v33 = vpop.eup %4927  ;;  %v732_v7 = vadd.f32 1.0, %v4926_v52  ;;  %v2676_v62 = vsel %vm1329_vm5, %v1420_v21, %v2675_v45  ;;  %v2678_v41 = vsel %vm1329_vm5, %v2675_v45, %v2677_v22  ;;  %v948_v1 = vld [vmem:[#allocation2 + $0xa0] sm:$0xf]  ;;  %v5435_v45 = vmax.f32 %v5392_v51, %v1078_v48 }
 0x19f   : > { %v4930_v24 = vpop.eup %4929  ;;  %905 = vst.msk [vmem:[#allocation2 + $0xb2] sm:$0xff] %vm845_vm1, %v5413_v54  ;;  %v5428_v39 = vmul.f32 %v4928_v33, %v5221_v32  ;;  %4939 = vpow2.f32 %v4472_v38  ;;  %v4471_v40 = vmul.f32 -1.442695, %v5417_v12  ;;  %v2760_v43 = vmax.f32 %v5264_v3, %v2676_v62 }
 0x1a0   : > { %4941 = vrcp.f32 %v732_v7  ;;  %v731_v52 = vadd.f32 1.0, %v4930_v24  ;;  %v2761_v21 = vmax.f32 %v2519_v17, %v2678_v41  ;;  %v947_v6 = vld [vmem:[#allocation2 + $0x98] sm:$0xff]  ;;  %v5432_v22 = vld [vmem:[#allocation2 + $0x90] sm:$0xff]  ;;  %8528 = vst [vmem:[#allocation25_spill] sm:$0xff] %v5435_v45  ;;  %v2858_v32 = vsel %vm1510_vm6, %v5277_v15, %v2857_v61 }
 0x1a1   : > { %8527 = vst [vmem:[#allocation24_spill] sm:$0xff] %v5428_v39  ;;  %904 = vst.msk [vmem:[#allocation2 + $0xaa] sm:$0xff] %vm845_vm1, %v5428_v39  ;;  %4943 = vpow2.f32 %v4471_v40  ;;  %v1080_v38 = vrot.slane %v947_v6, 1  ;;  %v1082_v33 = vrot.slane %v948_v1, 1  ;;  %v5442_v7 = vmax.f32 %v2760_v43, %v5326_v63 }
 0x1a2   : > { %4945 = vrcp.f32 %v731_v52  ;;  %v4846_v3 = vpop.f32.mrf.mxu0  ;;  %v1542_v41 = vrot.slane %v947_v6, 4  ;;  %v1544_v17 = vrot.slane %v948_v1, 4  ;;  %v1079_v40 = vrot.slane %v5432_v22, 1 }
 0x1a3   : > { %8529 = vst [vmem:[#allocation26_spill] sm:$0xff] %v5442_v7  ;;  %v5445_v62 = vadd.f32 %v4846_v3, %v5157_v36  ;;  %v1083_v48 = vsel %vm1048_vm4, %v1080_v38, %v1082_v33  ;;  %v1229_v24 = vmax.f32 %v948_v1, %v1082_v33  ;;  %v5449_v15 = vmax.f32 %v2761_v21, %v2858_v32 }
 0x1a4   : > { %v4932_v34 = vpop.eup %4931  ;;  %v562_v55 = vpop.f32.mrf.mxu0  ;;  %v5451_v61 = vmax.f32 %v947_v6, %v1083_v48  ;;  %v1545_v52 = vsel %vm1510_vm6, %v1542_v41, %v1544_v17  ;;  %v1541_v63 = vrot.slane %v5432_v22, 4  ;;  %v1081_v17 = vsel %vm1048_vm4, %v1079_v40, %v1080_v38 }
 0x1a5   : > { %8530 = vst [vmem:[#allocation27_spill] sm:$0xff] %v5449_v15  ;;  %v4934_v43 = vpop.eup %4933  ;;  %v734_v59 = vadd.f32 1.0, %v4932_v34  ;;  %v4474_v3 = vmul.f32 -1.442695, %v5445_v62  ;;  %v5457_v31 = vadd.f32 %v5157_v36, %v562_v55  ;;  %v1363_v32 = vrot.slane %v1229_v24, 2 }
 0x1a6   : > { %v4936_v33 = vpop.eup %4935  ;;  %v5461_v35 = vmul.f32 %v4934_v43, %v5254_v53  ;;  %v951_v21 = vld [vmem:[#allocation2 + $0xb8] sm:$0xf]  ;;  %v8315_v6 = vrot.slane %v5451_v61, 2 }
 0x1a7   : > { %v4938_v48 = vpop.eup %4937  ;;  %4947 = vrcp.f32 %v734_v59  ;;  %v733_v34 = vadd.f32 1.0, %v4936_v33  ;;  %v4473_v19 = vmul.f32 -1.442695, %v5457_v31  ;;  %v1087_v16 = vrot.slane %v951_v21, 1 }
 0x1a8   : > { %907 = vst.msk [vmem:[#allocation2 + $0xca] sm:$0xff] %vm845_vm1, %v5461_v35  ;;  %v5469_v55 = vmul.f32 %v4938_v48, %v5261_v2  ;;  %4949 = vpow2.f32 %v4474_v3  ;;  %v950_v53 = vld [vmem:[#allocation2 + $0xb0] sm:$0xff]  ;;  %v1549_v43 = vrot.slane %v951_v21, 4  ;;  %v949_v1 = vld [vmem:[#allocation2 + $0xa8] sm:$0xff]  ;;  %v1364_v38 = vsel %vm1329_vm5, %v8315_v6, %v1363_v32 }
 0x1a9   : > { %4951 = vrcp.f32 %v733_v34  ;;  %v1085_v59 = vrot.slane %v950_v53, 1  ;;  %v1232_v24 = vmax.f32 %v951_v21, %v1087_v16  ;;  %v1547_v40 = vrot.slane %v950_v53, 4 }
 0x1aa   : > { %906 = vst.msk [vmem:[#allocation2 + $0xc2] sm:$0xff] %vm845_vm1, %v5469_v55  ;;  %4953 = vpow2.f32 %v4473_v19  ;;  %v4849_v33 = vpop.f32.mrf.mxu0  ;;  %v1084_v4 = vrot.slane %v949_v1, 1  ;;  %v1546_v2 = vrot.slane %v949_v1, 4  ;;  %v1483_v3 = vmax.f32 %v5451_v61, %v1364_v38 }
 0x1ab   : > { %v5478_v48 = vadd.f32 %v4849_v33, %v5157_v36  ;;  %v1088_v10 = vsel %vm1048_vm4, %v1085_v59, %v1087_v16  ;;  %v1368_v42 = vrot.slane %v1232_v24, 2  ;;  %v5482_v32 = vsel %vm1510_vm6, %v1541_v63, %v1542_v41 }
 0x1ac   : > { %v4940_v21 = vpop.eup %4939  ;;  %v572_v34 = vpop.f32.mrf.mxu0  ;;  %v1231_v6 = vmax.f32 %v950_v53, %v1088_v10  ;;  %v1550_v15 = vsel %vm1510_vm6, %v1547_v40, %v1549_v43  ;;  %v1086_v19 = vsel %vm1048_vm4, %v1084_v4, %v1085_v59  ;;  %v1548_v30 = vsel %vm1510_vm6, %v1546_v2, %v1547_v40 }
 0x1ad   : > { %v4942_v7 = vpop.eup %4941  ;;  %v736_v38 = vadd.f32 1.0, %v4940_v21  ;;  %v4476_v33 = vmul.f32 -1.442695, %v5478_v48  ;;  %v5489_v14 = vadd.f32 %v5157_v36, %v572_v34  ;;  %v1230_v16 = vmax.f32 %v949_v1, %v1086_v19 }
 0x1ae   : > { %v4944_v24 = vpop.eup %4943  ;;  %v5492_v41 = vmul.f32 %v4942_v7, %v5292_v28  ;;  %v1366_v63 = vrot.slane %v1231_v6, 2  ;;  %v5494_v10 = vmax.f32 %v1483_v3, %v1545_v52  ;;  %v5497_v53 = vmax.f32 %v5432_v22, %v1081_v17 }
 0x1af   : > { %v4946_v4 = vpop.eup %4945  ;;  %4955 = vrcp.f32 %v736_v38  ;;  %v735_v43 = vadd.f32 1.0, %v4944_v24  ;;  %v4475_v59 = vmul.f32 -1.442695, %v5489_v14  ;;  %v954_v40 = vld [vmem:[#allocation2 + $0xd0] sm:$0xf]  ;;  %v1365_v2 = vrot.slane %v1230_v16, 2 }
 0x1b0   : > { %8531 = vst [vmem:[#allocation28_spill] sm:$0xff] %v5494_v10  ;;  %909 = vst.msk [vmem:[#allocation2 + $0xe2] sm:$0xff] %vm845_vm1, %v5492_v41  ;;  %v5503_v1 = vmul.f32 %v4946_v4, %v5304_v46  ;;  %4957 = vpow2.f32 %v4476_v33  ;;  %v1092_v28 = vrot.slane %v954_v40, 1  ;;  %v1369_v7 = vsel %vm1329_vm5, %v1366_v63, %v1368_v42 }
 0x1b1   : > { %4959 = vrcp.f32 %v735_v43  ;;  %v953_v22 = vld [vmem:[#allocation2 + $0xc8] sm:$0xff]  ;;  %v1485_v52 = vmax.f32 %v1231_v6, %v1369_v7  ;;  %v1554_v17 = vrot.slane %v954_v40, 4  ;;  %v952_v3 = vld [vmem:[#allocation2 + $0xc0] sm:$0xff]  ;;  %v1367_v21 = vsel %vm1329_vm5, %v1365_v2, %v1366_v63 }
 0x1b2   : > { %908 = vst.msk [vmem:[#allocation2 + $0xda] sm:$0xff] %vm845_vm1, %v5503_v1  ;;  %4961 = vpow2.f32 %v4475_v59  ;;  %v4852_v34 = vpop.f32.mrf.mxu0  ;;  %v1090_v19 = vrot.slane %v953_v22, 1  ;;  %v1235_v38 = vmax.f32 %v954_v40, %v1092_v28  ;;  %v1552_v46 = vrot.slane %v953_v22, 4 }
 0x1b3   : > { %v5510_v33 = vadd.f32 %v4852_v34, %v5157_v36  ;;  %v5512_v24 = vmax.f32 %v1485_v52, %v1550_v15  ;;  %v1089_v42 = vrot.slane %v952_v3, 1  ;;  %v1484_v4 = vmax.f32 %v1230_v16, %v1367_v21 }
 0x1b4   : > { %v4948_v6 = vpop.eup %4947  ;;  %v582_v43 = vpop.f32.mrf.mxu0  ;;  %v1093_v7 = vsel %vm1048_vm4, %v1090_v19, %v1092_v28  ;;  %v1373_v63 = vrot.slane %v1235_v38, 2  ;;  %v1555_v2 = vsel %vm1510_vm6, %v1552_v46, %v1554_v17  ;;  %v1551_v5 = vrot.slane %v952_v3, 4 }
 0x1b5   : > { %8532 = vst [vmem:[#allocation29_spill] sm:$0xff] %v5512_v24  ;;  %v4950_v59 = vpop.eup %4949  ;;  %v5517_v60 = vmul.f32 %v4948_v6, %v5339_v9  ;;  %v4478_v40 = vmul.f32 -1.442695, %v5510_v33  ;;  %v5521_v34 = vadd.f32 %v5157_v36, %v582_v43  ;;  %v5523_v15 = vmax.f32 %v953_v22, %v1093_v7 }
 0x1b6   : > { %v4952_v16 = vpop.eup %4951  ;;  %v738_v52 = vadd.f32 1.0, %v4950_v59  ;;  %v1091_v21 = vsel %vm1048_vm4, %v1089_v42, %v1090_v19  ;;  %v5527_v28 = vsel %vm1510_vm6, %v1551_v5, %v1552_v46  ;;  %v5529_v17 = vmax.f32 %v1484_v4, %v1548_v30 }
 0x1b7   : > { %8533 = vst [vmem:[#allocation30_spill] sm:$0xff] %v5517_v60  ;;  %v4954_v38 = vpop.eup %4953  ;;  %911 = vst.msk [vmem:[#allocation2 + $0xfa] sm:$0xff] %vm845_vm1, %v5517_v60  ;;  %v5534_v9 = vmul.f32 %v4952_v16, %v5361_v20  ;;  %4963 = vpow2.f32 %v4478_v40  ;;  %v4477_v22 = vmul.f32 -1.442695, %v5521_v34  ;;  %v957_v6 = vld [vmem:[#allocation2 + $0xe8] sm:$0xf]  ;;  %v5547_v4 = vmax.f32 %v952_v3, %v1091_v21 }
 0x1b8   : > { %8534 = vst [vmem:[#allocation31_spill] sm:$0xff] %v5529_v17  ;;  %v8322_v43 = vrot.slane %v5523_v15, 2  ;;  %4965 = vrcp.f32 %v738_v52  ;;  %v737_v19 = vadd.f32 1.0, %v4954_v38  ;;  %v1097_v42 = vrot.slane %v957_v6, 1 }
 0x1b9   : > { %8535 = vst [vmem:[#allocation32_spill] sm:$0xff] %v5534_v9  ;;  %v1559_v5 = vrot.slane %v957_v6, 4  ;;  %910 = vst.msk [vmem:[#allocation2 + $0xf2] sm:$0xff] %vm845_vm1, %v5534_v9  ;;  %4967 = vpow2.f32 %v4477_v22  ;;  %v5540_v30 = vld [vmem:[#allocation2 + $0xe0] sm:$0xff]  ;;  %v5545_v46 = vld [vmem:[#allocation2 + $0xd8] sm:$0xff]  ;;  %v5551_v7 = vmax.f32 %v5494_v10, %v5512_v24  ;;  %v1370_v3 = vrot.slane %v5547_v4, 2 }
 0x1ba   : > { %v1374_v20 = vsel %vm1329_vm5, %v8322_v43, %v1373_v63  ;;  %4969 = vrcp.f32 %v737_v19  ;;  %v4855_v59 = vpop.f32.mrf.mxu0  ;;  %v1095_v40 = vrot.slane %v5540_v30, 1  ;;  %v1238_v16 = vmax.f32 %v957_v6, %v1097_v42 }
 0x1bb   : > { %8536 = vst [vmem:[#allocation33_spill] sm:$0xff] %v5551_v7  ;;  %v1487_v52 = vmax.f32 %v5523_v15, %v1374_v20  ;;  %v5556_v38 = vadd.f32 %v4855_v59, %v5157_v36  ;;  %v1094_v22 = vrot.slane %v5545_v46, 1 }
 0x1bc   : > { %v4956_v21 = vpop.eup %4955  ;;  %v592_v43 = vpop.f32.mrf.mxu0  ;;  %v1098_v9 = vsel %vm1048_vm4, %v1095_v40, %v1097_v42  ;;  %v1378_v19 = vrot.slane %v1238_v16, 2 }
 0x1bd   : > { %v5562_v60 = vmax.f32 %v1487_v52, %v1555_v2  ;;  %v4958_v8 = vpop.eup %4957  ;;  %v5566_v20 = vmul.f32 %v4956_v21, %v5401_v23  ;;  %v4480_v59 = vmul.f32 -1.442695, %v5556_v38  ;;  %v5570_v63 = vadd.f32 %v5157_v36, %v592_v43 }
 0x1be   : > { %v5573_v57 = vmax.f32 %v5540_v30, %v1098_v9  ;;  %v4960_v47 = vpop.eup %4959  ;;  %v740_v50 = vadd.f32 1.0, %v4958_v8  ;;  %v960_v42 = vld [vmem:[#allocation2 + $0x100] sm:$0xf]  ;;  %v8539_v2 = vrot.slane %v5540_v30, 4  ;;  %v1096_v23 = vsel %vm1048_vm4, %v1094_v22, %v1095_v40 }
 0x1bf   : > { %8537 = vst [vmem:[#allocation34_spill] sm:$0xff] %v5562_v60  ;;  %8538 = vst [vmem:[#allocation35_spill] sm:$0xff] %v5566_v20  ;;  %v5580_v52 = vmax.f32 %v5512_v24, %v5562_v60  ;;  %v4962_v21 = vpop.eup %4961  ;;  %v5586_v9 = vmul.f32 %v4960_v47, %v5417_v12  ;;  %4971 = vpow2.f32 %v4480_v59  ;;  %v4479_v8 = vmul.f32 -1.442695, %v5570_v63 }
 0x1c0   : > { %v1560_v16 = vsel %vm1510_vm6, %v8539_v2, %v1559_v5  ;;  %913 = vst.msk [vmem:[#allocation2 + $0x112] sm:$0xff] %vm845_vm1, %v5566_v20  ;;  %v1102_v43 = vrot.slane %v960_v42, 1  ;;  %4973 = vrcp.f32 %v740_v50  ;;  %v739_v6 = vadd.f32 1.0, %v4962_v21  ;;  %v5589_v5 = vld [vmem:[#allocation2 + $0xf8] sm:$0xff]  ;;  %v5592_v49 = vld [vmem:[#allocation2 + $0xf0] sm:$0xff] }
 0x1c1   : > { %8540 = vst [vmem:[#allocation36_spill] sm:$0xff] %v5586_v9  ;;  %v1376_v2 = vrot.slane %v5573_v57, 2  ;;  %v1564_v24 = vrot.slane %v960_v42, 4  ;;  %912 = vst.msk [vmem:[#allocation2 + $0x10a] sm:$0xff] %vm845_vm1, %v5586_v9  ;;  %4975 = vpow2.f32 %v4479_v8  ;;  %v1100_v47 = vrot.slane %v5589_v5, 1 }
 0x1c2   : > { %v1241_v12 = vmax.f32 %v960_v42, %v1102_v43  ;;  %v8336_v40 = vrot.slane %v5589_v5, 4  ;;  %4977 = vrcp.f32 %v739_v6  ;;  %v4858_v22 = vpop.f32.mrf.mxu0  ;;  %v1099_v59 = vrot.slane %v5592_v49, 1 }
 0x1c3   : > { %v1379_v50 = vsel %vm1329_vm5, %v1376_v2, %v1378_v19  ;;  %v5601_v21 = vmax.f32 %v5545_v46, %v1096_v23  ;;  %v5604_v20 = vadd.f32 %v4858_v22, %v5157_v36  ;;  %v1103_v9 = vsel %vm1048_vm4, %v1100_v47, %v1102_v43 }
 0x1c4   : > { %v1383_v8 = vrot.slane %v1241_v12, 2  ;;  %v1489_v25 = vmax.f32 %v5573_v57, %v1379_v50  ;;  %v4964_v42 = vpop.eup %4963  ;;  %v602_v27 = vpop.f32.mrf.mxu0  ;;  %v1240_v6 = vmax.f32 %v5589_v5, %v1103_v9  ;;  %v1565_v19 = vsel %vm1510_vm6, %v8336_v40, %v1564_v24 }
 0x1c5   : > { %v1101_v13 = vsel %vm1048_vm4, %v1099_v59, %v1100_v47  ;;  %v8541_v23 = vrot.slane %v5523_v15, 2  ;;  %v4966_v37 = vpop.eup %4965  ;;  %v742_v43 = vadd.f32 1.0, %v4964_v42  ;;  %v4482_v12 = vmul.f32 -1.442695, %v5604_v20 }
 0x1c6   : > { %v5620_v57 = vadd.f32 %v5157_v36, %v602_v27  ;;  %v5622_v50 = vmax.f32 %v1489_v25, %v1560_v16  ;;  %v4968_v9 = vpop.eup %4967  ;;  %v5625_v26 = vmul.f32 %v4966_v37, %v5445_v62  ;;  %v1381_v47 = vrot.slane %v1240_v6, 2 }
 0x1c7   : > { %v5616_v22 = vsel %vm1329_vm5, %v1370_v3, %v8541_v23  ;;  %v963_v24 = vld [vmem:[#allocation2 + $0x118] sm:$0xf]  ;;  %v5628_v15 = vmax.f32 %v5592_v49, %v1101_v13  ;;  %v1375_v3 = vrot.slane %v5601_v21, 2  ;;  %v4970_v59 = vpop.eup %4969  ;;  %4979 = vrcp.f32 %v742_v43 }
 0x1c8   : > { %8542 = vst [vmem:[#allocation37_spill] sm:$0xff] %v5625_v26  ;;  %v741_v42 = vadd.f32 1.0, %v4968_v9  ;;  %v4481_v23 = vmul.f32 -1.442695, %v5620_v57  ;;  %v1107_v27 = vrot.slane %v963_v24, 1  ;;  %915 = vst.msk [vmem:[#allocation2 + $0x12a] sm:$0xff] %vm845_vm1, %v5625_v26  ;;  %v5635_v25 = vmul.f32 %v4970_v59, %v5457_v31 }
 0x1c9   : > { %4981 = vpow2.f32 %v4482_v12  ;;  %v5637_v37 = vld [vmem:[#allocation2 + $0x110] sm:$0xff]  ;;  %v1384_v13 = vsel %vm1329_vm5, %v1381_v47, %v1383_v8  ;;  %v1569_v62 = vrot.slane %v963_v24, 4  ;;  %v5640_v16 = vld [vmem:[#allocation2 + $0x108] sm:$0xff]  ;;  %v1377_v59 = vsel %vm1329_vm5, %v1375_v3, %v1376_v2 }
 0x1ca   : > { %8543 = vst [vmem:[#allocation38_spill] sm:$0xff] %v5635_v25  ;;  %4983 = vrcp.f32 %v741_v42  ;;  %v1105_v43 = vrot.slane %v5637_v37, 1  ;;  %v1244_v9 = vmax.f32 %v963_v24, %v1107_v27  ;;  %v1491_v40 = vmax.f32 %v1240_v6, %v1384_v13  ;;  %914 = vst.msk [vmem:[#allocation2 + $0x122] sm:$0xff] %vm845_vm1, %v5635_v25  ;;  %v4861_v26 = vpop.f32.mrf.mxu0 }
 0x1cb   : > { %4985 = vpow2.f32 %v4481_v23  ;;  %v1567_v31 = vrot.slane %v5637_v37, 4  ;;  %v1104_v12 = vrot.slane %v5640_v16, 1  ;;  %v5649_v8 = vadd.f32 %v4861_v26, %v5157_v36 }
 0x1cc   : > { %v1108_v42 = vsel %vm1048_vm4, %v1105_v43, %v1107_v27  ;;  %v1388_v11 = vrot.slane %v1244_v9, 2  ;;  %v5652_v39 = vmax.f32 %v1491_v40, %v1565_v19  ;;  %v4972_v6 = vpop.eup %4971  ;;  %v612_v24 = vpop.f32.mrf.mxu0  ;;  %v1380_v0 = vrot.slane %v5628_v15, 2 }
 0x1cd   : > { %v1243_v13 = vmax.f32 %v5637_v37, %v1108_v42  ;;  %v1570_v23 = vsel %vm1510_vm6, %v1567_v31, %v1569_v62  ;;  %v1106_v25 = vsel %vm1048_vm4, %v1104_v12, %v1105_v43  ;;  %v4974_v44 = vpop.eup %4973  ;;  %v744_v2 = vadd.f32 1.0, %v4972_v6 }
 0x1ce   : > { %8544 = vst [vmem:[#allocation39_spill] sm:$0xff] %v5652_v39  ;;  %v4484_v26 = vmul.f32 -1.442695, %v5649_v8  ;;  %v5660_v3 = vadd.f32 %v5157_v36, %v612_v24  ;;  %v5664_v40 = vmax.f32 %v5622_v50, %v5652_v39  ;;  %v4976_v19 = vpop.eup %4975  ;;  %v5667_v27 = vmul.f32 %v4974_v44, %v5478_v48 }
 0x1cf   : > { %v1386_v37 = vrot.slane %v1243_v13, 2  ;;  %v1242_v62 = vmax.f32 %v5640_v16, %v1106_v25  ;;  %v1382_v43 = vsel %vm1329_vm5, %v1380_v0, %v1381_v47  ;;  %v4978_v9 = vpop.eup %4977  ;;  %4987 = vrcp.f32 %v744_v2 }
 0x1d0   : > { %8545 = vst [vmem:[#allocation40_spill] sm:$0xff] %v5664_v40  ;;  %8546 = vst [vmem:[#allocation41_spill] sm:$0xff] %v5667_v27  ;;  %v743_v12 = vadd.f32 1.0, %v4976_v19  ;;  %v4483_v42 = vmul.f32 -1.442695, %v5660_v3  ;;  %v1742_v36 = vmax.f32 %v5580_v52, %v5664_v40  ;;  %v5677_v6 = vmul.f32 %v4978_v9, %v5489_v14 }
 0x1d1   : > { %917 = vst.msk [vmem:[#allocation2 + $0x142] sm:$0xff] %vm845_vm1, %v5667_v27  ;;  %4989 = vpow2.f32 %v4484_v26  ;;  %v1389_v44 = vsel %vm1329_vm5, %v1386_v37, %v1388_v11  ;;  %v1385_v48 = vrot.slane %v1242_v62, 2  ;;  %v1486_v47 = vmax.f32 %v5547_v4, %v5616_v22 }
 0x1d2   : > { %8547 = vst [vmem:[#allocation42_spill] sm:$0xff] %v5677_v6  ;;  %4991 = vrcp.f32 %v743_v12  ;;  %v1493_v0 = vmax.f32 %v1243_v13, %v1389_v44  ;;  %v1488_v25 = vmax.f32 %v5601_v21, %v1377_v59  ;;  %916 = vst.msk [vmem:[#allocation2 + $0x13a] sm:$0xff] %vm845_vm1, %v5677_v6  ;;  %v1490_v14 = vmax.f32 %v5628_v15, %v1382_v43 }
 0x1d3   : > { %4993 = vpow2.f32 %v4483_v42  ;;  %v1387_v24 = vsel %vm1329_vm5, %v1385_v48, %v1386_v37  ;;  %v8548_v2 = vrot.slane %v5540_v30, 4  ;;  %v8549_v11 = vrot.slane %v5545_v46, 4 }
 0x1d4   : > { %v5692_v13 = vmax.f32 %v1493_v0, %v1570_v23  ;;  %v1492_v19 = vmax.f32 %v1242_v62, %v1387_v24  ;;  %v1561_v4 = vrot.slane %v5592_v49, 4  ;;  %v1566_v21 = vrot.slane %v5640_v16, 4  ;;  %v4980_v22 = vpop.eup %4979 }
 0x1d5   : > { %v1558_v26 = vsel %vm1510_vm6, %v8549_v11, %v8548_v2  ;;  %v5697_v59 = vmax.f32 %v1486_v47, %v5527_v28  ;;  %v5703_v30 = vmax.f32 %v5562_v60, %v5622_v50  ;;  %v1360_v46 = vrot.slane %v5497_v53, 2 }
 0x1d6   : > { %8550 = vst [vmem:[#allocation43_spill] sm:$0xff] %v5692_v13  ;;  %v5699_v37 = vmax.f32 %v1488_v25, %v1558_v26  ;;  %v4982_v15 = vpop.eup %4981  ;;  %v5707_v23 = vmul.f32 %v4980_v22, %v5510_v33  ;;  %v5710_v49 = vmax.f32 %v1742_v36, %v5692_v13  ;;  %v8555_v16 = vrot.slane %v5589_v5, 4 }
 0x1d7   : > { %8551 = vst [vmem:[#allocation44_spill] sm:$0xff] %v5697_v59  ;;  %8553 = vst [vmem:[#allocation46_spill] sm:$0xff] %v5703_v30  ;;  %v1568_v62 = vsel %vm1510_vm6, %v1566_v21, %v1567_v31  ;;  %v4984_v43 = vpop.eup %4983  ;;  %v746_v9 = vadd.f32 1.0, %v4982_v15  ;;  %v1358_v44 = vrot.slane %v5404_v29, 2  ;;  %v5730_v31 = vmax.f32 %v5529_v17, %v5697_v59 }
 0x1d8   : > { %8552 = vst [vmem:[#allocation45_spill] sm:$0xff] %v5699_v37  ;;  %8554 = vst [vmem:[#allocation47_spill] sm:$0xff] %v5710_v49  ;;  %v1563_v28 = vsel %vm1510_vm6, %v1561_v4, %v8555_v16  ;;  %v5718_v42 = vmax.f32 %v1492_v19, %v1568_v62  ;;  %v4986_v48 = vpop.eup %4985  ;;  %v5724_v33 = vmul.f32 %v4984_v43, %v5521_v34  ;;  %v969_v5 = vld [vmem:[#allocation2 + $0x148] sm:$0xf]  ;;  %v8560_v29 = vrot.slane %v5451_v61, 2 }
 0x1d9   : > { %v5716_v12 = vmax.f32 %v1490_v14, %v1563_v28  ;;  %919 = vst.msk [vmem:[#allocation2 + $0x15a] sm:$0xff] %vm845_vm1, %v5707_v23  ;;  %1806 = vst.msk [vmem:[#allocation2 + $0xe2] sm:$0xff] %vm845_vm1, %v5710_v49  ;;  %v1740_v36 = vmax.f32 %v5551_v7, %v5703_v30  ;;  %4995 = vrcp.f32 %v746_v9  ;;  %v745_v47 = vadd.f32 1.0, %v4986_v48  ;;  %v5743_v24 = vld [vmem:[#allocation2 + $0x140] sm:$0xff]  ;;  %v5756_v19 = vld [vmem:[#allocation2 + $0x138] sm:$0xff] }
 0x1da   : > { %8557 = vst [vmem:[#allocation49_spill] sm:$0xff] %v5718_v42  ;;  %8558 = vst [vmem:[#allocation50_spill] sm:$0xff] %v5724_v33  ;;  %v1362_v0 = vsel %vm1329_vm5, %v1360_v46, %v8560_v29  ;;  %v1117_v25 = vrot.slane %v969_v5, 1  ;;  %v5739_v34 = vmax.f32 %v5697_v59, %v5699_v37  ;;  %v8564_v11 = vrot.slane %v5435_v45, 2 }
 0x1db   : > { %8556 = vst [vmem:[#allocation48_spill] sm:$0xff] %v5716_v12  ;;  %8559 = vst [vmem:[#allocation51_spill] sm:$0xff] %v5730_v31  ;;  %v5747_v14 = vmax.f32 %v5699_v37, %v5716_v12  ;;  %v5750_v61 = vmax.f32 %v1740_v36, %v5652_v39  ;;  %v1482_v2 = vmax.f32 %v5497_v53, %v1362_v0  ;;  %4997 = vrcp.f32 %v745_v47 }
 0x1dc   : > { %8561 = vst [vmem:[#allocation52_spill] sm:$0xff] %v5739_v34  ;;  %918 = vst.msk [vmem:[#allocation2 + $0x152] sm:$0xff] %vm845_vm1, %v5724_v33  ;;  %v1359_v26 = vsel %vm1329_vm5, %v8564_v11, %v1358_v44  ;;  %v1115_v4 = vrot.slane %v5743_v24, 1  ;;  %v1250_v21 = vmax.f32 %v969_v5, %v1117_v25  ;;  %v8344_v22 = vrot.slane %v5743_v24, 4  ;;  %v4988_v28 = vpop.eup %4987 }
 0x1dd   : > { %8562 = vst [vmem:[#allocation53_spill] sm:$0xff] %v5747_v14  ;;  %8563 = vst [vmem:[#allocation54_spill] sm:$0xff] %v5750_v61  ;;  %v1579_v46 = vrot.slane %v969_v5, 4  ;;  %v1741_v15 = vmax.f32 %v5730_v31, %v5747_v14  ;;  %v5765_v53 = vmax.f32 %v1482_v2, %v5482_v32  ;;  %v1481_v16 = vmax.f32 %v5435_v45, %v1359_v26 }
 0x1de   : > { %1804 = vst.msk [vmem:[#allocation2 + $0xca] sm:$0xff] %vm845_vm1, %v5750_v61  ;;  %v1118_v62 = vsel %vm1048_vm4, %v1115_v4, %v1117_v25  ;;  %v1398_v43 = vrot.slane %v1250_v21, 2  ;;  %v8566_v9 = vrot.slane %v5378_v56, 4  ;;  %v8567_v44 = vrot.slane %v5392_v51, 4  ;;  %v4990_v36 = vpop.eup %4989 }
 0x1df   : > { %8565 = vst [vmem:[#allocation55_spill] sm:$0xff] %v5765_v53  ;;  %v1114_v5 = vrot.slane %v5756_v19, 1  ;;  %v5776_v29 = vmul.f32 %v4988_v28, %v5556_v38  ;;  %v5779_v32 = vmax.f32 %v5743_v24, %v1118_v62  ;;  %v1580_v0 = vsel %vm1510_vm6, %v8344_v22, %v1579_v46  ;;  %v4992_v56 = vpop.eup %4991 }
 0x1e0   : > { %v1540_v48 = vsel %vm1510_vm6, %v8567_v44, %v8566_v9  ;;  %v5785_v47 = vmax.f32 %v1741_v15, %v5718_v42  ;;  %v748_v25 = vadd.f32 1.0, %v4990_v36  ;;  %v972_v2 = vld [vmem:[#allocation2 + $0x160] sm:$0xf]  ;;  %v5787_v11 = vld [vmem:[#allocation2 + $0xe8] sm:$0xf]  ;;  %v5791_v26 = vmax.f32 %v5765_v53, %v5529_v17  ;;  %v4994_v28 = vpop.eup %4993 }
 0x1e1   : > { %v5793_v38 = vmax.f32 %v1481_v16, %v1540_v48  ;;  %v5796_v21 = vsel %vm1048_vm4, %v1114_v5, %v1115_v4  ;;  %921 = vst.msk [vmem:[#allocation2 + $0x172] sm:$0xff] %vm845_vm1, %v5776_v29  ;;  %v5801_v46 = vmul.f32 %v4992_v56, %v5570_v63  ;;  %v1122_v15 = vrot.slane %v972_v2, 1 }
 0x1e2   : > { %8568 = vst [vmem:[#allocation56_spill] sm:$0xff] %v5785_v47  ;;  %v8349_v62 = vrot.slane %v5779_v32, 2  ;;  %1805 = vst.msk [vmem:[#allocation2 + $0xda] sm:$0xff] %vm845_vm1, %v5785_v47  ;;  %4999 = vrcp.f32 %v748_v25  ;;  %v747_v16 = vadd.f32 1.0, %v4994_v28  ;;  %v1584_v4 = vrot.slane %v972_v2, 4 }
 0x1e3   : > { %8569 = vst [vmem:[#allocation57_spill] sm:$0xff] %v5793_v38  ;;  %v5807_v44 = vld [vmem:[#allocation2 + $0x158] sm:$0xff]  ;;  %v2352_v48 = vrot.slane %v5787_v11, 1  ;;  %v5810_v5 = vld [vmem:[#allocation2 + $0x150] sm:$0xff]  ;;  %920 = vst.msk [vmem:[#allocation2 + $0x16a] sm:$0xff] %vm845_vm1, %v5801_v46  ;;  %v1253_v36 = vmax.f32 %v972_v2, %v1122_v15  ;;  %v2812_v2 = vrot.slane %v5787_v11, 4 }
 0x1e4   : > { %v1120_v63 = vrot.slane %v5807_v44, 1  ;;  %v1399_v56 = vsel %vm1329_vm5, %v8349_v62, %v1398_v43  ;;  %v8352_v25 = vrot.slane %v5807_v44, 4  ;;  %5001 = vrcp.f32 %v747_v16 }
 0x1e5   : > { %v1497_v28 = vmax.f32 %v5779_v32, %v1399_v56  ;;  %v5821_v9 = vmax.f32 %v5787_v11, %v2352_v48  ;;  %v5823_v22 = vld [vmem:[#allocation2 + $0xd0] sm:$0xf]  ;;  %v1119_v14 = vrot.slane %v5810_v5, 1  ;;  %v1403_v17 = vrot.slane %v1253_v36, 2 }
 0x1e6   : > { %v1123_v40 = vsel %vm1048_vm4, %v1120_v63, %v1122_v15  ;;  %v8353_v30 = vrot.slane %v5823_v22, 1  ;;  %v1585_v16 = vsel %vm1510_vm6, %v8352_v25, %v1584_v4  ;;  %v4996_v39 = vpop.eup %4995 }
 0x1e7   : > { %v5830_v43 = vmax.f32 %v5807_v44, %v1123_v40  ;;  %v5835_v56 = vmax.f32 %v1497_v28, %v1580_v0  ;;  %v1121_v36 = vsel %vm1048_vm4, %v1119_v14, %v1120_v63  ;;  %v5847_v59 = vmul.f32 %v4996_v39, %v5604_v20 }
 0x1e8   : > { %v5841_v15 = vmax.f32 %v5823_v22, %v8353_v30  ;;  %v975_v4 = vld [vmem:[#allocation2 + $0x178] sm:$0xf]  ;;  %v5851_v62 = vmax.f32 %v5810_v5, %v1121_v36  ;;  %v4998_v42 = vpop.eup %4997 }
 0x1e9   : > { %v8367_v0 = vrot.slane %v5830_v43, 2  ;;  %v2211_v28 = vld [vmem:[#allocation2 + $0xd8] sm:$0xff]  ;;  %v2212_v25 = vld [vmem:[#allocation2 + $0xe0] sm:$0xff]  ;;  %v1127_v11 = vrot.slane %v975_v4, 1  ;;  %v1589_v60 = vrot.slane %v975_v4, 4  ;;  %923 = vst.msk [vmem:[#allocation2 + $0x18a] sm:$0xff] %vm845_vm1, %v5847_v59  ;;  %v5858_v39 = vmul.f32 %v4998_v42, %v5620_v57 }
 0x1ea   : > { %v2349_v14 = vrot.slane %v2211_v28, 1  ;;  %v2350_v63 = vrot.slane %v2212_v25, 1  ;;  %v974_v20 = vld [vmem:[#allocation2 + $0x170] sm:$0xff]  ;;  %v973_v40 = vld [vmem:[#allocation2 + $0x168] sm:$0xff]  ;;  %v2809_v13 = vrot.slane %v2211_v28, 4  ;;  %v2810_v7 = vrot.slane %v2212_v25, 4 }
 0x1eb   : > { %v1404_v36 = vsel %vm1329_vm5, %v8367_v0, %v1403_v17  ;;  %v1125_v30 = vrot.slane %v974_v20, 1  ;;  %v1256_v37 = vmax.f32 %v975_v4, %v1127_v11  ;;  %v1587_v53 = vrot.slane %v974_v20, 4  ;;  %922 = vst.msk [vmem:[#allocation2 + $0x182] sm:$0xff] %vm845_vm1, %v5858_v39 }
 0x1ec   : > { %v1499_v31 = vmax.f32 %v5830_v43, %v1404_v36  ;;  %v1124_v61 = vrot.slane %v973_v40, 1  ;;  %v1586_v45 = vrot.slane %v973_v40, 4  ;;  %v2351_v57 = vsel %vm1048_vm4, %v2349_v14, %v2350_v63 }
 0x1ed   : > { %v2353_v42 = vsel %vm1048_vm4, %v2350_v63, %v2352_v48  ;;  %v1128_v6 = vsel %vm1048_vm4, %v1125_v30, %v1127_v11  ;;  %v1408_v17 = vrot.slane %v1256_v37, 2  ;;  %v5873_v4 = vmax.f32 %v5793_v38, %v5494_v10 }
 0x1ee   : > { %v5869_v0 = vmax.f32 %v1499_v31, %v1585_v16  ;;  %v1255_v36 = vmax.f32 %v974_v20, %v1128_v6  ;;  %v1590_v47 = vsel %vm1510_vm6, %v1587_v53, %v1589_v60  ;;  %v1126_v27 = vsel %vm1048_vm4, %v1124_v61, %v1125_v30 }
 0x1ef   : > { %v2491_v49 = vmax.f32 %v2211_v28, %v2351_v57  ;;  %v5000_v33 = vpop.eup %4999  ;;  %v1254_v48 = vmax.f32 %v973_v40, %v1126_v27  ;;  %v1588_v37 = vsel %vm1510_vm6, %v1586_v45, %v1587_v53  ;;  %v5882_v31 = vmax.f32 %v2212_v25, %v2353_v42 }
 0x1f0   : > { %8570 = vst [vmem:[#allocation58_spill] sm:$0xff] %v5869_v0  ;;  %v5879_v14 = vmax.f32 %v5835_v56, %v5869_v0  ;;  %v844_v16 = vmul.f32 %v5000_v33, %v5649_v8  ;;  %v1406_v11 = vrot.slane %v1255_v36, 2  ;;  %v2811_v6 = vsel %vm1510_vm6, %v2809_v13, %v2810_v7  ;;  %v978_v20 = vld [vmem:[#allocation2 + $0x190] sm:$0xf] }
 0x1f1   : > { %v2629_v63 = vrot.slane %v2491_v49, 2  ;;  %v5002_v60 = vpop.eup %5001  ;;  %v1405_v30 = vrot.slane %v1254_v48, 2  ;;  %v2630_v61 = vrot.slane %v5882_v31, 2  ;;  %v2813_v28 = vsel %vm1510_vm6, %v2810_v7, %v2812_v2 }
 0x1f2   : > { %v1400_v57 = vrot.slane %v5851_v62, 2  ;;  %925 = vst.msk [vmem:[#allocation2 + $0x1a2] sm:$0xff] %vm845_vm1, %v844_v16  ;;  %v843_v45 = vmul.f32 %v5002_v60, %v5660_v3  ;;  %4704 = vmatprep.subr.msk.mxu0 %vm845_vm1, %v844_v16  ;;  %v1132_v8 = vrot.slane %v978_v20, 1  ;;  %v1409_v27 = vsel %vm1329_vm5, %v1406_v11, %v1408_v17  ;;  %v977_v13 = vld [vmem:[#allocation2 + $0x188] sm:$0xff]  ;;  %v976_v25 = vld [vmem:[#allocation2 + $0x180] sm:$0xff] }
 0x1f3   : > { %v1594_v33 = vrot.slane %v978_v20, 4  ;;  %4705 = vmatpush3.xpose.msk.msra.mxu0 %vm845_vm1, %v5492_v41  ;;  %v1501_v53 = vmax.f32 %v1255_v36, %v1409_v27  ;;  %v1407_v7 = vsel %vm1329_vm5, %v1405_v30, %v1406_v11  ;;  %v2631_v2 = vsel %vm1329_vm5, %v2629_v63, %v2630_v61 }
 0x1f4   : > { %v8571_v40 = vrot.slane %v5821_v9, 2  ;;  %924 = vst.msk [vmem:[#allocation2 + $0x19a] sm:$0xff] %vm845_vm1, %v843_v45  ;;  %4706 = vmatprep.subr.msk.mxu0 %vm845_vm1, %v843_v45  ;;  %v1130_v42 = vrot.slane %v977_v13, 1  ;;  %v1259_v17 = vmax.f32 %v978_v20, %v1132_v8  ;;  %v1592_v16 = vrot.slane %v977_v13, 4 }
 0x1f5   : > { %v1129_v60 = vrot.slane %v976_v25, 1  ;;  %v5902_v41 = vmax.f32 %v1501_v53, %v1590_v47  ;;  %v1500_v36 = vmax.f32 %v1254_v48, %v1407_v7  ;;  %v1591_v27 = vrot.slane %v976_v25, 4 }
 0x1f6   : > { %v2633_v3 = vsel %vm1329_vm5, %v2630_v61, %v8571_v40  ;;  %v2742_v10 = vmax.f32 %v2491_v49, %v2631_v2  ;;  %v1133_v11 = vsel %vm1048_vm4, %v1130_v42, %v1132_v8  ;;  %v1413_v63 = vrot.slane %v1259_v17, 2 }
 0x1f7   : > { %v1131_v9 = vsel %vm1048_vm4, %v1129_v60, %v1130_v42  ;;  %v2627_v30 = vrot.slane %v5841_v15, 2  ;;  %4707 = vmatpush3.xpose.msk.msra.mxu0 %vm845_vm1, %v5503_v1  ;;  %v1258_v61 = vmax.f32 %v977_v13, %v1133_v11  ;;  %v1595_v20 = vsel %vm1510_vm6, %v1592_v16, %v1594_v33 }
 0x1f8   : > { %v1257_v45 = vmax.f32 %v976_v25, %v1131_v9  ;;  %v1593_v47 = vsel %vm1510_vm6, %v1591_v27, %v1592_v16  ;;  %4708 = vmatprep.subr.msk.mxu0 %vm845_vm1, %v5847_v59  ;;  %v5913_v49 = vmax.f32 %v1500_v36, %v1588_v37  ;;  %v2743_v48 = vmax.f32 %v5882_v31, %v2633_v3 }
 0x1f9   : > { %v5916_v8 = vmax.f32 %v2742_v10, %v2811_v6  ;;  %v8573_v53 = vrot.slane %v5830_v43, 2  ;;  %v981_v1 = vld [vmem:[#allocation2 + $0x1a8] sm:$0xf]  ;;  %v1411_v13 = vrot.slane %v1258_v61, 2  ;;  %v5923_v33 = vmax.f32 %v5869_v0, %v5902_v41 }
 0x1fa   : > { %v1410_v2 = vrot.slane %v1257_v45, 2  ;;  %v1137_v59 = vrot.slane %v981_v1, 1  ;;  %v1599_v37 = vrot.slane %v981_v1, 4  ;;  %v8574_v40 = vrot.slane %v5807_v44, 4 }
 0x1fb   : > { %8572 = vst [vmem:[#allocation59_spill] sm:$0xff] %v5916_v8  ;;  %v1402_v7 = vsel %vm1329_vm5, %v1400_v57, %v8573_v53  ;;  %v8575_v10 = vrot.slane %v5810_v5, 4  ;;  %v8576_v43 = vmax.f32 %v5791_v26, %v5739_v34  ;;  %4709 = vmatpush3.xpose.msk.msra.mxu0 %vm845_vm1, %v5461_v35  ;;  %v980_v57 = vld [vmem:[#allocation2 + $0x1a0] sm:$0xff]  ;;  %v979_v3 = vld [vmem:[#allocation2 + $0x198] sm:$0xff]  ;;  %v5941_v44 = vmax.f32 %v2743_v48, %v2813_v28 }
 0x1fc   : > { %v1498_v25 = vmax.f32 %v5851_v62, %v1402_v7  ;;  %v1414_v62 = vsel %vm1329_vm5, %v1411_v13, %v1413_v63  ;;  %v1412_v42 = vsel %vm1329_vm5, %v1410_v2, %v1411_v13  ;;  %4710 = vmatprep.subr.msk.mxu0 %vm845_vm1, %v5858_v39  ;;  %v1135_v17 = vrot.slane %v980_v57, 1 }
 0x1fd   : > { %v1583_v31 = vsel %vm1510_vm6, %v8575_v10, %v8574_v40  ;;  %v5935_v6 = vmax.f32 %v8576_v43, %v5716_v12  ;;  %8577 = vst [vmem:[#allocation60_spill] sm:$0xff] %v5941_v44  ;;  %v1262_v16 = vmax.f32 %v981_v1, %v1137_v59  ;;  %v1503_v60 = vmax.f32 %v1258_v61, %v1414_v62 }
 0x1fe   : > { %v5943_v5 = vmax.f32 %v1498_v25, %v1583_v31  ;;  %v1597_v36 = vrot.slane %v980_v57, 4  ;;  %v1134_v35 = vrot.slane %v979_v3, 1  ;;  %v1502_v27 = vmax.f32 %v1257_v45, %v1412_v42 }
 0x1ff   : > { %1803 = vst.msk [vmem:[#allocation2 + $0xc2] sm:$0xff] %vm845_vm1, %v5935_v6  ;;  %v1596_v11 = vrot.slane %v979_v3, 4  ;;  %v1738_v63 = vmax.f32 %v5873_v4, %v5580_v52  ;;  %v1138_v28 = vsel %vm1048_vm4, %v1135_v17, %v1137_v59  ;;  %v1418_v9 = vrot.slane %v1262_v16, 2  ;;  %4711 = vmatpush3.xpose.msk.msra.mxu0 %vm845_vm1, %v5469_v55 }
 0x200   : > { %8578 = vst [vmem:[#allocation61_spill] sm:$0xff] %v5943_v5  ;;  %v5952_v48 = vmax.f32 %v1503_v60, %v1595_v20  ;;  %v5956_v39 = vmax.f32 %v5943_v5, %v5913_v49  ;;  %v1261_v61 = vmax.f32 %v980_v57, %v1138_v28  ;;  %v1600_v53 = vsel %vm1510_vm6, %v1597_v36, %v1599_v37 }
 0x201   : > { %v1136_v45 = vsel %vm1048_vm4, %v1134_v35, %v1135_v17  ;;  %v5962_v7 = vmax.f32 %v1502_v27, %v1593_v47  ;;  %4712 = vmatprep.subr.msk.mxu0 %vm845_vm1, %v5776_v29  ;;  %v5969_v1 = vmax.f32 %v1738_v63, %v5622_v50  ;;  %v5973_v55 = vmax.f32 %v5756_v19, %v5796_v21 }
 0x202   : > { %v1722_v52 = vmax.f32 %v5902_v41, %v5952_v48  ;;  %v1260_v20 = vmax.f32 %v979_v3, %v1136_v45  ;;  %v1416_v13 = vrot.slane %v1261_v61, 2  ;;  %v1598_v2 = vsel %vm1510_vm6, %v1596_v11, %v1597_v36  ;;  %v8582_v3 = vld [vmem:[#allocation20_spill] sm:$0xff] }
 0x203   : > { %v5978_v47 = vmax.f32 %v5913_v49, %v5962_v7  ;;  %v2680_v29 = vrot.slane %v5384_v58, 2  ;;  %1802 = vst.msk [vmem:[#allocation2 + $0xb2] sm:$0xff] %vm845_vm1, %v5969_v1  ;;  %v1395_v50 = vrot.slane %v5973_v55, 2  ;;  %v8579_v21 = vrot.slane %v5743_v24, 4  ;;  %4713 = vmatpush3.xpose.msk.msra.mxu0 %vm845_vm1, %v5413_v54 }
 0x204   : > { %v1754_v25 = vmax.f32 %v5879_v14, %v1722_v52  ;;  %v1415_v59 = vrot.slane %v1260_v20, 2  ;;  %v8580_v37 = vrot.slane %v5756_v19, 4  ;;  %v1419_v10 = vsel %vm1329_vm5, %v1416_v13, %v1418_v9  ;;  %v6003_v19 = vld [vmem:[#allocation2 + $0x1d0] sm:$0xff]  ;;  %4714 = vmatprep.subr.msk.mxu0 %vm845_vm1, %v5801_v46 }
 0x205   : > { %v8581_v57 = vrot.slane %v5283_v18, 2  ;;  %v8583_v42 = vrot.slane %v8582_v3, 2  ;;  %v2860_v17 = vrot.slane %v6003_v19, 4  ;;  %v1505_v54 = vmax.f32 %v1261_v61, %v1419_v10  ;;  %v8587_v61 = vld [vmem:[#allocation23_spill] sm:$0xff]  ;;  %v8590_v10 = vld [vmem:[#allocation14_spill] sm:$0xff] }
 0x206   : > { %v1578_v40 = vsel %vm1510_vm6, %v8580_v37, %v8579_v21  ;;  %v2208_v31 = vld [vmem:[#allocation2 + $0xc0] sm:$0xff]  ;;  %v2209_v43 = vld [vmem:[#allocation2 + $0xc8] sm:$0xff]  ;;  %v1417_v16 = vsel %vm1329_vm5, %v1415_v59, %v1416_v13  ;;  %v8584_v63 = vrot.slane %v5779_v32, 2  ;;  %v8586_v46 = vrot.slane %v5392_v51, 1 }
 0x207   : > { %v5996_v62 = vsel %vm1329_vm5, %v8581_v57, %v2680_v29  ;;  %v6001_v24 = vsel %vm1329_vm5, %v2680_v29, %v8583_v42  ;;  %v2344_v60 = vrot.slane %v2208_v31, 1  ;;  %v2345_v36 = vrot.slane %v2209_v43, 1 }
 0x208   : > { %v1504_v35 = vmax.f32 %v1260_v20, %v1417_v16  ;;  %v2804_v27 = vrot.slane %v2208_v31, 4  ;;  %v2805_v11 = vrot.slane %v2209_v43, 4  ;;  %v1397_v28 = vsel %vm1329_vm5, %v1395_v50, %v8584_v63  ;;  %v8589_v20 = vld [vmem:[#allocation24_spill] sm:$0xff]  ;;  %v8591_v16 = vld [vmem:[#allocation17_spill] sm:$0xff] }
 0x209   : > { %v1686_v9 = vmax.f32 %v1505_v54, %v1600_v53  ;;  %v2346_v45 = vsel %vm1048_vm4, %v2344_v60, %v2345_v36  ;;  %v8585_v29 = vrot.slane %v5823_v22, 1  ;;  %v8588_v13 = vrot.slane %v8587_v61, 1  ;;  %4715 = vmatpush3.xpose.msk.msra.mxu0 %vm845_vm1, %v8589_v20  ;;  %v6061_v20 = vld [vmem:[%s8304_s3] sm:$0xff] }
 0x20a   : > { %v6023_v37 = vmax.f32 %v1504_v35, %v1598_v2  ;;  %v2488_v32 = vmax.f32 %v2208_v31, %v2346_v45  ;;  %v1496_v53 = vmax.f32 %v5973_v55, %v1397_v28  ;;  %4716 = vmatprep.subr.msk.mxu0 %vm845_vm1, %v5707_v23  ;;  %v2806_v42 = vsel %vm1510_vm6, %v2804_v27, %v2805_v11  ;;  %v6037_v55 = vld [vmem:[#allocation2 + $0xb8] sm:$0xf]  ;;  %v8593_v27 = vld [vmem:[#allocation19_spill] sm:$0xff] }
 0x20b   : > { %v2348_v21 = vsel %vm1048_vm4, %v2345_v36, %v8585_v29  ;;  %v1076_v59 = vsel %vm1048_vm4, %v8588_v13, %v8586_v46  ;;  %v1726_v57 = vmax.f32 %v1686_v9, %v8590_v10  ;;  %v1724_v3 = vmax.f32 %v5952_v48, %v1686_v9  ;;  %v8594_v45 = vld [vmem:[#allocation50_spill] sm:$0xff]  ;;  %4736 = vmatprep.mubr.msk.f32.mxu0 %vm845_vm1, %v6061_v20 }
 0x20c   : > { %v2489_v50 = vmax.f32 %v2209_v43, %v2348_v21  ;;  %v6031_v54 = vmax.f32 %v1754_v25, %v1686_v9  ;;  %v1725_v60 = vmax.f32 %v6023_v37, %v8591_v16  ;;  %v1723_v2 = vmax.f32 %v5962_v7, %v6023_v37 }
 0x20d   : > { %v2624_v31 = vrot.slane %v2488_v32, 2  ;;  %v1758_v36 = vmax.f32 %v1722_v52, %v1726_v57  ;;  %v1756_v23 = vmax.f32 %v5923_v33, %v1724_v3  ;;  %v8592_v35 = vrot.slane %v5823_v22, 4  ;;  %4717 = vmatpush3.xpose.msk.msra.mxu0 %vm845_vm1, %v8593_v27  ;;  %v8596_v57 = vld [vmem:[#allocation18_spill] sm:$0xff] }
 0x20e   : > { %v2625_v43 = vrot.slane %v2489_v50, 2  ;;  %1818 = vst.msk [vmem:[#allocation2 + $0x172] sm:$0xff] %vm845_vm1, %v6031_v54  ;;  %v8373_v25 = vrot.slane %v6037_v55, 1  ;;  %v1757_v28 = vmax.f32 %v5978_v47, %v1725_v60  ;;  %v1755_v9 = vmax.f32 %v5956_v39, %v1723_v2  ;;  %4718 = vmatprep.subr.msk.mxu0 %vm845_vm1, %v8594_v45  ;;  %v8599_v2 = vld [vmem:[#allocation47_spill] sm:$0xff] }
 0x20f   : > { %v2808_v63 = vsel %vm1510_vm6, %v2805_v11, %v8592_v35  ;;  %v8595_v11 = vld [vmem:[#allocation15_spill] sm:$0xff]  ;;  %v1788_v21 = vmax.f32 %v1756_v23, %v8590_v10  ;;  %v6072_v60 = vmax.f32 %v1496_v53, %v1578_v40  ;;  %v6074_v10 = vld [vmem:[#allocation2 + $0x128] sm:$0xff]  ;;  %v2763_v40 = vmax.f32 %v5384_v58, %v6001_v24  ;;  %v966_v53 = vld [vmem:[#allocation2 + $0x130] sm:$0xf] }
 0x210   : > { %v2626_v52 = vsel %vm1329_vm5, %v2624_v31, %v2625_v43  ;;  %v2628_v22 = vsel %vm1329_vm5, %v2625_v43, %v2627_v30  ;;  %v1790_v29 = vmax.f32 %v1758_v36, %v8595_v11  ;;  %v1789_v3 = vmax.f32 %v1757_v28, %v8596_v57  ;;  %v8600_v31 = vld [vmem:[#allocation21_spill] sm:$0xff]  ;;  %v8601_v58 = vld [vmem:[#allocation7_spill] sm:$0xff]  ;;  %v8603_v43 = vld [vmem:[#allocation16_spill] sm:$0xff] }
 0x211   : > { %v2740_v46 = vmax.f32 %v2488_v32, %v2626_v52  ;;  %v2741_v13 = vmax.f32 %v2489_v50, %v2628_v22  ;;  %v6065_v15 = vmax.f32 %v1755_v9, %v8591_v16  ;;  %v6070_v30 = vmax.f32 %v6037_v55, %v8373_v25  ;;  %1820 = vst.msk [vmem:[#allocation2 + $0x18a] sm:$0xff] %vm845_vm1, %v1788_v21  ;;  %v8605_v35 = vld [vmem:[#allocation41_spill] sm:$0xff]  ;;  %v5020_v28 = vld [vmem:[#allocation2 + $0x78] sm:$0xff] }
 0x212   : > { %1822 = vst.msk [vmem:[#allocation2 + $0x1a2] sm:$0xff] %vm845_vm1, %v1790_v29  ;;  %4668 = vmatprep.subr.msk.mxu1 %vm845_vm1, %v1790_v29  ;;  %v2762_v16 = vmax.f32 %v5283_v18, %v5996_v62  ;;  %4719 = vmatpush3.xpose.msk.msra.mxu0 %vm845_vm1, %v8600_v31  ;;  %1821 = vst.msk [vmem:[#allocation2 + $0x19a] sm:$0xff] %vm845_vm1, %v1789_v3  ;;  %v6099_v18 = vmax.f32 %v6072_v60, %v5943_v5  ;;  %v8602_v62 = vrot.slane %v8601_v58, 4  ;;  %v8611_v58 = vld [vmem:[#allocation42_spill] sm:$0xff] }
 0x213   : > { %v6081_v32 = vmax.f32 %v2740_v46, %v2806_v42  ;;  %v6083_v50 = vmax.f32 %v2741_v13, %v2808_v63  ;;  %4669 = vmatpush3.xpose.msk.msra.mxu1 %vm845_vm1, %v8599_v2  ;;  %1819 = vst.msk [vmem:[#allocation2 + $0x182] sm:$0xff] %vm845_vm1, %v6065_v15  ;;  %v8604_v36 = vrot.slane %v8603_v43, 4  ;;  %4720 = vmatprep.subr.msk.mxu0 %vm845_vm1, %v8605_v35  ;;  %v8375_v52 = vrot.slane %v6074_v10, 1 }
 0x214   : > { %v2861_v24 = vsel %vm1510_vm6, %v8602_v62, %v2860_v17  ;;  %4670 = vmatprep.subr.msk.mxu1 %vm845_vm1, %v1789_v3  ;;  %v6117_v9 = vmax.f32 %v5020_v28, %v1076_v59  ;;  %v1753_v19 = vmax.f32 %v6099_v18, %v5978_v47  ;;  %v1112_v45 = vrot.slane %v966_v53, 1  ;;  %v8609_v47 = vld [vmem:[#allocation10_spill] sm:$0xff] }
 0x215   : > { %8597 = vst [vmem:[#allocation20_spill] sm:$0xff] %v6081_v32  ;;  %8598 = vst [vmem:[#allocation23_spill] sm:$0xff] %v6083_v50  ;;  %v2863_v23 = vsel %vm1510_vm6, %v2860_v17, %v8604_v36  ;;  %v6115_v27 = vmax.f32 %v2762_v16, %v2861_v24  ;;  %v6120_v22 = vld [vmem:[#allocation2 + $0x178] sm:$0xf]  ;;  %v8374_v11 = vrot.slane %v6074_v10, 4  ;;  %v8606_v13 = vrot.slane %v5392_v51, 4 }
 0x216   : > { %v6124_v17 = vmax.f32 %v2763_v40, %v2863_v23  ;;  %v8377_v29 = vrot.slane %v6120_v22, 1  ;;  %v1355_v46 = vrot.slane %v6117_v9, 2  ;;  %v8607_v59 = vrot.slane %v8587_v61, 4  ;;  %v8608_v16 = vld [vmem:[#allocation56_spill] sm:$0xff]  ;;  %4721 = vmatpush3.xpose.msk.msra.mxu0 %vm845_vm1, %v8609_v47  ;;  %v8610_v61 = vld [vmem:[#allocation22_spill] sm:$0xff]  ;;  %v8612_v24 = vld [vmem:[#allocation25_spill] sm:$0xff] }
 0x217   : > { %v1574_v3 = vrot.slane %v966_v53, 4  ;;  %4671 = vmatpush3.xpose.msk.msra.mxu1 %vm845_vm1, %v8608_v16  ;;  %v6141_v40 = vmax.f32 %v1753_v19, %v6023_v37  ;;  %v1113_v2 = vsel %vm1048_vm4, %v8375_v52, %v1112_v45  ;;  %v6146_v51 = vmax.f32 %v966_v53, %v1112_v45  ;;  %4722 = vmatprep.subr.msk.mxu0 %vm845_vm1, %v8611_v58  ;;  %v6176_v45 = vld [vmem:[#allocation2 + $0x68] sm:$0xff]  ;;  %v8614_v58 = vld [vmem:[#allocation13_spill] sm:$0xff]  ;;  %v8617_v52 = vld [vmem:[#allocation11_spill] sm:$0xff] }
 0x218   : > { %v6134_v57 = vsel %vm1510_vm6, %v8607_v59, %v8606_v13  ;;  %v8376_v31 = vrot.slane %v8610_v61, 2  ;;  %4672 = vmatprep.subr.msk.mxu1 %vm845_vm1, %v1788_v21  ;;  %v6155_v62 = vmax.f32 %v6120_v22, %v8377_v29  ;;  %v8613_v43 = vrot.slane %v8612_v24, 2  ;;  %v2234_v21 = vld [vmem:[#allocation2 + $0x190] sm:$0xf] }
 0x219   : > { %v6164_v53 = vmax.f32 %v6074_v10, %v1113_v2  ;;  %v2237_v23 = vld [vmem:[#allocation2 + $0x1a8] sm:$0xf]  ;;  %1817 = vst.msk [vmem:[#allocation2 + $0x16a] sm:$0xff] %vm845_vm1, %v6141_v40  ;;  %v6174_v19 = vsel %vm1510_vm6, %v8374_v11, %v1574_v3  ;;  %v2235_v16 = vld [vmem:[#allocation2 + $0x198] sm:$0xff]  ;;  %v2236_v47 = vld [vmem:[#allocation2 + $0x1a0] sm:$0xff]  ;;  %v2387_v2 = vrot.slane %v2234_v21, 1 }
 0x21a   : > { %v6161_v36 = vsel %vm1329_vm5, %v1355_v46, %v8613_v43  ;;  %v2392_v13 = vrot.slane %v2237_v23, 1  ;;  %v2852_v59 = vrot.slane %v2237_v23, 4  ;;  %v8615_v24 = vrot.slane %v8614_v58, 2  ;;  %v8616_v11 = vld [vmem:[#allocation54_spill] sm:$0xff]  ;;  %4723 = vmatpush3.xpose.msk.msra.mxu0 %vm845_vm1, %v8617_v52  ;;  %v2232_v46 = vld [vmem:[#allocation2 + $0x180] sm:$0xff]  ;;  %v2233_v28 = vld [vmem:[#allocation2 + $0x188] sm:$0xff] }
 0x21b   : > { %v2389_v63 = vrot.slane %v2235_v16, 1  ;;  %v2390_v42 = vrot.slane %v2236_v47, 1  ;;  %v2849_v3 = vrot.slane %v2235_v16, 4  ;;  %v2850_v25 = vrot.slane %v2236_v47, 4  ;;  %4673 = vmatpush3.xpose.msk.msra.mxu1 %vm845_vm1, %v8616_v11 }
 0x21c   : > { %v6184_v43 = vsel %vm1329_vm5, %v8376_v31, %v8615_v24  ;;  %v2517_v37 = vmax.f32 %v2237_v23, %v2392_v13  ;;  %v2514_v35 = vmax.f32 %v2234_v21, %v2387_v2  ;;  %4674 = vmatprep.subr.msk.mxu1 %vm845_vm1, %v6065_v15  ;;  %v2384_v58 = vrot.slane %v2232_v46, 1  ;;  %v8618_v31 = vld [vmem:[#allocation37_spill] sm:$0xff] }
 0x21d   : > { %v2385_v24 = vrot.slane %v2233_v28, 1  ;;  %4724 = vmatprep.subr.msk.mxu0 %vm845_vm1, %v8618_v31  ;;  %v2391_v29 = vsel %vm1048_vm4, %v2389_v63, %v2390_v42  ;;  %v2393_v44 = vsel %vm1048_vm4, %v2390_v42, %v2392_v13  ;;  %v2851_v11 = vsel %vm1510_vm6, %v2849_v3, %v2850_v25  ;;  %v8619_v31 = vld [vmem:[#allocation8_spill] sm:$0xff] }
 0x21e   : > { %v2847_v8 = vrot.slane %v2234_v21, 4  ;;  %v2672_v52 = vrot.slane %v2517_v37, 2  ;;  %v2515_v32 = vmax.f32 %v2235_v16, %v2391_v29  ;;  %v2516_v5 = vmax.f32 %v2236_v47, %v2393_v44  ;;  %4725 = vmatpush3.xpose.msk.msra.mxu0 %vm845_vm1, %v8619_v31  ;;  %v8620_v44 = vld [vmem:[#allocation38_spill] sm:$0xff] }
 0x21f   : > { %v2667_v23 = vrot.slane %v2514_v35, 2  ;;  %v2386_v34 = vsel %vm1048_vm4, %v2384_v58, %v2385_v24  ;;  %v2388_v15 = vsel %vm1048_vm4, %v2385_v24, %v2387_v2  ;;  %v2844_v12 = vrot.slane %v2232_v46, 4  ;;  %4675 = vmatpush3.xpose.msk.msra.mxu1 %vm845_vm1, %v5935_v6  ;;  %4726 = vmatprep.subr.msk.mxu0 %vm845_vm1, %v8620_v44  ;;  %v8621_v58 = vld [vmem:[#allocation9_spill] sm:$0xff] }
 0x220   : > { %v2845_v0 = vrot.slane %v2233_v28, 4  ;;  %v2669_v42 = vrot.slane %v2515_v32, 2  ;;  %v2670_v63 = vrot.slane %v2516_v5, 2  ;;  %v2512_v13 = vmax.f32 %v2232_v46, %v2386_v34  ;;  %4676 = vmatprep.subr.msk.mxu1 %vm845_vm1, %v6031_v54  ;;  %v2229_v29 = vld [vmem:[#allocation2 + $0x168] sm:$0xff]  ;;  %v2230_v37 = vld [vmem:[#allocation2 + $0x170] sm:$0xff] }
 0x221   : > { %v2513_v21 = vmax.f32 %v2233_v28, %v2388_v15  ;;  %v2853_v35 = vsel %vm1510_vm6, %v2850_v25, %v2852_v59  ;;  %v2379_v47 = vrot.slane %v2229_v29, 1  ;;  %v2380_v25 = vrot.slane %v2230_v37, 1 }
 0x222   : > { %v2846_v16 = vsel %vm1510_vm6, %v2844_v12, %v2845_v0  ;;  %v2848_v6 = vsel %vm1510_vm6, %v2845_v0, %v2847_v8  ;;  %v2671_v2 = vsel %vm1329_vm5, %v2669_v42, %v2670_v63  ;;  %v2673_v34 = vsel %vm1329_vm5, %v2670_v63, %v2672_v52  ;;  %4727 = vmatpush3.xpose.msk.msra.mxu0 %vm845_vm1, %v8621_v58 }
 0x223   : > { %v2664_v28 = vrot.slane %v2512_v13, 2  ;;  %v2665_v46 = vrot.slane %v2513_v21, 2  ;;  %v2758_v3 = vmax.f32 %v2515_v32, %v2671_v2  ;;  %v2759_v54 = vmax.f32 %v2516_v5, %v2673_v34  ;;  %4677 = vmatpush3.xpose.msk.msra.mxu1 %vm845_vm1, %v5969_v1  ;;  %v8622_v32 = vld [vmem:[#allocation35_spill] sm:$0xff]  ;;  %v8630_v2 = vld [vmem:[#allocation5_spill] sm:$0xff] }
 0x224   : > { %v2839_v59 = vrot.slane %v2229_v29, 4  ;;  %v2662_v8 = vrot.slane %v6155_v62, 2  ;;  %4678 = vmatprep.subr.msk.mxu1 %vm845_vm1, %v6141_v40  ;;  %v2840_v24 = vrot.slane %v2230_v37, 4  ;;  %4728 = vmatprep.subr.msk.mxu0 %vm845_vm1, %v8622_v32  ;;  %v2381_v31 = vsel %vm1048_vm4, %v2379_v47, %v2380_v25  ;;  %v8650_v32 = vld [vmem:[#allocation4_spill] sm:$0xff] }
 0x225   : > { %v2666_v12 = vsel %vm1329_vm5, %v2664_v28, %v2665_v46  ;;  %v2668_v0 = vsel %vm1329_vm5, %v2665_v46, %v2667_v23  ;;  %v6223_v5 = vmax.f32 %v2758_v3, %v2851_v11  ;;  %v6225_v1 = vmax.f32 %v2759_v54, %v2853_v35  ;;  %v8626_v11 = vld [vmem:[#allocation26_spill] sm:$0xff]  ;;  %v8631_v46 = vld [vmem:[#allocation55_spill] sm:$0xff] }
 0x226   : > { %v2756_v52 = vmax.f32 %v2512_v13, %v2666_v12  ;;  %v2757_v15 = vmax.f32 %v2513_v21, %v2668_v0  ;;  %v8623_v42 = vrot.slane %v6120_v22, 1  ;;  %v2841_v62 = vsel %vm1510_vm6, %v2839_v59, %v2840_v24  ;;  %4729 = vmatpush3.xpose.msk.msra.mxu0 %vm845_vm1, %v8630_v2  ;;  %v8634_v59 = vld [vmem:[#allocation51_spill] sm:$0xff] }
 0x227   : > { %v8624_v40 = vmax.f32 %v6117_v9, %v6161_v36  ;;  %v2978_v44 = vmax.f32 %v6223_v5, %v8626_v11  ;;  %v8629_v21 = vrot.slane %v6120_v22, 4  ;;  %v2509_v34 = vmax.f32 %v2229_v29, %v2381_v31  ;;  %v8632_v36 = vld [vmem:[#allocation36_spill] sm:$0xff]  ;;  %v8637_v31 = vld [vmem:[#allocation6_spill] sm:$0xff] }
 0x228   : > { %v2383_v23 = vsel %vm1048_vm4, %v2380_v25, %v8623_v42  ;;  %v6240_v35 = vmax.f32 %v2756_v52, %v2846_v16  ;;  %v6242_v13 = vmax.f32 %v2757_v15, %v2848_v6  ;;  %4730 = vmatprep.subr.msk.mxu0 %vm845_vm1, %v8632_v36  ;;  %v964_v16 = vld [vmem:[#allocation2 + $0x120] sm:$0xff]  ;;  %v1479_v29 = vmax.f32 %v8610_v61, %v6184_v43 }
 0x229   : > { %v6236_v63 = vmax.f32 %v8624_v40, %v6134_v57  ;;  %v2843_v47 = vsel %vm1510_vm6, %v2840_v24, %v8629_v21  ;;  %v2510_v28 = vmax.f32 %v2230_v37, %v2383_v23  ;;  %v1391_v57 = vrot.slane %v6164_v53, 2  ;;  %v8633_v6 = vld [vmem:[#allocation27_spill] sm:$0xff]  ;;  %v5022_v37 = vld [vmem:[#allocation2 + $0x70] sm:$0xf] }
 0x22a   : > { %8627 = vst [vmem:[#allocation14_spill] sm:$0xff] %v6240_v35  ;;  %8628 = vst [vmem:[#allocation17_spill] sm:$0xff] %v6242_v13  ;;  %v2979_v22 = vmax.f32 %v6225_v1, %v8633_v6  ;;  %v1534_v54 = vrot.slane %v5022_v37, 4  ;;  %v2659_v58 = vrot.slane %v2509_v34, 2  ;;  %v8635_v0 = vrot.slane %v6146_v51, 2  ;;  %4731 = vmatpush3.xpose.msk.msra.mxu0 %vm845_vm1, %v8637_v31  ;;  %v940_v23 = vld [vmem:[#allocation2 + $0x60] sm:$0xff] }
 0x22b   : > { %8625 = vst [vmem:[#allocation24_spill] sm:$0xff] %v6236_v63  ;;  %v6251_v9 = vmax.f32 %v6236_v63, %v8631_v46  ;;  %v2660_v25 = vrot.slane %v2510_v28, 2  ;;  %v8636_v15 = vrot.slane %v6176_v45, 4  ;;  %v1109_v42 = vrot.slane %v964_v16, 1  ;;  %v8638_v21 = vld [vmem:[#allocation45_spill] sm:$0xff]  ;;  %v8640_v37 = vld [vmem:[#allocation30_spill] sm:$0xff] }
 0x22c   : > { %v1394_v24 = vsel %vm1329_vm5, %v1391_v57, %v8635_v0  ;;  %4732 = vmatprep.subr.msk.mxu0 %vm845_vm1, %v8640_v37  ;;  %v8641_v0 = vrot.slane %v6074_v10, 1 }
 0x22d   : > { %v1737_v12 = vmax.f32 %v6251_v9, %v8634_v59  ;;  %v1495_v52 = vmax.f32 %v6164_v53, %v1394_v24  ;;  %v1535_v43 = vsel %vm1510_vm6, %v8636_v15, %v1534_v54  ;;  %v2661_v40 = vsel %vm1329_vm5, %v2659_v58, %v2660_v25  ;;  %v8643_v15 = vld [vmem:[#allocation33_spill] sm:$0xff] }
 0x22e   : > { %v2663_v51 = vsel %vm1329_vm5, %v2660_v25, %v2662_v8  ;;  %v6278_v36 = vmax.f32 %v1479_v29, %v1535_v43  ;;  %v2754_v53 = vmax.f32 %v2509_v34, %v2661_v40  ;;  %v1111_v24 = vsel %vm1048_vm4, %v1109_v42, %v8641_v0  ;;  %v8644_v42 = vld [vmem:[#allocation12_spill] sm:$0xff]  ;;  %v6327_v0 = vld [vmem:[#allocation2 + $0x58] sm:$0xf] }
 0x22f   : > { %v1769_v2 = vmax.f32 %v1737_v12, %v8638_v21  ;;  %v2755_v59 = vmax.f32 %v2510_v28, %v2663_v51  ;;  %v6283_v54 = vmax.f32 %v1495_v52, %v6174_v19  ;;  %v1245_v29 = vmax.f32 %v964_v16, %v1111_v24  ;;  %v8642_v52 = vld [vmem:[#allocation3_spill] sm:$0xff]  ;;  %v8647_v51 = vld [vmem:[#allocation32_spill] sm:$0xff]  ;;  %v8648_v24 = vld [vmem:[#allocation34_spill] sm:$0xff] }
 0x230   : > { %8639 = vst [vmem:[#allocation19_spill] sm:$0xff] %v6278_v36  ;;  %v6292_v8 = vmax.f32 %v6278_v36, %v5793_v38  ;;  %v1571_v58 = vrot.slane %v964_v16, 4  ;;  %v1069_v25 = vrot.slane %v940_v23, 1  ;;  %v6294_v34 = vmax.f32 %v2754_v53, %v2841_v62  ;;  %4733 = vmatpush3.xpose.msk.msra.mxu0 %vm845_vm1, %v8642_v52  ;;  %v8646_v62 = vld [vmem:[#allocation43_spill] sm:$0xff] }
 0x231   : > { %1801 = vst.msk [vmem:[#allocation2 + $0xaa] sm:$0xff] %vm845_vm1, %v1769_v2  ;;  %4679 = vmatpush3.xpose.msk.msra.mxu1 %vm845_vm1, %v1769_v2  ;;  %v6296_v28 = vmax.f32 %v2755_v59, %v2843_v47  ;;  %v6300_v19 = vmax.f32 %v6283_v54, %v5835_v56  ;;  %v1531_v12 = vrot.slane %v940_v23, 4  ;;  %v1390_v31 = vrot.slane %v1245_v29, 2  ;;  %4734 = vmatprep.subr.msk.mxu0 %vm845_vm1, %v8647_v51  ;;  %v6325_v59 = vld [vmem:[#allocation2 + $0x50] sm:$0xff] }
 0x232   : > { %v1736_v43 = vmax.f32 %v6292_v8, %v8643_v15  ;;  %v8645_v40 = vrot.slane %v8644_v42, 1  ;;  %v6311_v47 = vmax.f32 %v8646_v62, %v6283_v54  ;;  %v6317_v21 = vmax.f32 %v6294_v34, %v6240_v35 }
 0x233   : > { %v6321_v2 = vmax.f32 %v6296_v28, %v6242_v13  ;;  %v1752_v37 = vmax.f32 %v6300_v19, %v5923_v33  ;;  %v1392_v52 = vsel %vm1329_vm5, %v1390_v31, %v1391_v57  ;;  %v8649_v15 = vrot.slane %v6074_v10, 4 }
 0x234   : > { %v1071_v16 = vsel %vm1048_vm4, %v1069_v25, %v8645_v40  ;;  %v1768_v25 = vmax.f32 %v1736_v43, %v8648_v24  ;;  %v1750_v40 = vmax.f32 %v6311_v47, %v5879_v14  ;;  %v3010_v51 = vmax.f32 %v6317_v21, %v2978_v44  ;;  %4735 = vmatpush3.xpose.msk.msra.mxu0 %vm845_vm1, %v8650_v32 }
 0x235   : > { %v1221_v53 = vmax.f32 %v940_v23, %v1071_v16  ;;  %v1573_v42 = vsel %vm1510_vm6, %v1571_v58, %v8649_v15  ;;  %v3011_v33 = vmax.f32 %v6321_v2, %v2979_v22  ;;  %v1784_v23 = vmax.f32 %v1752_v37, %v5952_v48 }
 0x236   : > { %v1494_v16 = vmax.f32 %v1245_v29, %v1392_v52  ;;  %1800 = vst.msk [vmem:[#allocation2 + $0x9a] sm:$0xff] %vm845_vm1, %v1768_v25  ;;  %v6343_v10 = vmax.f32 %v1750_v40, %v5902_v41  ;;  %v8389_v58 = vrot.slane %v6325_v59, 1  ;;  %v1067_v14 = vrot.slane %v6327_v0, 1 }
 0x237   : > { %v1350_v57 = vrot.slane %v1221_v53, 2  ;;  %v6348_v44 = vmax.f32 %v3010_v51, %v6115_v27  ;;  %v6351_v22 = vmax.f32 %v3011_v33, %v6124_v17  ;;  %1816 = vst.msk [vmem:[#allocation2 + $0x15a] sm:$0xff] %vm845_vm1, %v1784_v23  ;;  %4680 = vmatprep.subr.msk.mxu1 %vm845_vm1, %v1784_v23  ;;  %v8653_v41 = vrot.slane %v6176_v45, 4  ;;  %4737 = vmatmul.mubr.msk.f32.vlgmr.msra.gmra.mxu0 %vm845_vm1, %v6061_v20 }
 0x238   : > { %v2205_v48 = vld [vmem:[#allocation2 + $0xa8] sm:$0xff]  ;;  %v2206_v29 = vld [vmem:[#allocation2 + $0xb0] sm:$0xff]  ;;  %v6355_v32 = vmax.f32 %v1494_v16, %v1573_v42  ;;  %4681 = vmatpush3.xpose.msk.msra.mxu1 %vm845_vm1, %v1768_v25  ;;  %1814 = vst.msk [vmem:[#allocation2 + $0x142] sm:$0xff] %vm845_vm1, %v6343_v10  ;;  %v8654_v45 = vrot.slane %v8610_v61, 2  ;;  %v1068_v25 = vsel %vm1048_vm4, %v8389_v58, %v1067_v14  ;;  %v1220_v20 = vmax.f32 %v6327_v0, %v1067_v14 }
 0x239   : > { %8651 = vst [vmem:[#allocation50_spill] sm:$0xff] %v6348_v44  ;;  %8652 = vst [vmem:[#allocation15_spill] sm:$0xff] %v6351_v22  ;;  %v1533_v43 = vsel %vm1510_vm6, %v1531_v12, %v8653_v41  ;;  %v2339_v31 = vrot.slane %v2205_v48, 1  ;;  %v2340_v37 = vrot.slane %v2206_v29, 1  ;;  %v2799_v24 = vrot.slane %v2205_v48, 4 }
 0x23a   : > { %v2800_v27 = vrot.slane %v2206_v29, 4  ;;  %3074 = vst.msk [vmem:[#allocation2 + $0x19a] sm:$0xff] %vm845_vm1, %v6348_v44  ;;  %3075 = vst.msk [vmem:[#allocation2 + $0x1a2] sm:$0xff] %vm845_vm1, %v6351_v22  ;;  %v6371_v17 = vmax.f32 %v6355_v32, %v6072_v60  ;;  %v1352_v12 = vsel %vm1329_vm5, %v1350_v57, %v8654_v45  ;;  %v8655_v15 = vrot.slane %v6037_v55, 1 }
 0x23b   : > { %v2341_v52 = vsel %vm1048_vm4, %v2339_v31, %v2340_v37  ;;  %v8388_v51 = vrot.slane %v6325_v59, 4  ;;  %v1478_v16 = vmax.f32 %v1221_v53, %v1352_v12  ;;  %v8656_v57 = vrot.slane %v6037_v55, 4 }
 0x23c   : > { %v2343_v42 = vsel %vm1048_vm4, %v2340_v37, %v8655_v15  ;;  %v2801_v40 = vsel %vm1510_vm6, %v2799_v24, %v2800_v27  ;;  %v2485_v33 = vmax.f32 %v2205_v48, %v2341_v52  ;;  %v1751_v23 = vmax.f32 %v6371_v17, %v5956_v39 }
 0x23d   : > { %v2486_v61 = vmax.f32 %v2206_v29, %v2343_v42  ;;  %v2803_v14 = vsel %vm1510_vm6, %v2800_v27, %v8656_v57  ;;  %v6392_v41 = vmax.f32 %v6325_v59, %v1068_v25  ;;  %v1348_v31 = vrot.slane %v1220_v20, 2  ;;  %v6395_v15 = vld [vmem:[#allocation2 + $0xa0] sm:$0xf]  ;;  %v8657_v29 = vld [vmem:[#allocation49_spill] sm:$0xff] }
 0x23e   : > { %v1529_v37 = vrot.slane %v6327_v0, 4  ;;  %v2619_v45 = vrot.slane %v2485_v33, 2  ;;  %v1783_v48 = vmax.f32 %v1751_v23, %v5962_v7  ;;  %v6400_v39 = vmax.f32 %v8657_v29, %v6355_v32  ;;  %v6402_v53 = vld [vmem:[#allocation2 + $0x160] sm:$0xf] }
 0x23f   : > { %v2620_v24 = vrot.slane %v2486_v61, 2  ;;  %v8385_v55 = vrot.slane %v6395_v15, 1  ;;  %v6406_v12 = vmax.f32 %v1478_v16, %v1533_v43  ;;  %v8387_v0 = vrot.slane %v6392_v41, 2  ;;  %v6416_v42 = vld [vmem:[#allocation2 + $0x148] sm:$0xf] }
 0x240   : > { %v8659_v20 = vrot.slane %v6070_v30, 2  ;;  %v2377_v52 = vrot.slane %v6402_v53, 1  ;;  %1815 = vst.msk [vmem:[#allocation2 + $0x152] sm:$0xff] %vm845_vm1, %v1783_v48  ;;  %4682 = vmatprep.subr.msk.mxu1 %vm845_vm1, %v1783_v48  ;;  %v1530_v43 = vsel %vm1510_vm6, %v8388_v51, %v1529_v37  ;;  %v8386_v48 = vrot.slane %v6416_v42, 1 }
 0x241   : > { %8658 = vst [vmem:[#allocation18_spill] sm:$0xff] %v6406_v12  ;;  %v2621_v25 = vsel %vm1329_vm5, %v2619_v45, %v2620_v24  ;;  %v6424_v30 = vmax.f32 %v6395_v15, %v8385_v55  ;;  %v6428_v57 = vmax.f32 %v6406_v12, %v6236_v63 }
 0x242   : > { %v2623_v7 = vsel %vm1329_vm5, %v2620_v24, %v8659_v20  ;;  %v2738_v23 = vmax.f32 %v2485_v33, %v2621_v25  ;;  %v6431_v45 = vmax.f32 %v6402_v53, %v2377_v52  ;;  %v2837_v24 = vrot.slane %v6402_v53, 4 }
 0x243   : > { %v2739_v16 = vmax.f32 %v2486_v61, %v2623_v7  ;;  %v1349_v33 = vsel %vm1329_vm5, %v8387_v0, %v1348_v31  ;;  %v937_v61 = vld [vmem:[#allocation2 + $0x48] sm:$0xff]  ;;  %v1735_v20 = vmax.f32 %v6428_v57, %v5791_v26  ;;  %v6449_v53 = vmax.f32 %v6416_v42, %v8386_v48  ;;  %v6454_v31 = vld [vmem:[#allocation2 + $0x38] sm:$0xff] }
 0x244   : > { %v6438_v37 = vmax.f32 %v2738_v23, %v2801_v40  ;;  %v1477_v3 = vmax.f32 %v6392_v41, %v1349_v33  ;;  %v1749_v40 = vmax.f32 %v6400_v39, %v6099_v18  ;;  %v2657_v26 = vrot.slane %v6431_v45, 2  ;;  %v8662_v23 = vld [vmem:[#allocation44_spill] sm:$0xff]  ;;  %v8663_v18 = vld [vmem:[#allocation39_spill] sm:$0xff] }
 0x245   : > { %v6440_v25 = vmax.f32 %v2739_v16, %v2803_v14  ;;  %v6456_v14 = vld [vmem:[#allocation2 + $0x40] sm:$0xf]  ;;  %v1767_v16 = vmax.f32 %v1735_v20, %v8662_v23  ;;  %v1064_v7 = vrot.slane %v937_v61, 1  ;;  %v1526_v27 = vrot.slane %v937_v61, 4 }
 0x246   : > { %8660 = vst [vmem:[#allocation47_spill] sm:$0xff] %v6438_v37  ;;  %v1781_v33 = vmax.f32 %v1749_v40, %v5913_v49  ;;  %v1712_v0 = vmax.f32 %v8663_v18, %v8646_v62  ;;  %v6470_v45 = vmax.f32 %v1477_v3, %v1530_v43  ;;  %v8664_v20 = vrot.slane %v6325_v59, 1  ;;  %v8667_v18 = vld [vmem:[#allocation46_spill] sm:$0xff] }
 0x247   : > { %8661 = vst [vmem:[#allocation21_spill] sm:$0xff] %v6440_v25  ;;  %v6462_v55 = vmax.f32 %v6440_v25, %v6083_v50  ;;  %v2226_v51 = vld [vmem:[#allocation2 + $0x150] sm:$0xff]  ;;  %v2227_v58 = vld [vmem:[#allocation2 + $0x158] sm:$0xff]  ;;  %1799 = vst.msk [vmem:[#allocation2 + $0x92] sm:$0xff] %vm845_vm1, %v1767_v16  ;;  %4683 = vmatpush3.xpose.msk.msra.mxu1 %vm845_vm1, %v1767_v16  ;;  %v1062_v48 = vrot.slane %v6456_v14, 1 }
 0x248   : > { %v1066_v23 = vsel %vm1048_vm4, %v1064_v7, %v8664_v20  ;;  %v2374_v49 = vrot.slane %v2226_v51, 1  ;;  %v2375_v40 = vrot.slane %v2227_v58, 1  ;;  %v2834_v22 = vrot.slane %v2226_v51, 4  ;;  %4684 = vmatprep.subr.msk.mxu1 %vm845_vm1, %v6343_v10  ;;  %1813 = vst.msk [vmem:[#allocation2 + $0x13a] sm:$0xff] %vm845_vm1, %v1781_v33 }
 0x249   : > { %v2835_v62 = vrot.slane %v2227_v58, 4  ;;  %v6482_v3 = vmax.f32 %v6470_v45, %v6278_v36  ;;  %v6484_v43 = vmax.f32 %v937_v61, %v1066_v23  ;;  %v8666_v7 = vrot.slane %v6325_v59, 4  ;;  %v8669_v23 = vld [vmem:[#allocation58_spill] sm:$0xff] }
 0x24a   : > { %v1744_v20 = vmax.f32 %v8667_v18, %v1712_v0  ;;  %v2376_v44 = vsel %vm1048_vm4, %v2374_v49, %v2375_v40  ;;  %v2378_v63 = vsel %vm1048_vm4, %v2375_v40, %v2377_v52  ;;  %v1748_v38 = vmax.f32 %v1712_v0, %v6300_v19 }
 0x24b   : > { %8665 = vst [vmem:[#allocation7_spill] sm:$0xff] %v6482_v3  ;;  %v6489_v16 = vsel %vm1510_vm6, %v1526_v27, %v8666_v7  ;;  %v2836_v10 = vsel %vm1510_vm6, %v2834_v22, %v2835_v62  ;;  %v2506_v46 = vmax.f32 %v2226_v51, %v2376_v44  ;;  %v2507_v36 = vmax.f32 %v2227_v58, %v2378_v63  ;;  %v8671_v58 = vld [vmem:[#allocation29_spill] sm:$0xff] }
 0x24c   : > { %v1734_v61 = vmax.f32 %v6482_v3, %v5873_v4  ;;  %v1345_v59 = vrot.slane %v6484_v43, 2  ;;  %v6500_v27 = vmax.f32 %v1744_v20, %v6283_v54  ;;  %v6503_v7 = vmax.f32 %v1748_v38, %v8669_v23 }
 0x24d   : > { %v8670_v49 = vrot.slane %v6454_v31, 1  ;;  %v6509_v22 = vmax.f32 %v6456_v14, %v1062_v48  ;;  %v2654_v19 = vrot.slane %v2506_v46, 2  ;;  %v2655_v63 = vrot.slane %v2507_v36, 2 }
 0x24e   : > { %8668 = vst [vmem:[#allocation16_spill] sm:$0xff] %v6500_v27  ;;  %v1766_v44 = vmax.f32 %v1734_v61, %v8671_v58  ;;  %v8672_v4 = vrot.slane %v6392_v41, 2  ;;  %v2838_v54 = vsel %vm1510_vm6, %v2835_v62, %v2837_v24  ;;  %v2202_v38 = vld [vmem:[#allocation2 + $0x90] sm:$0xff]  ;;  %v2203_v0 = vld [vmem:[#allocation2 + $0x98] sm:$0xff]  ;;  %1808 = vst.msk [vmem:[#allocation2 + $0xfa] sm:$0xff] %vm845_vm1, %v6500_v27 }
 0x24f   : > { %v1063_v52 = vsel %vm1048_vm4, %v8670_v49, %v1062_v48  ;;  %1812 = vst.msk [vmem:[#allocation2 + $0x12a] sm:$0xff] %vm845_vm1, %v6503_v7  ;;  %v2656_v18 = vsel %vm1329_vm5, %v2654_v19, %v2655_v63  ;;  %v2658_v24 = vsel %vm1329_vm5, %v2655_v63, %v2657_v26  ;;  %v2334_v62 = vrot.slane %v2202_v38, 1  ;;  %v2223_v61 = vld [vmem:[#allocation2 + $0x138] sm:$0xff] }
 0x250   : > { %v6515_v51 = vsel %vm1329_vm5, %v1345_v59, %v8672_v4  ;;  %v6525_v48 = vmax.f32 %v6454_v31, %v1063_v52  ;;  %v2335_v20 = vrot.slane %v2203_v0, 1  ;;  %1798 = vst.msk [vmem:[#allocation2 + $0x82] sm:$0xff] %vm845_vm1, %v1766_v44  ;;  %4685 = vmatpush3.xpose.msk.msra.mxu1 %vm845_vm1, %v1766_v44  ;;  %v2224_v59 = vld [vmem:[#allocation2 + $0x140] sm:$0xff]  ;;  %v2752_v23 = vmax.f32 %v2506_v46, %v2656_v18 }
 0x251   : > { %v2753_v49 = vmax.f32 %v2507_v36, %v2658_v24  ;;  %v2794_v58 = vrot.slane %v2202_v38, 4  ;;  %v2795_v4 = vrot.slane %v2203_v0, 4  ;;  %4686 = vmatprep.subr.msk.mxu1 %vm845_vm1, %v1781_v33  ;;  %v8673_v19 = vrot.slane %v6395_v15, 1 }
 0x252   : > { %v2336_v52 = vsel %vm1048_vm4, %v2334_v62, %v2335_v20  ;;  %v2369_v63 = vrot.slane %v2223_v61, 1  ;;  %v2370_v41 = vrot.slane %v2224_v59, 1  ;;  %v6537_v40 = vmax.f32 %v2752_v23, %v2836_v10 }
 0x253   : > { %v2338_v26 = vsel %vm1048_vm4, %v2335_v20, %v8673_v19  ;;  %v6539_v27 = vmax.f32 %v2753_v49, %v2838_v54  ;;  %v2482_v44 = vmax.f32 %v2202_v38, %v2336_v52  ;;  %v2796_v46 = vsel %vm1510_vm6, %v2794_v58, %v2795_v4 }
 0x254   : > { %v2483_v3 = vmax.f32 %v2203_v0, %v2338_v26  ;;  %v2371_v36 = vsel %vm1048_vm4, %v2369_v63, %v2370_v41  ;;  %v8674_v33 = vrot.slane %v6416_v42, 1  ;;  %v6549_v62 = vmax.f32 %v6537_v40, %v6294_v34 }
 0x255   : > { %v6553_v10 = vmax.f32 %v6539_v27, %v6296_v28  ;;  %v2614_v54 = vrot.slane %v2482_v44, 2  ;;  %v2503_v0 = vmax.f32 %v2223_v61, %v2371_v36  ;;  %v2829_v23 = vrot.slane %v2223_v61, 4 }
 0x256   : > { %v2373_v18 = vsel %vm1048_vm4, %v2370_v41, %v8674_v33  ;;  %v2615_v38 = vrot.slane %v2483_v3, 2  ;;  %v2830_v49 = vrot.slane %v2224_v59, 4  ;;  %v8675_v58 = vmax.f32 %v6240_v35, %v6223_v5 }
 0x257   : > { %v2504_v20 = vmax.f32 %v2224_v59, %v2373_v18  ;;  %v8676_v52 = vmax.f32 %v6242_v13, %v6225_v1  ;;  %v8677_v63 = vrot.slane %v6424_v30, 2  ;;  %v6567_v36 = vld [vmem:[#allocation2 + $0x88] sm:$0xf]  ;;  %v8678_v18 = vrot.slane %v6395_v15, 4 }
 0x258   : > { %v3008_v41 = vmax.f32 %v6549_v62, %v8675_v58  ;;  %v2616_v26 = vsel %vm1329_vm5, %v2614_v54, %v2615_v38  ;;  %v8401_v58 = vrot.slane %v6567_v36, 1  ;;  %v2649_v54 = vrot.slane %v2503_v0, 2 }
 0x259   : > { %v3009_v19 = vmax.f32 %v6553_v10, %v8676_v52  ;;  %v2618_v33 = vsel %vm1329_vm5, %v2615_v38, %v8677_v63  ;;  %v2736_v61 = vmax.f32 %v2482_v44, %v2616_v26  ;;  %v2798_v24 = vsel %vm1510_vm6, %v2795_v4, %v8678_v18  ;;  %v6589_v4 = vld [vmem:[#allocation2 + $0x100] sm:$0xf] }
 0x25a   : > { %v2737_v59 = vmax.f32 %v2483_v3, %v2618_v33  ;;  %v6574_v13 = vmax.f32 %v3008_v41, %v8626_v11  ;;  %v2650_v30 = vrot.slane %v2504_v20, 2  ;;  %v6586_v15 = vmax.f32 %v6567_v36, %v8401_v58  ;;  %v6591_v11 = vld [vmem:[#allocation2 + $0x130] sm:$0xf] }
 0x25b   : > { %v6577_v52 = vmax.f32 %v3009_v19, %v8633_v6  ;;  %v6579_v35 = vmax.f32 %v2736_v61, %v2796_v46  ;;  %v8683_v44 = vrot.slane %v6449_v53, 2  ;;  %v8684_v41 = vmax.f32 %v6484_v43, %v6515_v51 }
 0x25c   : > { %8679 = vst [vmem:[#allocation41_spill] sm:$0xff] %v6574_v13  ;;  %v6581_v38 = vmax.f32 %v2737_v59, %v2798_v24  ;;  %3072 = vst.msk [vmem:[#allocation2 + $0x182] sm:$0xff] %vm845_vm1, %v6574_v13  ;;  %v2651_v6 = vsel %vm1329_vm5, %v2649_v54, %v2650_v30  ;;  %v2831_v24 = vsel %vm1510_vm6, %v2829_v23, %v2830_v49  ;;  %v8687_v53 = vrot.slane %v6416_v42, 4 }
 0x25d   : > { %8680 = vst [vmem:[#allocation56_spill] sm:$0xff] %v6577_v52  ;;  %8681 = vst [vmem:[#allocation10_spill] sm:$0xff] %v6579_v35  ;;  %v2653_v46 = vsel %vm1329_vm5, %v2650_v30, %v8683_v44  ;;  %v6606_v19 = vmax.f32 %v8684_v41, %v6489_v16  ;;  %v6610_v26 = vmax.f32 %v6579_v35, %v6438_v37  ;;  %v8400_v43 = vrot.slane %v6589_v4, 1  ;;  %v8690_v41 = vld [vmem:[#allocation48_spill] sm:$0xff] }
 0x25e   : > { %8682 = vst [vmem:[#allocation22_spill] sm:$0xff] %v6581_v38  ;;  %3073 = vst.msk [vmem:[#allocation2 + $0x18a] sm:$0xff] %vm845_vm1, %v6577_v52  ;;  %v6614_v63 = vmax.f32 %v6581_v38, %v6440_v25  ;;  %v2750_v33 = vmax.f32 %v2503_v0, %v2651_v6  ;;  %v2833_v61 = vsel %vm1510_vm6, %v2830_v49, %v8687_v53  ;;  %v8399_v16 = vrot.slane %v6591_v11, 1  ;;  %v8693_v30 = vld [vmem:[#allocation52_spill] sm:$0xff] }
 0x25f   : > { %8685 = vst [vmem:[#allocation42_spill] sm:$0xff] %v6610_v26  ;;  %v2751_v23 = vmax.f32 %v2504_v20, %v2653_v46  ;;  %v6621_v59 = vmax.f32 %v6606_v19, %v6406_v12  ;;  %v1341_v0 = vrot.slane %v6525_v48, 2  ;;  %v6637_v49 = vmax.f32 %v6589_v4, %v8400_v43 }
 0x260   : > { %8686 = vst [vmem:[#allocation25_spill] sm:$0xff] %v6614_v63  ;;  %v6626_v18 = vmax.f32 %v2750_v33, %v2831_v24  ;;  %v8689_v44 = vrot.slane %v6509_v22, 2  ;;  %v1524_v24 = vrot.slane %v6456_v14, 4  ;;  %v934_v33 = vld [vmem:[#allocation2 + $0x30] sm:$0xff]  ;;  %v6658_v54 = vmax.f32 %v6591_v11, %v8399_v16 }
 0x261   : > { %8688 = vst [vmem:[#allocation13_spill] sm:$0xff] %v6621_v59  ;;  %v6630_v42 = vmax.f32 %v2751_v23, %v2833_v61  ;;  %v1733_v20 = vmax.f32 %v6621_v59, %v6251_v9  ;;  %v1711_v9 = vmax.f32 %v8690_v41, %v8657_v29  ;;  %v8691_v61 = vld [vmem:[#allocation31_spill] sm:$0xff]  ;;  %v8692_v29 = vrot.slane %v6454_v31, 4 }
 0x262   : > { %v6642_v6 = vmax.f32 %v6626_v18, %v6537_v40  ;;  %v1344_v46 = vsel %vm1329_vm5, %v1341_v0, %v8689_v44  ;;  %v1059_v22 = vrot.slane %v934_v33, 1  ;;  %v1521_v16 = vrot.slane %v934_v33, 4 }
 0x263   : > { %v6652_v53 = vmax.f32 %v6630_v42, %v6539_v27  ;;  %v1765_v23 = vmax.f32 %v1733_v20, %v8691_v61  ;;  %v1475_v44 = vmax.f32 %v6525_v48, %v1344_v46  ;;  %v1525_v41 = vsel %vm1510_vm6, %v8692_v29, %v1524_v24  ;;  %v8696_v46 = vld [vmem:[#allocation40_spill] sm:$0xff]  ;;  %v8698_v29 = vld [vmem:[#allocation61_spill] sm:$0xff] }
 0x264   : > { %v3006_v14 = vmax.f32 %v6642_v6, %v6317_v21  ;;  %v1743_v51 = vmax.f32 %v8693_v30, %v1711_v9  ;;  %v1747_v61 = vmax.f32 %v1711_v9, %v6371_v17  ;;  %v6673_v21 = vld [vmem:[#allocation2 + $0x20] sm:$0xff]  ;;  %v1746_v24 = vmax.f32 %v8696_v46, %v6311_v47 }
 0x265   : > { %v3007_v20 = vmax.f32 %v6652_v53, %v6321_v2  ;;  %1797 = vst.msk [vmem:[#allocation2 + $0x7a] sm:$0xff] %vm845_vm1, %v1765_v23  ;;  %4687 = vmatpush3.xpose.msk.msra.mxu1 %vm845_vm1, %v1765_v23  ;;  %v6680_v30 = vmax.f32 %v1475_v44, %v1525_v41  ;;  %v933_v23 = vld [vmem:[#allocation2 + $0x28] sm:$0xf]  ;;  %v8701_v41 = vld [vmem:[#allocation53_spill] sm:$0xff] }
 0x266   : > { %v6676_v48 = vmax.f32 %v3006_v14, %v6223_v5  ;;  %4688 = vmatprep.subr.msk.mxu1 %vm845_vm1, %v6503_v7  ;;  %v6683_v2 = vmax.f32 %v1743_v51, %v6355_v32  ;;  %v1779_v5 = vmax.f32 %v1747_v61, %v8698_v29  ;;  %v8699_v14 = vrot.slane %v6454_v31, 1 }
 0x267   : > { %v6688_v17 = vmax.f32 %v3007_v20, %v6225_v1  ;;  %v6699_v32 = vmax.f32 %v6680_v30, %v6470_v45  ;;  %v6706_v47 = vmax.f32 %v1746_v24, %v5835_v56  ;;  %v6709_v51 = vrot.slane %v6673_v21, 1  ;;  %v8703_v24 = vld [vmem:[#allocation20_spill] sm:$0xff] }
 0x268   : > { %8694 = vst [vmem:[#allocation54_spill] sm:$0xff] %v6676_v48  ;;  %8695 = vst [vmem:[#allocation11_spill] sm:$0xff] %v6683_v2  ;;  %v1061_v7 = vsel %vm1048_vm4, %v1059_v22, %v8699_v14  ;;  %v1057_v22 = vrot.slane %v933_v23, 1  ;;  %v8402_v45 = vrot.slane %v6673_v21, 4  ;;  %v1519_v44 = vrot.slane %v933_v23, 4 }
 0x269   : > { %8697 = vst [vmem:[#allocation37_spill] sm:$0xff] %v6688_v17  ;;  %3070 = vst.msk [vmem:[#allocation2 + $0x16a] sm:$0xff] %vm845_vm1, %v6676_v48  ;;  %v6703_v1 = vmax.f32 %v934_v33, %v1061_v7  ;;  %v1745_v20 = vmax.f32 %v8701_v41, %v6400_v39  ;;  %v1732_v33 = vmax.f32 %v6699_v32, %v6292_v8  ;;  %v8702_v61 = vrot.slane %v6454_v31, 4  ;;  %v8704_v7 = vld [vmem:[#allocation59_spill] sm:$0xff] }
 0x26a   : > { %8700 = vst [vmem:[#allocation8_spill] sm:$0xff] %v6699_v32  ;;  %1807 = vst.msk [vmem:[#allocation2 + $0xf2] sm:$0xff] %vm845_vm1, %v6683_v2  ;;  %v6729_v29 = vmax.f32 %v6438_v37, %v8703_v24  ;;  %v1058_v39 = vsel %vm1048_vm4, %v6709_v51, %v1057_v22  ;;  %v6733_v14 = vmax.f32 %v933_v23, %v1057_v22 }
 0x26b   : > { %3071 = vst.msk [vmem:[#allocation2 + $0x172] sm:$0xff] %vm845_vm1, %v6688_v17  ;;  %1811 = vst.msk [vmem:[#allocation2 + $0x122] sm:$0xff] %vm845_vm1, %v1779_v5  ;;  %v1340_v56 = vrot.slane %v6703_v1, 2  ;;  %v6723_v46 = vsel %vm1510_vm6, %v1521_v16, %v8702_v61  ;;  %v6736_v8 = vmax.f32 %v1745_v20, %v6072_v60  ;;  %v6740_v31 = vmax.f32 %v8703_v24, %v8704_v7  ;;  %v8705_v61 = vld [vmem:[#allocation28_spill] sm:$0xff] }
 0x26c   : > { %1810 = vst.msk [vmem:[#allocation2 + $0x112] sm:$0xff] %vm845_vm1, %v6706_v47  ;;  %v2199_v16 = vld [vmem:[#allocation2 + $0x78] sm:$0xff]  ;;  %v2200_v41 = vld [vmem:[#allocation2 + $0x80] sm:$0xff]  ;;  %v1764_v9 = vmax.f32 %v1732_v33, %v8705_v61  ;;  %v6745_v3 = vmax.f32 %v6673_v21, %v1058_v39  ;;  %v6750_v23 = vsel %vm1510_vm6, %v8402_v45, %v1519_v44  ;;  %v8706_v39 = vld [vmem:[#allocation60_spill] sm:$0xff]  ;;  %v8707_v45 = vrot.slane %v6567_v36, 1 }
 0x26d   : > { %v1342_v43 = vsel %vm1329_vm5, %v1340_v56, %v1341_v0  ;;  %v2329_v60 = vrot.slane %v2199_v16, 1  ;;  %v2330_v22 = vrot.slane %v2200_v41, 1  ;;  %v2789_v20 = vrot.slane %v2199_v16, 4  ;;  %1809 = vst.msk [vmem:[#allocation2 + $0x10a] sm:$0xff] %vm845_vm1, %v6736_v8 }
 0x26e   : > { %v2790_v58 = vrot.slane %v2200_v41, 4  ;;  %1796 = vst.msk [vmem:[#allocation2 + $0x6a] sm:$0xff] %vm845_vm1, %v1764_v9  ;;  %4689 = vmatpush3.xpose.msk.msra.mxu1 %vm845_vm1, %v1764_v9  ;;  %v1474_v0 = vmax.f32 %v6703_v1, %v1342_v43  ;;  %v6761_v44 = vmax.f32 %v6083_v50, %v8706_v39 }
 0x26f   : > { %v2331_v61 = vsel %vm1048_vm4, %v2329_v60, %v2330_v22  ;;  %v2333_v48 = vsel %vm1048_vm4, %v2330_v22, %v8707_v45  ;;  %4690 = vmatprep.subr.msk.mxu1 %vm845_vm1, %v1779_v5  ;;  %v8708_v45 = vrot.slane %v6567_v36, 4 }
 0x270   : > { %v2791_v17 = vsel %vm1510_vm6, %v2789_v20, %v2790_v58  ;;  %v2479_v33 = vmax.f32 %v2199_v16, %v2331_v61  ;;  %v2480_v56 = vmax.f32 %v2200_v41, %v2333_v48  ;;  %v8709_v48 = vrot.slane %v6589_v4, 1 }
 0x271   : > { %v6769_v9 = vld [vmem:[#allocation2 + $0xf0] sm:$0xff]  ;;  %v6771_v43 = vld [vmem:[#allocation2 + $0xf8] sm:$0xff]  ;;  %v2793_v22 = vsel %vm1510_vm6, %v2790_v58, %v8708_v45  ;;  %v8710_v61 = vrot.slane %v6591_v11, 1 }
 0x272   : > { %v2220_v13 = vld [vmem:[#allocation2 + $0x120] sm:$0xff]  ;;  %v2221_v52 = vld [vmem:[#allocation2 + $0x128] sm:$0xff]  ;;  %v2354_v60 = vrot.slane %v6769_v9, 1  ;;  %v2355_v25 = vrot.slane %v6771_v43, 1  ;;  %v2814_v37 = vrot.slane %v6769_v9, 4  ;;  %v2609_v50 = vrot.slane %v2479_v33, 2 }
 0x273   : > { %v2364_v5 = vrot.slane %v2220_v13, 1  ;;  %v2365_v20 = vrot.slane %v2221_v52, 1  ;;  %v2610_v24 = vrot.slane %v2480_v56, 2 }
 0x274   : > { %v2356_v1 = vsel %vm1048_vm4, %v2354_v60, %v2355_v25  ;;  %v2358_v16 = vsel %vm1048_vm4, %v2355_v25, %v8709_v48  ;;  %v8711_v60 = vrot.slane %v6586_v15, 2 }
 0x275   : > { %v2366_v41 = vsel %vm1048_vm4, %v2364_v5, %v2365_v20  ;;  %v2368_v36 = vsel %vm1048_vm4, %v2365_v20, %v8710_v61  ;;  %v6790_v58 = vmax.f32 %v6769_v9, %v2356_v1  ;;  %v6793_v45 = vmax.f32 %v6771_v43, %v2358_v16  ;;  %v6801_v59 = vld [vmem:[#allocation2 + $0x70] sm:$0xf] }
 0x276   : > { %v2611_v12 = vsel %vm1329_vm5, %v2609_v50, %v2610_v24  ;;  %v2613_v2 = vsel %vm1329_vm5, %v2610_v24, %v8711_v60  ;;  %v2500_v32 = vmax.f32 %v2220_v13, %v2366_v41  ;;  %v6799_v25 = vmax.f32 %v2221_v52, %v2368_v36 }
 0x277   : > { %v2734_v5 = vmax.f32 %v2479_v33, %v2611_v12  ;;  %v2735_v48 = vmax.f32 %v2480_v56, %v2613_v2  ;;  %v2634_v20 = vrot.slane %v6790_v58, 2  ;;  %v2815_v9 = vrot.slane %v6771_v43, 4 }
 0x278   : > { %v8415_v1 = vrot.slane %v6801_v59, 1  ;;  %v2635_v16 = vrot.slane %v6793_v45, 2  ;;  %v2644_v50 = vrot.slane %v2500_v32, 2  ;;  %v2645_v15 = vrot.slane %v6799_v25, 2 }
 0x279   : > { %v6808_v61 = vmax.f32 %v2734_v5, %v2791_v17  ;;  %v6810_v24 = vmax.f32 %v2735_v48, %v2793_v22  ;;  %v2824_v41 = vrot.slane %v2220_v13, 4  ;;  %v2825_v12 = vrot.slane %v2221_v52, 4  ;;  %v2219_v17 = vld [vmem:[#allocation2 + $0x118] sm:$0xf]  ;;  %v2217_v5 = vld [vmem:[#allocation2 + $0x108] sm:$0xff] }
 0x27a   : > { %v6815_v2 = vmax.f32 %v6801_v59, %v8415_v1  ;;  %v2646_v33 = vsel %vm1329_vm5, %v2644_v50, %v2645_v15  ;;  %v8712_v56 = vrot.slane %v6658_v54, 2  ;;  %v6822_v36 = vmax.f32 %v1474_v0, %v6723_v46  ;;  %v2218_v50 = vld [vmem:[#allocation2 + $0x110] sm:$0xff] }
 0x27b   : > { %v6826_v22 = vmax.f32 %v6808_v61, %v6579_v35  ;;  %v6830_v13 = vmax.f32 %v6810_v24, %v6581_v38  ;;  %v2748_v60 = vmax.f32 %v2500_v32, %v2646_v33  ;;  %v2826_v46 = vsel %vm1510_vm6, %v2824_v41, %v2825_v12 }
 0x27c   : > { %v2648_v43 = vsel %vm1329_vm5, %v2645_v15, %v8712_v56  ;;  %v6838_v0 = vmax.f32 %v6822_v36, %v6606_v19  ;;  %v8715_v56 = vrot.slane %v6591_v11, 4  ;;  %v2362_v33 = vrot.slane %v2219_v17, 1 }
 0x27d   : > { %8713 = vst [vmem:[#allocation38_spill] sm:$0xff] %v6826_v22  ;;  %8714 = vst [vmem:[#allocation9_spill] sm:$0xff] %v6830_v13  ;;  %v2749_v48 = vmax.f32 %v6799_v25, %v2648_v43  ;;  %v2991_v15 = vmax.f32 %v6830_v13, %v6462_v55  ;;  %v6845_v32 = vmax.f32 %v2748_v60, %v2826_v46  ;;  %v2822_v43 = vrot.slane %v2219_v17, 4  ;;  %v8719_v46 = vld [vmem:[#allocation55_spill] sm:$0xff] }
 0x27e   : > { %v2828_v52 = vsel %vm1510_vm6, %v2825_v12, %v8715_v56  ;;  %v1731_v25 = vmax.f32 %v6838_v0, %v6428_v57  ;;  %v8716_v41 = vrot.slane %v6733_v14, 2  ;;  %v8717_v19 = vrot.slane %v6745_v3, 2 }
 0x27f   : > { %v2359_v1 = vrot.slane %v2217_v5, 1  ;;  %v6855_v38 = vmax.f32 %v2991_v15, %v8706_v39  ;;  %v2499_v11 = vmax.f32 %v2219_v17, %v2362_v33  ;;  %v2360_v60 = vrot.slane %v2218_v50, 1 }
 0x280   : > { %v1339_v54 = vsel %vm1329_vm5, %v8717_v19, %v8716_v41  ;;  %v1763_v56 = vmax.f32 %v1731_v25, %v8719_v46  ;;  %v2636_v35 = vsel %vm1329_vm5, %v2634_v20, %v2635_v16  ;;  %v8720_v57 = vrot.slane %v6637_v49, 2 }
 0x281   : > { %8718 = vst [vmem:[#allocation35_spill] sm:$0xff] %v6855_v38  ;;  %v1473_v12 = vmax.f32 %v6745_v3, %v1339_v54  ;;  %v2816_v13 = vsel %vm1510_vm6, %v2814_v37, %v2815_v9  ;;  %3055 = vst.msk [vmem:[#allocation2 + $0xb2] sm:$0xff] %vm845_vm1, %v6855_v38  ;;  %v2642_v41 = vrot.slane %v2499_v11, 2  ;;  %v2361_v17 = vsel %vm1048_vm4, %v2359_v1, %v2360_v60 }
 0x282   : > { %v2638_v14 = vsel %vm1329_vm5, %v2635_v16, %v8720_v57  ;;  %v2363_v54 = vsel %vm1048_vm4, %v2360_v60, %v2362_v33  ;;  %1795 = vst.msk [vmem:[#allocation2 + $0x62] sm:$0xff] %vm845_vm1, %v1763_v56  ;;  %4691 = vmatpush3.xpose.msk.msra.mxu1 %vm845_vm1, %v1763_v56  ;;  %v2497_v49 = vmax.f32 %v2217_v5, %v2361_v17  ;;  %v8721_v1 = vrot.slane %v6589_v4, 4 }
 0x283   : > { %v6867_v15 = vmax.f32 %v1473_v12, %v6750_v23  ;;  %v2498_v20 = vmax.f32 %v2218_v50, %v2363_v54  ;;  %v2744_v16 = vmax.f32 %v6790_v58, %v2636_v35  ;;  %v2745_v37 = vmax.f32 %v6793_v45, %v2638_v14  ;;  %4692 = vmatprep.subr.msk.mxu1 %vm845_vm1, %v6706_v47  ;;  %v8722_v35 = vld [vmem:[#allocation7_spill] sm:$0xff] }
 0x284   : > { %v2818_v33 = vsel %vm1510_vm6, %v2815_v9, %v8721_v1  ;;  %v2819_v25 = vrot.slane %v2217_v5, 4  ;;  %v2820_v19 = vrot.slane %v2218_v50, 4  ;;  %v2639_v11 = vrot.slane %v2497_v49, 2 }
 0x285   : > { %v1694_v23 = vmax.f32 %v6867_v15, %v6680_v30  ;;  %v2640_v12 = vrot.slane %v2498_v20, 2  ;;  %v2924_v60 = vmax.f32 %v2744_v16, %v2816_v13  ;;  %v2925_v46 = vmax.f32 %v2745_v37, %v2818_v33  ;;  %v8723_v13 = vld [vmem:[#allocation57_spill] sm:$0xff] }
 0x286   : > { %v6882_v56 = vmax.f32 %v2749_v48, %v2828_v52  ;;  %v2821_v45 = vsel %vm1510_vm6, %v2819_v25, %v2820_v19  ;;  %v2823_v47 = vsel %vm1510_vm6, %v2820_v19, %v2822_v43  ;;  %v6898_v57 = vmax.f32 %v6845_v32, %v6626_v18 }
 0x287   : > { %v1730_v58 = vmax.f32 %v1694_v23, %v8722_v35  ;;  %v2641_v30 = vsel %vm1329_vm5, %v2639_v11, %v2640_v12  ;;  %v2643_v4 = vsel %vm1329_vm5, %v2640_v12, %v2642_v41  ;;  %v6890_v9 = vmax.f32 %v8704_v7, %v2924_v60 }
 0x288   : > { %v6893_v5 = vmax.f32 %v8706_v39, %v2925_v46  ;;  %v2746_v52 = vmax.f32 %v2497_v49, %v2641_v30  ;;  %v2747_v48 = vmax.f32 %v2498_v20, %v2643_v4  ;;  %v6902_v43 = vmax.f32 %v6882_v56, %v6630_v42 }
 0x289   : > { %v1762_v50 = vmax.f32 %v1730_v58, %v8723_v13  ;;  %v2990_v14 = vmax.f32 %v6826_v22, %v6729_v29  ;;  %v2993_v41 = vmax.f32 %v6614_v63, %v6761_v44  ;;  %v2994_v39 = vmax.f32 %v6729_v29, %v6890_v9  ;;  %v2196_v17 = vld [vmem:[#allocation2 + $0x60] sm:$0xff]  ;;  %v2197_v54 = vld [vmem:[#allocation2 + $0x68] sm:$0xff] }
 0x28a   : > { %v2926_v49 = vmax.f32 %v2746_v52, %v2821_v45  ;;  %v2927_v20 = vmax.f32 %v2747_v48, %v2823_v47  ;;  %v2995_v16 = vmax.f32 %v6462_v55, %v6893_v5  ;;  %v3004_v37 = vmax.f32 %v6898_v57, %v6549_v62  ;;  %v6934_v52 = vld [vmem:[%s8304_s3 + $0x10] sm:$0xff] }
 0x28b   : > { %1794 = vst.msk [vmem:[#allocation2 + $0x52] sm:$0xff] %vm845_vm1, %v1762_v50  ;;  %4693 = vmatpush3.xpose.msk.msra.mxu1 %vm845_vm1, %v1762_v50  ;;  %v2324_v23 = vrot.slane %v2196_v17, 1  ;;  %v2325_v1 = vrot.slane %v2197_v54, 1  ;;  %v2784_v33 = vrot.slane %v2196_v17, 4  ;;  %v2785_v25 = vrot.slane %v2197_v54, 4  ;;  %8726 = vst [vmem:[#allocation26_spill] sm:$0xff] %v6934_v52  ;;  %4700 = vmatprep.mubr.msk.f32.mxu1 %vm845_vm1, %v6934_v52 }
 0x28c   : > { %4694 = vmatprep.subr.msk.mxu1 %vm845_vm1, %v6736_v8  ;;  %v2964_v29 = vmax.f32 %v2924_v60, %v2926_v49  ;;  %v2965_v19 = vmax.f32 %v2925_v46, %v2927_v20  ;;  %v2966_v11 = vmax.f32 %v2926_v49, %v6845_v32  ;;  %v2967_v12 = vmax.f32 %v2927_v20, %v6882_v56 }
 0x28d   : > { %v2326_v35 = vsel %vm1048_vm4, %v2324_v23, %v2325_v1  ;;  %v8724_v55 = vrot.slane %v6801_v59, 1  ;;  %v2786_v45 = vsel %vm1510_vm6, %v2784_v33, %v2785_v25  ;;  %v3005_v47 = vmax.f32 %v6902_v43, %v6553_v10 }
 0x28e   : > { %v2476_v30 = vmax.f32 %v2196_v17, %v2326_v35  ;;  %v8725_v8 = vrot.slane %v6801_v59, 4  ;;  %v2996_v50 = vmax.f32 %v6740_v31, %v2964_v29  ;;  %v2997_v48 = vmax.f32 %v6761_v44, %v2965_v19 }
 0x28f   : > { %v2328_v58 = vsel %vm1048_vm4, %v2325_v1, %v8724_v55  ;;  %v2998_v23 = vmax.f32 %v6890_v9, %v2966_v11  ;;  %v2999_v1 = vmax.f32 %v6893_v5, %v2967_v12  ;;  %v3000_v10 = vmax.f32 %v2964_v29, %v6898_v57 }
 0x290   : > { %v2477_v4 = vmax.f32 %v2197_v54, %v2328_v58  ;;  %v2788_v13 = vsel %vm1510_vm6, %v2785_v25, %v8725_v8  ;;  %v2604_v59 = vrot.slane %v2476_v30, 2  ;;  %v3001_v54 = vmax.f32 %v2965_v19, %v6902_v43 }
 0x291   : > { %v3002_v33 = vmax.f32 %v2966_v11, %v6642_v6  ;;  %v6947_v35 = vmax.f32 %v2990_v14, %v8704_v7  ;;  %v8728_v44 = vmax.f32 %v6610_v26, %v6740_v31  ;;  %v6954_v5 = vmax.f32 %v2993_v41, %v2925_v46  ;;  %v6989_v41 = vld [vmem:[#allocation2 + $0x170] sm:$0xff] }
 0x292   : > { %v2605_v17 = vrot.slane %v2477_v4, 2  ;;  %v6944_v25 = vld [vmem:[#allocation2 + $0x58] sm:$0xf]  ;;  %v6956_v29 = vmax.f32 %v2994_v39, %v2926_v49  ;;  %v8732_v43 = vrot.slane %v6815_v2, 2  ;;  %v3003_v7 = vmax.f32 %v2967_v12, %v6652_v53  ;;  %v6993_v49 = vld [vmem:[#allocation2 + $0x188] sm:$0xff]  ;;  %v7014_v12 = vld [vmem:[#allocation2 + $0x1a0] sm:$0xff] }
 0x293   : > { %8727 = vst [vmem:[#allocation5_spill] sm:$0xff] %v6947_v35  ;;  %v6952_v9 = vmax.f32 %v8728_v44, %v2924_v60  ;;  %8730 = vst [vmem:[#allocation27_spill] sm:$0xff] %v6954_v5  ;;  %v8419_v19 = vrot.slane %v6944_v25, 1  ;;  %v6964_v58 = vmax.f32 %v2995_v16, %v2927_v20  ;;  %v6967_v31 = vmax.f32 %v2996_v50, %v6845_v32  ;;  %v6977_v53 = vld [vmem:[#allocation2 + $0x1b8] sm:$0xff]  ;;  %v8745_v50 = vld [vmem:[#allocation17_spill] sm:$0xff] }
 0x294   : > { %8731 = vst [vmem:[#allocation51_spill] sm:$0xff] %v6956_v29  ;;  %v2606_v55 = vsel %vm1329_vm5, %v2604_v59, %v2605_v17  ;;  %v2608_v6 = vsel %vm1329_vm5, %v2605_v17, %v8732_v43  ;;  %3054 = vst.msk [vmem:[#allocation2 + $0xaa] sm:$0xff] %vm845_vm1, %v6947_v35  ;;  %v6981_v60 = vmax.f32 %v2997_v48, %v6882_v56  ;;  %v6991_v39 = vld [vmem:[#allocation2 + $0x178] sm:$0xf]  ;;  %v8425_v62 = vrot.slane %v6989_v41, 1 }
 0x295   : > { %8729 = vst [vmem:[#allocation36_spill] sm:$0xff] %v6952_v9  ;;  %v2732_v14 = vmax.f32 %v2476_v30, %v2606_v55  ;;  %v2733_v11 = vmax.f32 %v2477_v4, %v2608_v6  ;;  %8733 = vst [vmem:[#allocation6_spill] sm:$0xff] %v6964_v58  ;;  %v6984_v32 = vmax.f32 %v2998_v23, %v6626_v18  ;;  %v8743_v4 = vld [vmem:[#allocation14_spill] sm:$0xff]  ;;  %v3460_v57 = vrot.slane %v6991_v39, 1 }
 0x296   : > { %8734 = vst [vmem:[#allocation45_spill] sm:$0xff] %v6967_v31  ;;  %3056 = vst.msk [vmem:[#allocation2 + $0xc2] sm:$0xff] %vm845_vm1, %v6952_v9  ;;  %v6987_v46 = vmax.f32 %v2999_v1, %v6630_v42  ;;  %v7000_v16 = vmax.f32 %v6944_v25, %v8419_v19  ;;  %v7003_v56 = vmax.f32 %v3000_v10, %v6537_v40  ;;  %v7012_v42 = vld [vmem:[#allocation2 + $0x190] sm:$0xf]  ;;  %v8422_v23 = vrot.slane %v7014_v12, 1 }
 0x297   : > { %3057 = vst.msk [vmem:[#allocation2 + $0xca] sm:$0xff] %vm845_vm1, %v6954_v5  ;;  %3058 = vst.msk [vmem:[#allocation2 + $0xda] sm:$0xff] %vm845_vm1, %v6956_v29  ;;  %v6995_v20 = vmax.f32 %v2732_v14, %v2786_v45  ;;  %v7006_v18 = vmax.f32 %v3001_v54, %v6539_v27  ;;  %v7016_v45 = vld [vmem:[#allocation2 + $0x1a8] sm:$0xf]  ;;  %v7018_v30 = vmax.f32 %v2733_v11, %v2788_v13  ;;  %v7040_v13 = vld [vmem:[#allocation2 + $0x1d0] sm:$0xff]  ;;  %v8421_v10 = vrot.slane %v6977_v53, 1 }
 0x298   : > { %8735 = vst [vmem:[#allocation30_spill] sm:$0xff] %v6981_v60  ;;  %8736 = vst [vmem:[#allocation3_spill] sm:$0xff] %v6984_v32  ;;  %v7021_v40 = vmax.f32 %v3002_v33, %v6294_v34  ;;  %v7024_v27 = vmax.f32 %v3003_v7, %v6296_v28  ;;  %v7030_v8 = vmax.f32 %v3004_v37, %v8743_v4  ;;  %v7038_v34 = vld [vmem:[#allocation2 + $0x1c0] sm:$0xf]  ;;  %v7042_v28 = vld [vmem:[#allocation2 + $0x1d8] sm:$0xf] }
 0x299   : > { %8737 = vst [vmem:[#allocation33_spill] sm:$0xff] %v6987_v46  ;;  %8738 = vst [vmem:[#allocation12_spill] sm:$0xff] %v7003_v56  ;;  %v7045_v48 = vmax.f32 %v3005_v47, %v8745_v50  ;;  %v8423_v37 = vrot.slane %v6993_v49, 1  ;;  %v3465_v47 = vrot.slane %v7012_v42, 1  ;;  %v3470_v1 = vrot.slane %v7016_v45, 1 }
 0x29a   : > { %8739 = vst [vmem:[#allocation43_spill] sm:$0xff] %v7006_v18  ;;  %3059 = vst.msk [vmem:[#allocation2 + $0xe2] sm:$0xff] %vm845_vm1, %v6964_v58  ;;  %v3461_v59 = vsel %vm1048_vm4, %v8425_v62, %v3460_v57  ;;  %v3475_v17 = vrot.slane %v7038_v34, 1  ;;  %v8420_v54 = vrot.slane %v7040_v13, 1  ;;  %v3480_v33 = vrot.slane %v7042_v28, 1 }
 0x29b   : > { %3060 = vst.msk [vmem:[#allocation2 + $0xf2] sm:$0xff] %vm845_vm1, %v6967_v31  ;;  %8740 = vst [vmem:[#allocation32_spill] sm:$0xff] %v7018_v30  ;;  %v3466_v44 = vsel %vm1048_vm4, %v8423_v37, %v3465_v47  ;;  %v3471_v55 = vsel %vm1048_vm4, %v8422_v23, %v3470_v1  ;;  %v7079_v43 = vmax.f32 %v6989_v41, %v3461_v59  ;;  %v8431_v62 = vrot.slane %v6989_v41, 4 }
 0x29c   : > { %8741 = vst [vmem:[#allocation34_spill] sm:$0xff] %v7021_v40  ;;  %8742 = vst [vmem:[#allocation4_spill] sm:$0xff] %v7024_v27  ;;  %v3589_v6 = vmax.f32 %v6991_v39, %v3460_v57  ;;  %v3476_v7 = vsel %vm1048_vm4, %v8421_v10, %v3475_v17  ;;  %v3481_v14 = vsel %vm1048_vm4, %v8420_v54, %v3480_v33 }
 0x29d   : > { %8744 = vst [vmem:[#allocation49_spill] sm:$0xff] %v7030_v8  ;;  %3062 = vst.msk [vmem:[#allocation2 + $0x10a] sm:$0xff] %vm845_vm1, %v6984_v32  ;;  %v7089_v11 = vmax.f32 %v6993_v49, %v3466_v44  ;;  %v3592_v4 = vmax.f32 %v7012_v42, %v3465_v47  ;;  %v7093_v50 = vmax.f32 %v7014_v12, %v3471_v55  ;;  %v8424_v44 = vrot.slane %v7079_v43, 2 }
 0x29e   : > { %3061 = vst.msk [vmem:[#allocation2 + $0xfa] sm:$0xff] %vm845_vm1, %v6981_v60  ;;  %3063 = vst.msk [vmem:[#allocation2 + $0x112] sm:$0xff] %vm845_vm1, %v6987_v46  ;;  %v3595_v59 = vmax.f32 %v7016_v45, %v3470_v1  ;;  %v7097_v57 = vmax.f32 %v6977_v53, %v3476_v7  ;;  %v3598_v2 = vmax.f32 %v7038_v34, %v3475_v17  ;;  %v3740_v10 = vrot.slane %v3589_v6, 2  ;;  %v7166_v60 = vld [vmem:[#allocation2 + $0xd0] sm:$0xf] }
 0x29f   : > { %8746 = vst [vmem:[#allocation44_spill] sm:$0xff] %v7045_v48  ;;  %3064 = vst.msk [vmem:[#allocation2 + $0x122] sm:$0xff] %vm845_vm1, %v7003_v56  ;;  %v7101_v19 = vmax.f32 %v7040_v13, %v3481_v14  ;;  %v3601_v54 = vmax.f32 %v7042_v28, %v3480_v33  ;;  %v8426_v47 = vrot.slane %v7089_v11, 2  ;;  %v3745_v23 = vrot.slane %v3592_v4, 2 }
 0x2a0   : > { %3065 = vst.msk [vmem:[#allocation2 + $0x12a] sm:$0xff] %vm845_vm1, %v7006_v18  ;;  %3066 = vst.msk [vmem:[#allocation2 + $0x13a] sm:$0xff] %vm845_vm1, %v7021_v40  ;;  %v8429_v55 = vrot.slane %v7093_v50, 2  ;;  %v3750_v37 = vrot.slane %v3595_v59, 2  ;;  %v3741_v1 = vsel %vm1329_vm5, %v8424_v44, %v3740_v10  ;;  %v8427_v17 = vrot.slane %v7097_v57, 2 }
 0x2a1   : > { %3067 = vst.msk [vmem:[#allocation2 + $0x142] sm:$0xff] %vm845_vm1, %v7024_v27  ;;  %3068 = vst.msk [vmem:[#allocation2 + $0x152] sm:$0xff] %vm845_vm1, %v7030_v8  ;;  %v3755_v7 = vrot.slane %v3598_v2, 2  ;;  %v8428_v14 = vrot.slane %v7101_v19, 2  ;;  %v3746_v33 = vsel %vm1329_vm5, %v8426_v47, %v3745_v23  ;;  %v3760_v4 = vrot.slane %v3601_v54, 2 }
 0x2a2   : > { %3069 = vst.msk [vmem:[#allocation2 + $0x15a] sm:$0xff] %vm845_vm1, %v7045_v48  ;;  %v3751_v6 = vsel %vm1329_vm5, %v8429_v55, %v3750_v37  ;;  %v3833_v59 = vmax.f32 %v7079_v43, %v3741_v1  ;;  %v3835_v44 = vmax.f32 %v7089_v11, %v3746_v33  ;;  %v3920_v37 = vrot.slane %v6991_v39, 4  ;;  %v7143_v55 = vld [vmem:[#allocation2 + $0xb0] sm:$0xff] }
 0x2a3   : > { %v3756_v10 = vsel %vm1329_vm5, %v8427_v17, %v3755_v7  ;;  %v3837_v2 = vmax.f32 %v7093_v50, %v3751_v6  ;;  %v3761_v23 = vsel %vm1329_vm5, %v8428_v14, %v3760_v4  ;;  %v8432_v54 = vrot.slane %v6993_v49, 4  ;;  %v7135_v17 = vld [vmem:[#allocation2 + $0x18] sm:$0xff] }
 0x2a4   : > { %v3839_v47 = vmax.f32 %v7097_v57, %v3756_v10  ;;  %v3841_v1 = vmax.f32 %v7101_v19, %v3761_v23  ;;  %v3925_v7 = vrot.slane %v7012_v42, 4  ;;  %v8434_v33 = vrot.slane %v7014_v12, 4 }
 0x2a5   : > { %v3930_v6 = vrot.slane %v7016_v45, 4  ;;  %v3921_v4 = vsel %vm1510_vm6, %v8431_v62, %v3920_v37  ;;  %v8435_v10 = vrot.slane %v6977_v53, 4  ;;  %v3935_v39 = vrot.slane %v7038_v34, 4  ;;  %v7154_v37 = vld [vmem:[#allocation2 + $0xb8] sm:$0xf] }
 0x2a6   : > { %v3926_v42 = vsel %vm1510_vm6, %v8432_v54, %v3925_v7  ;;  %v3940_v23 = vrot.slane %v7042_v28, 4  ;;  %v7152_v31 = vmax.f32 %v3833_v59, %v3921_v4  ;;  %v1054_v7 = vrot.slane %v7135_v17, 1  ;;  %v7164_v54 = vld [vmem:[#allocation2 + $0xc8] sm:$0xff] }
 0x2a7   : > { %v3931_v45 = vsel %vm1510_vm6, %v8434_v33, %v3930_v6  ;;  %v3936_v34 = vsel %vm1510_vm6, %v8435_v10, %v3935_v39  ;;  %v7159_v62 = vmax.f32 %v3835_v44, %v3926_v42  ;;  %v8749_v28 = vrot.slane %v7040_v13, 4  ;;  %v7174_v33 = vld [vmem:[#allocation2 + $0xe0] sm:$0xff]  ;;  %v7176_v44 = vld [vmem:[#allocation2 + $0xe8] sm:$0xf]  ;;  %v7185_v10 = vld [vmem:[#allocation2 + $0xf8] sm:$0xff] }
 0x2a8   : > { %8747 = vst [vmem:[#allocation39_spill] sm:$0xff] %v7152_v31  ;;  %v7161_v14 = vmax.f32 %v3837_v2, %v3931_v45  ;;  %v7171_v6 = vmax.f32 %v3839_v47, %v3936_v34  ;;  %v8441_v4 = vrot.slane %v7135_v17, 4  ;;  %v1056_v45 = vsel %vm1048_vm4, %v1054_v7, %v6709_v51  ;;  %v7187_v47 = vld [vmem:[#allocation2 + $0x100] sm:$0xf]  ;;  %v7200_v2 = vld [vmem:[#allocation2 + $0x110] sm:$0xff] }
 0x2a9   : > { %8748 = vst [vmem:[#allocation46_spill] sm:$0xff] %v7159_v62  ;;  %v3941_v59 = vsel %vm1510_vm6, %v8749_v28, %v3940_v23  ;;  %v7181_v42 = vmax.f32 %v7152_v31, %v7159_v62  ;;  %v3420_v23 = vrot.slane %v7154_v37, 1  ;;  %v7193_v28 = vmax.f32 %v7135_v17, %v1056_v45  ;;  %v7202_v7 = vld [vmem:[#allocation2 + $0x118] sm:$0xf] }
 0x2aa   : > { %v4021_v39 = vmax.f32 %v3841_v1, %v3941_v59  ;;  %v4057_v34 = vmax.f32 %v7161_v14, %v7171_v6  ;;  %v8751_v1 = vrot.slane %v6673_v21, 4  ;;  %v8449_v32 = vrot.slane %v7164_v54, 1 }
 0x2ab   : > { %8750 = vst [vmem:[#allocation58_spill] sm:$0xff] %v7181_v42  ;;  %v8752_v46 = vrot.slane %v7143_v55, 1  ;;  %v3425_v18 = vrot.slane %v7166_v60, 1  ;;  %v8450_v45 = vrot.slane %v7174_v33, 1  ;;  %v3430_v21 = vrot.slane %v7176_v44, 1 }
 0x2ac   : > { %v1518_v59 = vsel %vm1510_vm6, %v8441_v4, %v8751_v1  ;;  %v4089_v40 = vmax.f32 %v7181_v42, %v4057_v34  ;;  %v8452_v1 = vrot.slane %v7193_v28, 2  ;;  %v3435_v27 = vrot.slane %v7187_v47, 1 }
 0x2ad   : > { %v3421_v56 = vsel %vm1048_vm4, %v8752_v46, %v3420_v23  ;;  %v3426_v8 = vsel %vm1048_vm4, %v8449_v32, %v3425_v18  ;;  %v3431_v46 = vsel %vm1048_vm4, %v8450_v45, %v3430_v21  ;;  %v8453_v48 = vrot.slane %v7200_v2, 1 }
 0x2ae   : > { %v3440_v35 = vrot.slane %v7202_v7, 1  ;;  %v4121_v38 = vmax.f32 %v4089_v40, %v4021_v39  ;;  %v8753_v34 = vrot.slane %v6745_v3, 2  ;;  %v8754_v42 = vrot.slane %v7185_v10, 1 }
 0x2af   : > { %v7232_v32 = vmax.f32 %v7143_v55, %v3421_v56  ;;  %v3565_v40 = vmax.f32 %v7154_v37, %v3420_v23  ;;  %v7240_v3 = vmax.f32 %v7164_v54, %v3426_v8  ;;  %v3568_v39 = vmax.f32 %v7166_v60, %v3425_v18 }
 0x2b0   : > { %v1337_v4 = vsel %vm1329_vm5, %v8452_v1, %v8753_v34  ;;  %v3436_v9 = vsel %vm1048_vm4, %v8754_v42, %v3435_v27  ;;  %v3441_v5 = vsel %vm1048_vm4, %v8453_v48, %v3440_v35  ;;  %4776 = vmatprep.subr.msk.mxu0 %vm845_vm1, %v4121_v38  ;;  %v7245_v42 = vmax.f32 %v7174_v33, %v3431_v46 }
 0x2b1   : > { %v1472_v45 = vmax.f32 %v7193_v28, %v1337_v4  ;;  %v3571_v56 = vmax.f32 %v7176_v44, %v3430_v21  ;;  %v7249_v4 = vmax.f32 %v7185_v10, %v3436_v9  ;;  %v3574_v1 = vmax.f32 %v7187_v47, %v3435_v27 }
 0x2b2   : > { %v7255_v23 = vmax.f32 %v7200_v2, %v3441_v5  ;;  %v3577_v8 = vmax.f32 %v7202_v7, %v3440_v35  ;;  %v8456_v38 = vrot.slane %v7232_v32, 2  ;;  %v3700_v18 = vrot.slane %v3565_v40, 2 }
 0x2b3   : > { %v7251_v34 = vmax.f32 %v1472_v45, %v1518_v59  ;;  %v8457_v46 = vrot.slane %v7240_v3, 2  ;;  %v3705_v48 = vrot.slane %v3568_v39, 2  ;;  %v8458_v9 = vrot.slane %v7245_v42, 2  ;;  %v8755_v39 = vld [vmem:[#allocation13_spill] sm:$0xff] }
 0x2b4   : > { %v3710_v59 = vrot.slane %v3571_v56, 2  ;;  %v3701_v5 = vsel %vm1329_vm5, %v8456_v38, %v3700_v18  ;;  %v3715_v27 = vrot.slane %v3574_v1, 2  ;;  %v3720_v56 = vrot.slane %v3577_v8, 2 }
 0x2b5   : > { %v1693_v21 = vmax.f32 %v7251_v34, %v6822_v36  ;;  %v3706_v35 = vsel %vm1329_vm5, %v8457_v46, %v3705_v48  ;;  %v3817_v45 = vmax.f32 %v7232_v32, %v3701_v5  ;;  %v8756_v58 = vrot.slane %v7249_v4, 2  ;;  %v8757_v46 = vld [vmem:[#allocation24_spill] sm:$0xff] }
 0x2b6   : > { %v3711_v36 = vsel %vm1329_vm5, %v8458_v9, %v3710_v59  ;;  %v3819_v38 = vmax.f32 %v7240_v3, %v3706_v35  ;;  %v8460_v1 = vrot.slane %v7143_v55, 4  ;;  %v3880_v59 = vrot.slane %v7154_v37, 4  ;;  %v8760_v9 = vld [vmem:[#allocation16_spill] sm:$0xff] }
 0x2b7   : > { %v1729_v29 = vmax.f32 %v1693_v21, %v8755_v39  ;;  %v3716_v18 = vsel %vm1329_vm5, %v8756_v58, %v3715_v27  ;;  %v3821_v48 = vmax.f32 %v7245_v42, %v3711_v36  ;;  %v8758_v21 = vrot.slane %v7255_v23, 2  ;;  %v7292_v36 = vld [vmem:[#allocation2 + $0x168] sm:$0xff] }
 0x2b8   : > { %v3823_v8 = vmax.f32 %v7249_v4, %v3716_v18  ;;  %v8459_v58 = vrot.slane %v7164_v54, 4  ;;  %v3885_v35 = vrot.slane %v7166_v60, 4  ;;  %v8461_v27 = vrot.slane %v7174_v33, 4  ;;  %v7302_v18 = vld [vmem:[#allocation2 + $0x180] sm:$0xff] }
 0x2b9   : > { %v1761_v40 = vmax.f32 %v1729_v29, %v8757_v46  ;;  %v3721_v39 = vsel %vm1329_vm5, %v8758_v21, %v3720_v56  ;;  %v3881_v29 = vsel %vm1510_vm6, %v8460_v1, %v3880_v59  ;;  %v3890_v37 = vrot.slane %v7176_v44, 4  ;;  %v7313_v44 = vld [vmem:[#allocation2 + $0x198] sm:$0xff] }
 0x2ba   : > { %v3825_v5 = vmax.f32 %v7255_v23, %v3721_v39  ;;  %v8462_v46 = vrot.slane %v7185_v10, 4  ;;  %v3895_v56 = vrot.slane %v7187_v47, 4  ;;  %v3886_v60 = vsel %vm1510_vm6, %v8459_v58, %v3885_v35  ;;  %v7323_v58 = vld [vmem:[#allocation2 + $0x1b0] sm:$0xff] }
 0x2bb   : > { %1793 = vst.msk [vmem:[#allocation2 + $0x4a] sm:$0xff] %vm845_vm1, %v1761_v40  ;;  %4695 = vmatpush3.xpose.msk.msra.mxu1 %vm845_vm1, %v1761_v40  ;;  %v8463_v21 = vrot.slane %v7200_v2, 4  ;;  %v3900_v40 = vrot.slane %v7202_v7, 4  ;;  %v7309_v39 = vmax.f32 %v3817_v45, %v3881_v29  ;;  %v3891_v47 = vsel %vm1510_vm6, %v8461_v27, %v3890_v37  ;;  %v7325_v7 = vld [vmem:[#allocation2 + $0x1c8] sm:$0xff] }
 0x2bc   : > { %4696 = vmatprep.subr.msk.mxu1 %vm845_vm1, %v8760_v9  ;;  %v3896_v59 = vsel %vm1510_vm6, %v8462_v46, %v3895_v56  ;;  %v7321_v35 = vmax.f32 %v3819_v38, %v3886_v60  ;;  %v3457_v45 = vrot.slane %v7292_v36, 1  ;;  %v7331_v29 = vmax.f32 %v3821_v48, %v3891_v47 }
 0x2bd   : > { %8759 = vst [vmem:[#allocation29_spill] sm:$0xff] %v7309_v39  ;;  %v3901_v9 = vsel %vm1510_vm6, %v8463_v21, %v3900_v40  ;;  %v7333_v1 = vmax.f32 %v3823_v8, %v3896_v59  ;;  %v3462_v37 = vrot.slane %v7302_v18, 1  ;;  %v8766_v56 = vrot.slane %v6989_v41, 1 }
 0x2be   : > { %8761 = vst [vmem:[#allocation48_spill] sm:$0xff] %v7321_v35  ;;  %8762 = vst [vmem:[#allocation31_spill] sm:$0xff] %v7331_v29  ;;  %v7336_v27 = vmax.f32 %v3825_v5, %v3901_v9  ;;  %v7340_v38 = vmax.f32 %v7309_v39, %v7321_v35  ;;  %v3467_v46 = vrot.slane %v7313_v44, 1  ;;  %v8768_v8 = vrot.slane %v6993_v49, 1 }
 0x2bf   : > { %8763 = vst [vmem:[#allocation52_spill] sm:$0xff] %v7333_v1  ;;  %v3459_v60 = vsel %vm1048_vm4, %v3457_v45, %v8766_v56  ;;  %v7348_v48 = vmax.f32 %v7331_v29, %v7333_v1  ;;  %v3472_v5 = vrot.slane %v7323_v58, 1  ;;  %v3477_v47 = vrot.slane %v7325_v7, 1 }
 0x2c0   : > { %8764 = vst [vmem:[#allocation40_spill] sm:$0xff] %v7336_v27  ;;  %8765 = vst [vmem:[#allocation61_spill] sm:$0xff] %v7340_v38  ;;  %v3464_v40 = vsel %vm1048_vm4, %v3462_v37, %v8768_v8  ;;  %v2602_v59 = vrot.slane %v7000_v16, 2  ;;  %v8769_v9 = vrot.slane %v7014_v12, 1  ;;  %v3587_v56 = vmax.f32 %v7292_v36, %v3459_v60 }
 0x2c1   : > { %8767 = vst [vmem:[#allocation53_spill] sm:$0xff] %v7348_v48  ;;  %v3590_v21 = vmax.f32 %v7302_v18, %v3464_v40  ;;  %v4073_v37 = vmax.f32 %v7340_v38, %v7348_v48  ;;  %v8770_v8 = vrot.slane %v6977_v53, 1  ;;  %v8771_v16 = vrot.slane %v7040_v13, 1 }
 0x2c2   : > { %v3469_v45 = vsel %vm1048_vm4, %v3467_v46, %v8769_v9  ;;  %v7361_v1 = vld [vmem:[#allocation2 + $0x48] sm:$0xff]  ;;  %v7363_v39 = vld [vmem:[#allocation2 + $0x50] sm:$0xff]  ;;  %v3917_v63 = vrot.slane %v7292_v36, 4  ;;  %v8774_v9 = vrot.slane %v7089_v11, 2 }
 0x2c3   : > { %v3474_v52 = vsel %vm1048_vm4, %v3472_v5, %v8770_v8  ;;  %v3479_v22 = vsel %vm1048_vm4, %v3477_v47, %v8771_v16  ;;  %v3593_v46 = vmax.f32 %v7313_v44, %v3469_v45  ;;  %v2319_v60 = vrot.slane %v7361_v1, 1 }
 0x2c4   : > { %v2320_v40 = vrot.slane %v7363_v39, 1  ;;  %v4105_v48 = vmax.f32 %v4073_v37, %v7336_v27  ;;  %v3596_v38 = vmax.f32 %v7323_v58, %v3474_v52  ;;  %v3599_v5 = vmax.f32 %v7325_v7, %v3479_v22 }
 0x2c5   : > { %v3737_v8 = vrot.slane %v3587_v56, 2  ;;  %v8772_v47 = vrot.slane %v6944_v25, 1  ;;  %v3742_v16 = vrot.slane %v3590_v21, 2  ;;  %v3747_v35 = vrot.slane %v3593_v46, 2 }
 0x2c6   : > { %v2321_v26 = vsel %vm1048_vm4, %v2319_v60, %v2320_v40  ;;  %4777 = vmatpush3.xpose.msk.msra.mxu0 %vm845_vm1, %v4105_v48  ;;  %v8773_v52 = vrot.slane %v7079_v43, 2  ;;  %v3752_v37 = vrot.slane %v3596_v38, 2  ;;  %v3757_v27 = vrot.slane %v3599_v5, 2 }
 0x2c7   : > { %v2323_v45 = vsel %vm1048_vm4, %v2320_v40, %v8772_v47  ;;  %v7386_v29 = vmax.f32 %v7361_v1, %v2321_v26  ;;  %v3744_v40 = vsel %vm1329_vm5, %v3742_v16, %v8774_v9  ;;  %v8775_v47 = vrot.slane %v7093_v50, 2  ;;  %v7410_v50 = vld [vmem:[#allocation2 + $0x8] sm:$0xff] }
 0x2c8   : > { %v7389_v36 = vmax.f32 %v7363_v39, %v2323_v45  ;;  %v3739_v22 = vsel %vm1329_vm5, %v3737_v8, %v8773_v52  ;;  %v8776_v43 = vrot.slane %v7097_v57, 2  ;;  %v8777_v60 = vrot.slane %v7101_v19, 2  ;;  %v930_v19 = vld [vmem:[#allocation2 + $0x10] sm:$0xf] }
 0x2c9   : > { %v3749_v26 = vsel %vm1329_vm5, %v3747_v35, %v8775_v47  ;;  %v2599_v45 = vrot.slane %v7386_v29, 2  ;;  %v3832_v52 = vmax.f32 %v3587_v56, %v3739_v22  ;;  %v3834_v30 = vmax.f32 %v3590_v21, %v3744_v40 }
 0x2ca   : > { %v2600_v48 = vrot.slane %v7389_v36, 2  ;;  %v3754_v8 = vsel %vm1329_vm5, %v3752_v37, %v8776_v43  ;;  %v3759_v11 = vsel %vm1329_vm5, %v3757_v27, %v8777_v60  ;;  %v3836_v9 = vmax.f32 %v3593_v46, %v3749_v26  ;;  %v3283_v26 = vld [vmem:[#allocation2 + $0xa8] sm:$0xff] }
 0x2cb   : > { %v3838_v16 = vmax.f32 %v3596_v38, %v3754_v8  ;;  %v8778_v57 = vrot.slane %v6989_v41, 4  ;;  %v3922_v56 = vrot.slane %v7302_v18, 4  ;;  %v3840_v21 = vmax.f32 %v3599_v5, %v3759_v11  ;;  %v7453_v8 = vld [vmem:[#allocation2 + $0xc0] sm:$0xff] }
 0x2cc   : > { %v7413_v35 = vsel %vm1329_vm5, %v2599_v45, %v2600_v48  ;;  %v7416_v47 = vsel %vm1329_vm5, %v2600_v48, %v2602_v59  ;;  %v3927_v38 = vrot.slane %v7313_v44, 4  ;;  %v3932_v46 = vrot.slane %v7323_v58, 4 }
 0x2cd   : > { %v3919_v37 = vsel %vm1510_vm6, %v3917_v63, %v8778_v57  ;;  %v8779_v22 = vrot.slane %v6993_v49, 4  ;;  %v3937_v60 = vrot.slane %v7325_v7, 4  ;;  %v7433_v63 = vrot.slane %v7410_v50, 1 }
 0x2ce   : > { %v7430_v41 = vmax.f32 %v3832_v52, %v3919_v37  ;;  %v8781_v18 = vrot.slane %v7014_v12, 4  ;;  %v8782_v5 = vrot.slane %v6977_v53, 4  ;;  %v1052_v49 = vrot.slane %v930_v19, 1  ;;  %v7455_v53 = vld [vmem:[#allocation2 + $0xd8] sm:$0xff]  ;;  %v7457_v52 = vld [vmem:[#allocation2 + $0xf0] sm:$0xff] }
 0x2cf   : > { %v3924_v59 = vsel %vm1510_vm6, %v3922_v56, %v8779_v22  ;;  %v8784_v45 = vrot.slane %v7040_v13, 4  ;;  %v7451_v12 = vrot.slane %v7410_v50, 4  ;;  %v1514_v37 = vrot.slane %v930_v19, 4  ;;  %v7470_v56 = vld [vmem:[#allocation2 + $0x108] sm:$0xff] }
 0x2d0   : > { %8780 = vst [vmem:[#allocation59_spill] sm:$0xff] %v7430_v41  ;;  %v3929_v40 = vsel %vm1510_vm6, %v3927_v38, %v8781_v18  ;;  %v3934_v44 = vsel %vm1510_vm6, %v3932_v46, %v8782_v5  ;;  %v7441_v58 = vmax.f32 %v3834_v30, %v3924_v59  ;;  %v1053_v13 = vsel %vm1048_vm4, %v7433_v63, %v1052_v49 }
 0x2d1   : > { %v3939_v7 = vsel %vm1510_vm6, %v3937_v60, %v8784_v45  ;;  %v7446_v48 = vmax.f32 %v3836_v9, %v3929_v40  ;;  %v7448_v43 = vmax.f32 %v3838_v16, %v3934_v44  ;;  %v1211_v9 = vmax.f32 %v930_v19, %v1052_v49  ;;  %v4591_v19 = vld [vmem:[%s8304_s3 + $0x30] sm:$0xff] }
 0x2d2   : > { %8783 = vst [vmem:[#allocation28_spill] sm:$0xff] %v7441_v58  ;;  %v4020_v30 = vmax.f32 %v3840_v21, %v3939_v7  ;;  %v7461_v11 = vmax.f32 %v7430_v41, %v7441_v58  ;;  %v7468_v57 = vmax.f32 %v7410_v50, %v1053_v13  ;;  %v3417_v38 = vrot.slane %v3283_v26, 1  ;;  %v927_v21 = vld [vmem:[%s8304_s3 + $0x8] sm:$0xff] }
 0x2d3   : > { %8785 = vst [vmem:[#allocation60_spill] sm:$0xff] %v7448_v43  ;;  %v4056_v16 = vmax.f32 %v7446_v48, %v7448_v43  ;;  %v1333_v46 = vrot.slane %v1211_v9, 2  ;;  %v3422_v22 = vrot.slane %v7453_v8, 1  ;;  %v3427_v59 = vrot.slane %v7455_v53, 1  ;;  %4738 = vmatprep.mubr.msk.f32.mxu0 %vm845_vm1, %v927_v21  ;;  %v7533_v43 = vld [vmem:[#allocation2 + $0x158] sm:$0xff] }
 0x2d4   : > { %8786 = vst [vmem:[#allocation55_spill] sm:$0xff] %v7461_v11  ;;  %v3432_v60 = vrot.slane %v7457_v52, 1  ;;  %v1515_v5 = vsel %vm1510_vm6, %v7451_v12, %v1514_v37  ;;  %v8787_v44 = vrot.slane %v7143_v55, 1  ;;  %4739 = vmatmul.mubr.msk.f32.gmra.mxu0 %vm845_vm1, %v927_v21  ;;  %v8788_v45 = vrot.slane %v7164_v54, 1 }
 0x2d5   : > { %v4088_v18 = vmax.f32 %v7461_v11, %v4056_v16  ;;  %v8789_v13 = vrot.slane %v7174_v33, 1  ;;  %v8790_v16 = vrot.slane %v7185_v10, 1  ;;  %v3437_v37 = vrot.slane %v7470_v56, 1  ;;  %4808 = vmatprep.mubr.msk.f32.mxu0 %vm845_vm1, %v4591_v19 }
 0x2d6   : > { %v3419_v49 = vsel %vm1048_vm4, %v3417_v38, %v8787_v44  ;;  %v3424_v7 = vsel %vm1048_vm4, %v3422_v22, %v8788_v45  ;;  %v8791_v38 = vrot.slane %v7468_v57, 2  ;;  %v8793_v11 = vrot.slane %v7232_v32, 2 }
 0x2d7   : > { %v3429_v9 = vsel %vm1048_vm4, %v3427_v59, %v8789_v13  ;;  %v3434_v27 = vsel %vm1048_vm4, %v3432_v60, %v8790_v16  ;;  %v4120_v40 = vmax.f32 %v4088_v18, %v4020_v30  ;;  %v3563_v44 = vmax.f32 %v3283_v26, %v3419_v49 }
 0x2d8   : > { %v1334_v21 = vsel %vm1329_vm5, %v8791_v38, %v1333_v46  ;;  %v3566_v22 = vmax.f32 %v7453_v8, %v3424_v7  ;;  %v8792_v59 = vrot.slane %v7200_v2, 1  ;;  %v3569_v60 = vmax.f32 %v7455_v53, %v3429_v9 }
 0x2d9   : > { %v1471_v45 = vmax.f32 %v7468_v57, %v1334_v21  ;;  %v3572_v16 = vmax.f32 %v7457_v52, %v3434_v27  ;;  %4778 = vmatprep.subr.msk.mxu0 %vm845_vm1, %v4120_v40  ;;  %v3697_v19 = vrot.slane %v3563_v44, 2  ;;  %v3877_v46 = vrot.slane %v3283_v26, 4 }
 0x2da   : > { %v3439_v13 = vsel %vm1048_vm4, %v3437_v37, %v8792_v59  ;;  %v3702_v18 = vrot.slane %v3566_v22, 2  ;;  %v3707_v38 = vrot.slane %v3569_v60, 2  ;;  %v3882_v21 = vrot.slane %v7453_v8, 4 }
 0x2db   : > { %v3575_v30 = vmax.f32 %v7470_v56, %v3439_v13  ;;  %v1652_v49 = vmax.f32 %v1471_v45, %v1515_v5  ;;  %v3712_v7 = vrot.slane %v3572_v16, 2  ;;  %v3699_v37 = vsel %vm1329_vm5, %v3697_v19, %v8793_v11 }
 0x2dc   : > { %v8794_v9 = vrot.slane %v7240_v3, 2  ;;  %v8795_v40 = vrot.slane %v7143_v55, 4  ;;  %v8796_v5 = vrot.slane %v7245_v42, 2  ;;  %v8797_v8 = vrot.slane %v7249_v4, 2 }
 0x2dd   : > { %v3717_v59 = vrot.slane %v3575_v30, 2  ;;  %v1692_v26 = vmax.f32 %v1652_v49, %v6867_v15  ;;  %v3816_v11 = vmax.f32 %v3563_v44, %v3699_v37  ;;  %v8798_v3 = vrot.slane %v7255_v23, 2  ;;  %v8799_v15 = vld [vmem:[#allocation8_spill] sm:$0xff] }
 0x2de   : > { %v3704_v27 = vsel %vm1329_vm5, %v3702_v18, %v8794_v9  ;;  %v3879_v13 = vsel %vm1510_vm6, %v3877_v46, %v8795_v40  ;;  %v3709_v45 = vsel %vm1329_vm5, %v3707_v38, %v8796_v5  ;;  %v3714_v32 = vsel %vm1329_vm5, %v3712_v7, %v8797_v8  ;;  %v3306_v46 = vld [vmem:[#allocation2 + $0x160] sm:$0xf]  ;;  %v7574_v8 = vld [vmem:[#allocation2 + $0x28] sm:$0xf] }
 0x2df   : > { %v3719_v19 = vsel %vm1329_vm5, %v3717_v59, %v8798_v3  ;;  %v3818_v18 = vmax.f32 %v3566_v22, %v3704_v27  ;;  %v3820_v9 = vmax.f32 %v3569_v60, %v3709_v45  ;;  %v3822_v55 = vmax.f32 %v3572_v16, %v3714_v32  ;;  %v8802_v60 = vld [vmem:[#allocation19_spill] sm:$0xff]  ;;  %v2186_v45 = vld [vmem:[#allocation2 + $0x10] sm:$0xf] }
 0x2e0   : > { %v1728_v49 = vmax.f32 %v1692_v26, %v8799_v15  ;;  %v3824_v42 = vmax.f32 %v3575_v30, %v3719_v19  ;;  %v8800_v38 = vrot.slane %v7164_v54, 4  ;;  %v3887_v7 = vrot.slane %v7455_v53, 4  ;;  %v7561_v26 = vld [vmem:[#allocation2] sm:$0xff] }
 0x2e1   : > { %v3892_v44 = vrot.slane %v7457_v52, 4  ;;  %v3897_v23 = vrot.slane %v7470_v56, 4  ;;  %v7542_v37 = vmax.f32 %v3816_v11, %v3879_v13  ;;  %v8803_v27 = vrot.slane %v7174_v33, 4  ;;  %8807 = vst [vmem:[#allocation14_spill] sm:$0xff] %v7561_v26  ;;  %v8810_v11 = vld [vmem:[#allocation11_spill] sm:$0xff] }
 0x2e2   : > { %v3884_v4 = vsel %vm1510_vm6, %v3882_v21, %v8800_v38  ;;  %v1760_v16 = vmax.f32 %v1728_v49, %v8802_v60  ;;  %v3453_v54 = vrot.slane %v7533_v43, 1  ;;  %v3455_v59 = vrot.slane %v3306_v46, 1 }
 0x2e3   : > { %v7544_v22 = vmax.f32 %v3818_v18, %v3884_v4  ;;  %v3889_v30 = vsel %vm1510_vm6, %v3887_v7, %v8803_v27  ;;  %v2731_v53 = vmax.f32 %v7389_v36, %v7416_v47  ;;  %v8804_v52 = vrot.slane %v7185_v10, 4  ;;  %v8823_v36 = vld [vmem:[#allocation31_spill] sm:$0xff]  ;;  %v8824_v47 = vld [vmem:[#allocation48_spill] sm:$0xff] }
 0x2e4   : > { %v8805_v21 = vrot.slane %v7200_v2, 4  ;;  %v7559_v13 = vmax.f32 %v3820_v9, %v3889_v30  ;;  %1792 = vst.msk [vmem:[#allocation2 + $0x3a] sm:$0xff] %vm845_vm1, %v1760_v16  ;;  %4697 = vmatpush3.xpose.msk.msra.mxu1 %vm845_vm1, %v1760_v16  ;;  %v3456_v10 = vsel %vm1048_vm4, %v3453_v54, %v3455_v59  ;;  %v3586_v2 = vmax.f32 %v3306_v46, %v3455_v59 }
 0x2e5   : > { %8801 = vst [vmem:[#allocation7_spill] sm:$0xff] %v7544_v22  ;;  %v3894_v56 = vsel %vm1510_vm6, %v3892_v44, %v8804_v52  ;;  %v7569_v5 = vmax.f32 %v7542_v37, %v7544_v22  ;;  %4698 = vmatprep.subr.msk.mxu1 %vm845_vm1, %v8810_v11  ;;  %v7581_v3 = vmax.f32 %v7533_v43, %v3456_v10  ;;  %v8488_v19 = vrot.slane %v7533_v43, 4 }
 0x2e6   : > { %v3899_v40 = vsel %vm1510_vm6, %v3897_v23, %v8805_v21  ;;  %8806 = vst [vmem:[#allocation57_spill] sm:$0xff] %v7559_v13  ;;  %v7565_v33 = vmax.f32 %v3822_v55, %v3894_v56  ;;  %v3915_v18 = vrot.slane %v3306_v46, 4  ;;  %v3735_v55 = vrot.slane %v3586_v2, 2 }
 0x2e7   : > { %8808 = vst [vmem:[#allocation17_spill] sm:$0xff] %v7569_v5  ;;  %v7576_v32 = vmax.f32 %v3824_v42, %v3899_v40  ;;  %v4055_v15 = vmax.f32 %v7159_v62, %v7161_v14  ;;  %v8485_v49 = vrot.slane %v7561_v26, 1  ;;  %v8487_v42 = vrot.slane %v7581_v3, 2 }
 0x2e8   : > { %v7586_v9 = vmax.f32 %v7559_v13, %v7565_v33  ;;  %v8484_v38 = vrot.slane %v7561_v26, 4  ;;  %v2307_v4 = vrot.slane %v2186_v45, 1  ;;  %v2312_v7 = vrot.slane %v7574_v8, 1 }
 0x2e9   : > { %8809 = vst [vmem:[#allocation13_spill] sm:$0xff] %v7576_v32  ;;  %v3916_v44 = vsel %vm1510_vm6, %v8488_v19, %v3915_v18  ;;  %v1051_v23 = vsel %vm1048_vm4, %v8485_v49, %v7433_v63  ;;  %v2767_v60 = vrot.slane %v2186_v45, 4  ;;  %v3736_v16 = vsel %vm1329_vm5, %v8487_v42, %v3735_v55  ;;  %v5023_v18 = vld [vmem:[#allocation2 + $0x20] sm:$0xff] }
 0x2ea   : > { %8811 = vst [vmem:[#allocation24_spill] sm:$0xff] %v7586_v9  ;;  %v4072_v46 = vmax.f32 %v7569_v5, %v7586_v9  ;;  %v1209_v27 = vmax.f32 %v7561_v26, %v1051_v23  ;;  %v2308_v30 = vsel %vm1048_vm4, %v7433_v63, %v2307_v4  ;;  %v2313_v59 = vsel %vm1048_vm4, %v6709_v51, %v2312_v7 }
 0x2eb   : > { %v3831_v56 = vmax.f32 %v7581_v3, %v3736_v16  ;;  %v2465_v21 = vmax.f32 %v7410_v50, %v2308_v30  ;;  %v2466_v40 = vmax.f32 %v2186_v45, %v2307_v4  ;;  %v7614_v10 = vld [vmem:[#allocation2 + $0x40] sm:$0xf]  ;;  %v1513_v11 = vsel %vm1510_vm6, %v8484_v38, %v7451_v12 }
 0x2ec   : > { %v4104_v52 = vmax.f32 %v4072_v46, %v7576_v32  ;;  %v1330_v2 = vrot.slane %v1209_v27, 2  ;;  %v2468_v63 = vmax.f32 %v5023_v18, %v2313_v59  ;;  %v2469_v55 = vmax.f32 %v7574_v8, %v2312_v7 }
 0x2ed   : > { %v8486_v51 = vrot.slane %v7614_v10, 1  ;;  %v7623_v46 = vmax.f32 %v3831_v56, %v3916_v44  ;;  %v2585_v50 = vrot.slane %v2465_v21, 2  ;;  %v2768_v45 = vsel %vm1510_vm6, %v7451_v12, %v2767_v60 }
 0x2ee   : > { %4779 = vmatpush3.xpose.msk.msra.mxu0 %vm845_vm1, %v4104_v52  ;;  %v8812_v4 = vrot.slane %v7468_v57, 2  ;;  %v2587_v16 = vrot.slane %v2466_v40, 2  ;;  %v2590_v30 = vrot.slane %v2468_v63, 2  ;;  %v2592_v38 = vrot.slane %v2469_v55, 2 }
 0x2ef   : > { %v7633_v7 = vmax.f32 %v7614_v10, %v8486_v51  ;;  %v7637_v44 = vmax.f32 %v7623_v46, %v7152_v31  ;;  %v2586_v52 = vsel %vm1329_vm5, %v1330_v2, %v2585_v50  ;;  %v8814_v57 = vrot.slane %v7193_v28, 2 }
 0x2f0   : > { %v1332_v23 = vsel %vm1329_vm5, %v1330_v2, %v8812_v4  ;;  %v2588_v12 = vsel %vm1329_vm5, %v2585_v50, %v2587_v16  ;;  %v2593_v56 = vsel %vm1329_vm5, %v2590_v30, %v2592_v38  ;;  %v2724_v40 = vmax.f32 %v1209_v27, %v2586_v52 }
 0x2f1   : > { %8813 = vst [vmem:[#allocation16_spill] sm:$0xff] %v7637_v44  ;;  %v1470_v59 = vmax.f32 %v1209_v27, %v1332_v23  ;;  %v2591_v60 = vsel %vm1329_vm5, %v8814_v57, %v2590_v30  ;;  %v4087_v4 = vmax.f32 %v7637_v44, %v4055_v15  ;;  %v2725_v51 = vmax.f32 %v2465_v21, %v2588_v12  ;;  %v8825_v12 = vld [vmem:[#allocation42_spill] sm:$0xff] }
 0x2f2   : > { %v2726_v42 = vmax.f32 %v7193_v28, %v2591_v60  ;;  %v2727_v23 = vmax.f32 %v2468_v63, %v2593_v56  ;;  %v2770_v19 = vrot.slane %v5023_v18, 4  ;;  %v2772_v2 = vrot.slane %v7574_v8, 4  ;;  %v8826_v56 = vld [vmem:[#allocation25_spill] sm:$0xff] }
 0x2f3   : > { %v1651_v49 = vmax.f32 %v1470_v59, %v1513_v11  ;;  %v4119_v16 = vmax.f32 %v4087_v4, %v7171_v6  ;;  %v8815_v38 = vrot.slane %v7363_v39, 4  ;;  %v8816_v27 = vrot.slane %v7361_v1, 4 }
 0x2f4   : > { %v8817_v21 = vrot.slane %v7135_v17, 4  ;;  %v2773_v18 = vsel %vm1510_vm6, %v2770_v19, %v2772_v2  ;;  %v8818_v8 = vrot.slane %v6944_v25, 4  ;;  %v7666_v30 = vmax.f32 %v2724_v40, %v1513_v11  ;;  %v3304_v25 = vld [vmem:[#allocation2 + $0x150] sm:$0xff] }
 0x2f5   : > { %v1691_v57 = vmax.f32 %v1651_v49, %v7251_v34  ;;  %v2781_v15 = vsel %vm1510_vm6, %v8816_v27, %v8815_v38  ;;  %v8819_v63 = vmov %v8815_v38  ;;  %4780 = vmatprep.subr.msk.mxu0 %vm845_vm1, %v4119_v16  ;;  %v7670_v1 = vmax.f32 %v2725_v51, %v2768_v45  ;;  %v8822_v51 = vld [vmem:[#allocation18_spill] sm:$0xff] }
 0x2f6   : > { %v2771_v28 = vsel %vm1510_vm6, %v8817_v21, %v2770_v19  ;;  %v2783_v6 = vsel %vm1510_vm6, %v8819_v63, %v8818_v8  ;;  %v8820_v17 = vmax.f32 %v7386_v29, %v7413_v35  ;;  %v7679_v59 = vmax.f32 %v2727_v23, %v2773_v18  ;;  %v7713_v23 = vld [vmem:[#allocation2 + $0x140] sm:$0xff]  ;;  %v8827_v16 = vld [vmem:[#allocation38_spill] sm:$0xff]  ;;  %v8828_v21 = vld [vmem:[#allocation9_spill] sm:$0xff] }
 0x2f7   : > { %v1727_v34 = vmax.f32 %v1691_v57, %v6838_v0  ;;  %v7672_v49 = vmax.f32 %v2726_v42, %v2771_v28  ;;  %v7684_v39 = vmax.f32 %v2731_v53, %v2783_v6  ;;  %v7688_v0 = vmax.f32 %v6995_v20, %v6808_v61  ;;  %v8821_v42 = vld [vmem:[#allocation32_spill] sm:$0xff]  ;;  %v8830_v63 = vld [vmem:[#allocation23_spill] sm:$0xff] }
 0x2f8   : > { %v7677_v19 = vmax.f32 %v8820_v17, %v2781_v15  ;;  %v7692_v11 = vmax.f32 %v8821_v42, %v6810_v24  ;;  %v7703_v53 = vmax.f32 %v8824_v47, %v8823_v36  ;;  %v3452_v4 = vrot.slane %v3304_v25, 1  ;;  %v3303_v15 = vld [vmem:[#allocation2 + $0x148] sm:$0xf] }
 0x2f9   : > { %v1759_v29 = vmax.f32 %v1727_v34, %v8822_v51  ;;  %v7707_v52 = vmax.f32 %v7684_v39, %v8821_v42  ;;  %v2988_v60 = vmax.f32 %v7688_v0, %v8825_v12  ;;  %v3912_v38 = vrot.slane %v3304_v25, 4  ;;  %v8829_v18 = vld [vmem:[#allocation20_spill] sm:$0xff]  ;;  %v8831_v34 = vld [vmem:[#allocation15_spill] sm:$0xff]  ;;  %v7736_v51 = vld [vmem:[#allocation2 + $0x138] sm:$0xff] }
 0x2fa   : > { %v7699_v45 = vmax.f32 %v7677_v19, %v6995_v20  ;;  %v2989_v40 = vmax.f32 %v7692_v11, %v8826_v56  ;;  %v3454_v17 = vsel %vm1048_vm4, %v3452_v4, %v3453_v54  ;;  %v4486_v12 = vld [vmem:[%s8304_s3 + $0x18] sm:$0xff]  ;;  %v8834_v54 = vld [vmem:[#allocation21_spill] sm:$0xff]  ;;  %v3447_v2 = vrot.slane %v7736_v51, 1 }
 0x2fb   : > { %1791 = vst.msk [vmem:[#allocation2 + $0x32] sm:$0xff] %vm845_vm1, %v1759_v29  ;;  %4699 = vmatpush3.xpose.msk.msra.mxu1 %vm845_vm1, %v1759_v29  ;;  %v2987_v28 = vmax.f32 %v7707_v52, %v8828_v21  ;;  %v7726_v8 = vmax.f32 %v2988_v60, %v8829_v18  ;;  %v7738_v29 = vld [vmem:[#allocation2 + $0x128] sm:$0xff]  ;;  %v8832_v60 = vld [vmem:[#allocation47_spill] sm:$0xff]  ;;  %v3448_v21 = vrot.slane %v7713_v23, 1  ;;  %v7751_v18 = vld [vmem:[#allocation2 + $0x130] sm:$0xf] }
 0x2fc   : > { %v2986_v57 = vmax.f32 %v7699_v45, %v8827_v16  ;;  %v7729_v6 = vmax.f32 %v2989_v40, %v8830_v63  ;;  %4740 = vmatprep.subr.msk.mxu1 %vm845_vm1, %v8831_v34  ;;  %v3584_v40 = vmax.f32 %v3304_v25, %v3454_v17  ;;  %v7748_v16 = vmax.f32 %v7544_v22, %v7559_v13  ;;  %v8849_v13 = vld [vmem:[#allocation41_spill] sm:$0xff] }
 0x2fd   : > { %v7754_v4 = vmax.f32 %v2987_v28, %v8834_v54  ;;  %3052 = vst.msk [vmem:[#allocation2 + $0x92] sm:$0xff] %vm845_vm1, %v7726_v8  ;;  %v3450_v25 = vrot.slane %v3303_v15, 1  ;;  %v8492_v63 = vrot.slane %v7713_v23, 4  ;;  %v3910_v34 = vrot.slane %v3303_v15, 4  ;;  %v8837_v54 = vld [vmem:[#allocation6_spill] sm:$0xff] }
 0x2fe   : > { %v7744_v56 = vmax.f32 %v2986_v57, %v8832_v60  ;;  %3053 = vst.msk [vmem:[#allocation2 + $0x9a] sm:$0xff] %vm845_vm1, %v7729_v6  ;;  %v8835_v57 = vld [vmem:[#allocation26_spill] sm:$0xff]  ;;  %v3732_v17 = vrot.slane %v3584_v40, 2  ;;  %v8836_v28 = vrot.slane %v7533_v43, 4  ;;  %v8840_v27 = vrot.slane %v7581_v3, 2 }
 0x2ff   : > { %4701 = vmatmul.mubr.msk.f32.vlgmr.msra.gmra.mxu1 %vm845_vm1, %v8835_v57  ;;  %3051 = vst.msk [vmem:[#allocation2 + $0x82] sm:$0xff] %vm845_vm1, %v7754_v4  ;;  %v8838_v57 = vld [vmem:[#allocation50_spill] sm:$0xff]  ;;  %v3451_v50 = vsel %vm1048_vm4, %v3448_v21, %v3450_v25  ;;  %v7778_v43 = vmax.f32 %v3303_v15, %v3450_v25  ;;  %v7796_v15 = vsel %vm1510_vm6, %v8492_v63, %v3910_v34  ;;  %v8841_v3 = vrot.slane %v7751_v18, 1 }
 0x300   : > { %8833 = vst [vmem:[#allocation8_spill] sm:$0xff] %v7744_v56  ;;  %3050 = vst.msk [vmem:[#allocation2 + $0x7a] sm:$0xff] %vm845_vm1, %v7744_v56  ;;  %v3914_v60 = vsel %vm1510_vm6, %v3912_v38, %v8836_v28  ;;  %4741 = vmatpush3.xpose.msk.msra.mxu1 %vm845_vm1, %v8837_v54  ;;  %4702 = vmatprep.mubr.msk.f32.mxu1 %vm845_vm1, %v4486_v12  ;;  %v7785_v54 = vld [vmem:[%s8304_s3 + $0x20] sm:$0xff]  ;;  %v3734_v55 = vsel %vm1329_vm5, %v3732_v17, %v8840_v27  ;;  %v8852_v56 = vld [vmem:[#allocation60_spill] sm:$0xff] }
 0x301   : > { %4742 = vmatprep.subr.msk.mxu1 %vm845_vm1, %v8838_v57  ;;  %8839 = vst [vmem:[#allocation19_spill] sm:$0xff] %v7785_v54  ;;  %v7791_v35 = vmax.f32 %v7713_v23, %v3451_v50  ;;  %v3449_v25 = vsel %vm1048_vm4, %v3447_v2, %v3448_v21  ;;  %v3830_v28 = vmax.f32 %v3584_v40, %v3734_v55  ;;  %v3730_v9 = vrot.slane %v7778_v43, 2  ;;  %v8843_v21 = vld [vmem:[#allocation51_spill] sm:$0xff]  ;;  %v8844_v43 = vld [vmem:[#allocation56_spill] sm:$0xff] }
 0x302   : > { %v2190_v57 = vld [vmem:[#allocation2 + $0x30] sm:$0xff]  ;;  %v2191_v38 = vld [vmem:[#allocation2 + $0x38] sm:$0xff]  ;;  %v7801_v26 = vmax.f32 %v7736_v51, %v3449_v25  ;;  %v8842_v50 = vrot.slane %v7738_v29, 1 }
 0x303   : > { %4703 = vmatmul.mubr.msk.f32.gmra.mxu1 %vm845_vm1, %v4486_v12  ;;  %v2314_v34 = vrot.slane %v2190_v57, 1  ;;  %v2315_v17 = vrot.slane %v2191_v38, 1  ;;  %v2774_v63 = vrot.slane %v2190_v57, 4  ;;  %v2775_v2 = vrot.slane %v2191_v38, 4 }
 0x304   : > { %v3446_v27 = vsel %vm1048_vm4, %v8842_v50, %v8841_v3  ;;  %4743 = vmatpush3.xpose.msk.msra.mxu1 %vm845_vm1, %v8843_v21  ;;  %4772 = vmatprep.mubr.msk.f32.mxu1 %vm845_vm1, %v7785_v54  ;;  %v7813_v55 = vmax.f32 %v3830_v28, %v3914_v60  ;;  %v8845_v50 = vrot.slane %v7614_v10, 1  ;;  %v8846_v60 = vrot.slane %v7614_v10, 4 }
 0x305   : > { %4744 = vmatprep.subr.msk.mxu1 %vm845_vm1, %v8844_v43  ;;  %v7820_v12 = vmax.f32 %v7738_v29, %v3446_v27  ;;  %v2316_v3 = vsel %vm1048_vm4, %v2314_v34, %v2315_v17  ;;  %v2776_v54 = vsel %vm1510_vm6, %v2774_v63, %v2775_v2  ;;  %v3281_v40 = vld [vmem:[#allocation2 + $0x98] sm:$0xff]  ;;  %v3282_v22 = vld [vmem:[#allocation2 + $0xa0] sm:$0xf]  ;;  %v3280_v43 = vld [vmem:[#allocation2 + $0x90] sm:$0xff] }
 0x306   : > { %v2318_v21 = vsel %vm1048_vm4, %v2315_v17, %v8845_v50  ;;  %v2778_v28 = vsel %vm1510_vm6, %v2775_v2, %v8846_v60  ;;  %v2470_v31 = vmax.f32 %v2190_v57, %v2316_v3  ;;  %v3413_v32 = vrot.slane %v3281_v40, 1  ;;  %v8848_v50 = vld [vmem:[#allocation27_spill] sm:$0xff] }
 0x307   : > { %v2471_v25 = vmax.f32 %v2191_v38, %v2318_v21  ;;  %v3415_v27 = vrot.slane %v3282_v22, 1  ;;  %v3873_v47 = vrot.slane %v3281_v40, 4  ;;  %v3875_v62 = vrot.slane %v3282_v22, 4 }
 0x308   : > { %v7832_v34 = vmax.f32 %v7813_v55, %v7430_v41  ;;  %v3412_v17 = vrot.slane %v3280_v43, 1  ;;  %4745 = vmatpush3.xpose.msk.msra.mxu1 %vm845_vm1, %v8848_v50  ;;  %v2594_v10 = vrot.slane %v2470_v31, 2  ;;  %v8850_v3 = vmax.f32 %v7441_v58, %v7446_v48  ;;  %v7847_v50 = vld [vmem:[#allocation2 + $0x80] sm:$0xff] }
 0x309   : > { %v2595_v63 = vrot.slane %v2471_v25, 2  ;;  %v3416_v2 = vsel %vm1048_vm4, %v3413_v32, %v3415_v27  ;;  %v3562_v60 = vmax.f32 %v3282_v22, %v3415_v27  ;;  %4746 = vmatprep.subr.msk.mxu1 %vm845_vm1, %v8849_v13  ;;  %v3876_v57 = vsel %vm1510_vm6, %v3873_v47, %v3875_v62 }
 0x30a   : > { %8847 = vst [vmem:[#allocation11_spill] sm:$0xff] %v7832_v34  ;;  %v3561_v38 = vmax.f32 %v3281_v40, %v3416_v2  ;;  %v7844_v21 = vmax.f32 %v7832_v34, %v8850_v3  ;;  %v3414_v41 = vsel %vm1048_vm4, %v3412_v17, %v3413_v32  ;;  %v8851_v22 = vrot.slane %v7633_v7, 2  ;;  %v7855_v3 = vld [vmem:[#allocation2 + $0x88] sm:$0xf] }
 0x30b   : > { %v2596_v5 = vsel %vm1329_vm5, %v2594_v10, %v2595_v63  ;;  %v3695_v13 = vrot.slane %v3562_v60, 2  ;;  %v3560_v40 = vmax.f32 %v3280_v43, %v3414_v41  ;;  %v8853_v34 = vld [vmem:[#allocation36_spill] sm:$0xff]  ;;  %v3872_v17 = vrot.slane %v3280_v43, 4  ;;  %v8855_v41 = vld [vmem:[#allocation37_spill] sm:$0xff] }
 0x30c   : > { %v2598_v27 = vsel %vm1329_vm5, %v2595_v63, %v8851_v22  ;;  %v2728_v2 = vmax.f32 %v2470_v31, %v2596_v5  ;;  %v3693_v44 = vrot.slane %v3561_v38, 2  ;;  %4747 = vmatpush3.xpose.msk.msra.mxu1 %vm845_vm1, %v8853_v34  ;;  %v8854_v10 = vrot.slane %v7791_v35, 2 }
 0x30d   : > { %v2729_v62 = vmax.f32 %v2471_v25, %v2598_v27  ;;  %v3692_v32 = vrot.slane %v3560_v40, 2  ;;  %v3408_v63 = vrot.slane %v7847_v50, 1  ;;  %4748 = vmatprep.subr.msk.mxu1 %vm845_vm1, %v8855_v41  ;;  %v3874_v43 = vsel %vm1510_vm6, %v3872_v17, %v3873_v47 }
 0x30e   : > { %v3731_v7 = vsel %vm1329_vm5, %v8854_v10, %v3730_v9  ;;  %v2908_v31 = vmax.f32 %v2728_v2, %v2776_v54  ;;  %v3696_v25 = vsel %vm1329_vm5, %v3693_v44, %v3695_v13  ;;  %v3410_v27 = vrot.slane %v7855_v3, 1  ;;  %v8857_v2 = vld [vmem:[#allocation54_spill] sm:$0xff] }
 0x30f   : > { %v2909_v5 = vmax.f32 %v2729_v62, %v2778_v28  ;;  %v3829_v60 = vmax.f32 %v7791_v35, %v3731_v7  ;;  %v3815_v22 = vmax.f32 %v3561_v38, %v3696_v25  ;;  %v3694_v34 = vsel %vm1329_vm5, %v3692_v32, %v3693_v44  ;;  %v8856_v28 = vld [vmem:[#allocation35_spill] sm:$0xff]  ;;  %v8860_v7 = vld [vmem:[#allocation29_spill] sm:$0xff] }
 0x310   : > { %v2946_v9 = vmax.f32 %v7672_v49, %v2908_v31  ;;  %v2948_v58 = vmax.f32 %v2908_v31, %v7677_v19  ;;  %4749 = vmatpush3.xpose.msk.msra.mxu1 %vm845_vm1, %v8856_v28  ;;  %v3814_v38 = vmax.f32 %v3560_v40, %v3694_v34  ;;  %v3411_v47 = vsel %vm1048_vm4, %v3408_v63, %v3410_v27  ;;  %v8865_v34 = vld [vmem:[#allocation52_spill] sm:$0xff] }
 0x311   : > { %v2947_v10 = vmax.f32 %v7679_v59, %v2909_v5  ;;  %v2949_v54 = vmax.f32 %v2909_v5, %v7684_v39  ;;  %v7876_v13 = vmax.f32 %v3815_v22, %v3876_v57  ;;  %v7879_v44 = vmax.f32 %v3829_v60, %v7796_v15  ;;  %4750 = vmatprep.subr.msk.mxu1 %vm845_vm1, %v8857_v2  ;;  %v3277_v22 = vld [vmem:[#allocation2 + $0x78] sm:$0xff] }
 0x312   : > { %v8858_v19 = vmax.f32 %v7666_v30, %v7672_v49  ;;  %v8859_v62 = vmax.f32 %v7670_v1, %v7679_v59  ;;  %v2982_v40 = vmax.f32 %v2946_v9, %v7699_v45  ;;  %v2984_v32 = vmax.f32 %v2948_v58, %v7688_v0  ;;  %v8862_v0 = vld [vmem:[#allocation10_spill] sm:$0xff] }
 0x313   : > { %v2983_v15 = vmax.f32 %v2947_v10, %v7707_v52  ;;  %v2985_v17 = vmax.f32 %v2949_v54, %v7692_v11  ;;  %v7898_v41 = vmax.f32 %v7876_v13, %v8860_v7  ;;  %v7900_v31 = vmax.f32 %v3814_v38, %v3874_v43  ;;  %v8863_v45 = vld [vmem:[#allocation22_spill] sm:$0xff] }
 0x314   : > { %v2980_v39 = vmax.f32 %v8858_v19, %v2948_v58  ;;  %v2981_v57 = vmax.f32 %v8859_v62, %v2949_v54  ;;  %v7909_v49 = vmax.f32 %v2982_v40, %v6808_v61  ;;  %v8861_v58 = vld [vmem:[#allocation5_spill] sm:$0xff]  ;;  %v7917_v11 = vmax.f32 %v2984_v32, %v8862_v0  ;;  %v8864_v61 = vld [vmem:[#allocation44_spill] sm:$0xff]  ;;  %v8868_v38 = vld [vmem:[#allocation58_spill] sm:$0xff] }
 0x315   : > { %v7912_v59 = vmax.f32 %v2983_v15, %v6810_v24  ;;  %4751 = vmatpush3.xpose.msk.msra.mxu1 %vm845_vm1, %v8861_v58  ;;  %v7920_v52 = vmax.f32 %v2985_v17, %v8863_v45  ;;  %v7940_v24 = vmax.f32 %v7879_v44, %v7623_v46  ;;  %v3558_v5 = vmax.f32 %v7847_v50, %v3411_v47  ;;  %v8871_v32 = vld [vmem:[#allocation49_spill] sm:$0xff] }
 0x316   : > { %v7903_v30 = vmax.f32 %v2980_v39, %v6995_v20  ;;  %v7906_v1 = vmax.f32 %v2981_v57, %v8821_v42  ;;  %v4071_v20 = vmax.f32 %v7898_v41, %v7703_v53  ;;  %v7926_v42 = vmax.f32 %v7900_v31, %v7542_v37  ;;  %4752 = vmatprep.subr.msk.mxu1 %vm845_vm1, %v8864_v61 }
 0x317   : > { %3046 = vst.msk [vmem:[#allocation2 + $0x4a] sm:$0xff] %vm845_vm1, %v7909_v49  ;;  %3047 = vst.msk [vmem:[#allocation2 + $0x52] sm:$0xff] %vm845_vm1, %v7912_v59  ;;  %v3559_v25 = vmax.f32 %v7855_v3, %v3410_v27  ;;  %v3868_v60 = vrot.slane %v7847_v50, 4  ;;  %v3870_v10 = vrot.slane %v7855_v3, 4  ;;  %v8866_v54 = vrot.slane %v7791_v35, 2 }
 0x318   : > { %3044 = vst.msk [vmem:[#allocation2 + $0x32] sm:$0xff] %vm845_vm1, %v7903_v30  ;;  %3045 = vst.msk [vmem:[#allocation2 + $0x3a] sm:$0xff] %vm845_vm1, %v7906_v1  ;;  %v4103_v43 = vmax.f32 %v4071_v20, %v8865_v34  ;;  %v4070_v9 = vmax.f32 %v7926_v42, %v7748_v16  ;;  %v8867_v27 = vrot.slane %v7801_v26, 2  ;;  %v4085_v47 = vmax.f32 %v7940_v24, %v8868_v38 }
 0x319   : > { %3048 = vst.msk [vmem:[#allocation2 + $0x62] sm:$0xff] %vm845_vm1, %v7917_v11  ;;  %3049 = vst.msk [vmem:[#allocation2 + $0x6a] sm:$0xff] %vm845_vm1, %v7920_v52  ;;  %v3688_v2 = vrot.slane %v3558_v5, 2  ;;  %v3690_v19 = vrot.slane %v3559_v25, 2  ;;  %4753 = vmatpush3.xpose.msk.msra.mxu1 %vm845_vm1, %v7729_v6  ;;  %v3871_v35 = vsel %vm1510_vm6, %v3868_v60, %v3870_v10  ;;  %v8869_v62 = vrot.slane %v7713_v23, 4 }
 0x31a   : > { %v3729_v28 = vsel %vm1329_vm5, %v8867_v27, %v8866_v54  ;;  %4781 = vmatpush3.xpose.msk.msra.mxu0 %vm845_vm1, %v4103_v43  ;;  %v4102_v3 = vmax.f32 %v4070_v9, %v7565_v33  ;;  %v8870_v57 = vrot.slane %v7736_v51, 4  ;;  %v3407_v15 = vrot.slane %v3277_v22, 1  ;;  %4754 = vmatprep.subr.msk.mxu1 %vm845_vm1, %v8871_v32 }
 0x31b   : > { %v3828_v39 = vmax.f32 %v7801_v26, %v3729_v28  ;;  %v8872_v26 = vmax.f32 %v7844_v21, %v8852_v56  ;;  %v3691_v6 = vsel %vm1329_vm5, %v3688_v2, %v3690_v19  ;;  %v3867_v58 = vrot.slane %v3277_v22, 4  ;;  %v3298_v21 = vld [vmem:[#allocation2 + $0x120] sm:$0xff] }
 0x31c   : > { %v3909_v40 = vsel %vm1510_vm6, %v8870_v57, %v8869_v62  ;;  %v8873_v23 = vrot.slane %v7751_v18, 1  ;;  %v4117_v0 = vmax.f32 %v4085_v47, %v7161_v14  ;;  %v3813_v45 = vmax.f32 %v3558_v5, %v3691_v6  ;;  %v8875_v5 = vld [vmem:[#allocation55_spill] sm:$0xff]  ;;  %v8876_v57 = vld [vmem:[#allocation61_spill] sm:$0xff]  ;;  %v8877_v6 = vld [vmem:[#allocation34_spill] sm:$0xff] }
 0x31d   : > { %4782 = vmatprep.subr.msk.mxu0 %vm845_vm1, %v8872_v26  ;;  %v7978_v17 = vmax.f32 %v3828_v39, %v3909_v40  ;;  %v3409_v20 = vsel %vm1048_vm4, %v3407_v15, %v3408_v63  ;;  %v3723_v56 = vrot.slane %v7820_v12, 2  ;;  %v3903_v9 = vrot.slane %v7738_v29, 4  ;;  %4755 = vmatpush3.xpose.msk.msra.mxu1 %vm845_vm1, %v7726_v8  ;;  %v8874_v63 = vld [vmem:[#allocation4_spill] sm:$0xff] }
 0x31e   : > { %v3580_v51 = vmax.f32 %v7751_v18, %v8873_v23  ;;  %v3557_v25 = vmax.f32 %v3277_v22, %v3409_v20  ;;  %4783 = vmatpush3.xpose.msk.msra.mxu0 %vm845_vm1, %v4102_v3  ;;  %v7996_v14 = vmax.f32 %v3813_v45, %v3871_v35  ;;  %v3905_v50 = vrot.slane %v7751_v18, 4  ;;  %4756 = vmatprep.subr.msk.mxu1 %vm845_vm1, %v8874_v63 }
 0x31f   : > { %v7990_v61 = vmax.f32 %v7978_v17, %v7813_v55  ;;  %4784 = vmatprep.subr.msk.mxu0 %vm845_vm1, %v4117_v0  ;;  %v3442_v28 = vrot.slane %v3298_v21, 1  ;;  %v3869_v38 = vsel %vm1510_vm6, %v3867_v58, %v3868_v60  ;;  %v3902_v62 = vrot.slane %v3298_v21, 4  ;;  %v8032_v0 = vld [vmem:[#allocation2 + $0x50] sm:$0xff] }
 0x320   : > { %v3725_v43 = vrot.slane %v3580_v51, 2  ;;  %v3687_v10 = vrot.slane %v3557_v25, 2  ;;  %v8007_v8 = vld [vmem:[#allocation2 + $0x68] sm:$0xff]  ;;  %v3276_v27 = vld [vmem:[#allocation2 + $0x70] sm:$0xf]  ;;  %v8011_v18 = vmax.f32 %v7996_v14, %v7876_v13  ;;  %v3906_v3 = vsel %vm1510_vm6, %v3903_v9, %v3905_v50  ;;  %v3274_v26 = vld [vmem:[#allocation2 + $0x60] sm:$0xff] }
 0x321   : > { %v4084_v22 = vmax.f32 %v7990_v61, %v8875_v5  ;;  %v3403_v19 = vrot.slane %v8007_v8, 1  ;;  %v3405_v35 = vrot.slane %v3276_v27, 1  ;;  %4757 = vmatpush3.xpose.msk.msra.mxu1 %vm845_vm1, %v7754_v4  ;;  %v3863_v60 = vrot.slane %v8007_v8, 4 }
 0x322   : > { %v3726_v54 = vsel %vm1329_vm5, %v3723_v56, %v3725_v43  ;;  %v3689_v39 = vsel %vm1329_vm5, %v3687_v10, %v3688_v2  ;;  %v4069_v40 = vmax.f32 %v8011_v18, %v8876_v57  ;;  %4758 = vmatprep.subr.msk.mxu1 %vm845_vm1, %v8877_v6  ;;  %v8878_v51 = vrot.slane %v7738_v29, 1  ;;  %v8038_v43 = vld [vmem:[#allocation2 + $0x58] sm:$0xf] }
 0x323   : > { %v3827_v47 = vmax.f32 %v7820_v12, %v3726_v54  ;;  %v4116_v15 = vmax.f32 %v4084_v22, %v7446_v48  ;;  %v3812_v32 = vmax.f32 %v3557_v25, %v3689_v39  ;;  %v3406_v58 = vsel %vm1048_vm4, %v3403_v19, %v3405_v35  ;;  %v8879_v22 = vld [vmem:[#allocation8_spill] sm:$0xff]  ;;  %v8882_v39 = vld [vmem:[#allocation17_spill] sm:$0xff] }
 0x324   : > { %v3556_v23 = vmax.f32 %v3276_v27, %v3405_v35  ;;  %v3444_v4 = vsel %vm1048_vm4, %v3442_v28, %v8878_v51  ;;  %v4101_v48 = vmax.f32 %v4069_v40, %v8823_v36  ;;  %v3555_v20 = vmax.f32 %v8007_v8, %v3406_v58  ;;  %v8880_v8 = vld [vmem:[#allocation43_spill] sm:$0xff] }
 0x325   : > { %v8026_v2 = vmax.f32 %v3827_v47, %v3906_v3  ;;  %v8035_v45 = vmax.f32 %v3812_v32, %v3869_v38  ;;  %v3865_v25 = vrot.slane %v3276_v27, 4  ;;  %v3578_v5 = vmax.f32 %v3298_v21, %v3444_v4  ;;  %4759 = vmatpush3.xpose.msk.msra.mxu1 %vm845_vm1, %v8879_v22  ;;  %v8881_v27 = vld [vmem:[#allocation16_spill] sm:$0xff] }
 0x326   : > { %v3685_v63 = vrot.slane %v3556_v23, 2  ;;  %v3402_v29 = vrot.slane %v3274_v26, 1  ;;  %4785 = vmatpush3.xpose.msk.msra.mxu0 %vm845_vm1, %v4101_v48  ;;  %v3683_v10 = vrot.slane %v3555_v20, 2  ;;  %v3398_v54 = vrot.slane %v8032_v0, 1  ;;  %4760 = vmatprep.subr.msk.mxu1 %vm845_vm1, %v8880_v8 }
 0x327   : > { %v8042_v50 = vmax.f32 %v8026_v2, %v7879_v44  ;;  %v8049_v36 = vmax.f32 %v8035_v45, %v7900_v31  ;;  %4786 = vmatprep.subr.msk.mxu0 %vm845_vm1, %v4116_v15  ;;  %v3722_v28 = vrot.slane %v3578_v5, 2  ;;  %v3400_v47 = vrot.slane %v8038_v43, 1 }
 0x328   : > { %v3404_v38 = vsel %vm1048_vm4, %v3402_v29, %v3403_v19  ;;  %v3686_v35 = vsel %vm1329_vm5, %v3683_v10, %v3685_v63  ;;  %v3904_v57 = vsel %vm1510_vm6, %v3902_v62, %v3903_v9  ;;  %v3866_v6 = vsel %vm1510_vm6, %v3863_v60, %v3865_v25  ;;  %v8883_v19 = vld [vmem:[#allocation57_spill] sm:$0xff]  ;;  %v8884_v63 = vld [vmem:[#allocation12_spill] sm:$0xff]  ;;  %v8885_v9 = vld [vmem:[#allocation46_spill] sm:$0xff] }
 0x329   : > { %v4083_v21 = vmax.f32 %v8042_v50, %v8881_v27  ;;  %v4068_v3 = vmax.f32 %v8049_v36, %v8882_v39  ;;  %v3554_v40 = vmax.f32 %v3274_v26, %v3404_v38  ;;  %v3811_v32 = vmax.f32 %v3555_v20, %v3686_v35  ;;  %4761 = vmatpush3.xpose.msk.msra.mxu1 %vm845_vm1, %v7920_v52  ;;  %v8888_v35 = vld [vmem:[#allocation11_spill] sm:$0xff] }
 0x32a   : > { %v3724_v15 = vsel %vm1329_vm5, %v3722_v28, %v3723_v56  ;;  %v3862_v58 = vrot.slane %v3274_v26, 4  ;;  %v3401_v48 = vsel %vm1048_vm4, %v3398_v54, %v3400_v47  ;;  %4762 = vmatprep.subr.msk.mxu1 %vm845_vm1, %v8884_v63  ;;  %v3553_v56 = vmax.f32 %v8038_v43, %v3400_v47  ;;  %v3271_v26 = vld [vmem:[#allocation2 + $0x48] sm:$0xff]  ;;  %v8887_v47 = vld [vmem:[#allocation33_spill] sm:$0xff] }
 0x32b   : > { %v4100_v23 = vmax.f32 %v4068_v3, %v8883_v19  ;;  %v3826_v51 = vmax.f32 %v3578_v5, %v3724_v15  ;;  %v3682_v4 = vrot.slane %v3554_v40, 2  ;;  %v4115_v62 = vmax.f32 %v4083_v21, %v8885_v9  ;;  %v3270_v15 = vld [vmem:[#allocation2 + $0x40] sm:$0xf] }
 0x32c   : > { %v8074_v20 = vmax.f32 %v3811_v32, %v3866_v6  ;;  %v3552_v12 = vmax.f32 %v8032_v0, %v3401_v48  ;;  %v3858_v5 = vrot.slane %v8032_v0, 4  ;;  %v3860_v29 = vrot.slane %v8038_v43, 4  ;;  %v8886_v43 = vld [vmem:[#allocation40_spill] sm:$0xff]  ;;  %v8112_v6 = vld [vmem:[#allocation2 + $0x38] sm:$0xff] }
 0x32d   : > { %4787 = vmatpush3.xpose.msk.msra.mxu0 %vm845_vm1, %v4100_v23  ;;  %v8079_v52 = vmax.f32 %v3826_v51, %v3904_v57  ;;  %v3684_v25 = vsel %vm1329_vm5, %v3682_v4, %v3683_v10  ;;  %v3680_v21 = vrot.slane %v3553_v56, 2  ;;  %4763 = vmatpush3.xpose.msk.msra.mxu1 %vm845_vm1, %v7917_v11  ;;  %v3864_v0 = vsel %vm1510_vm6, %v3862_v58, %v3863_v60  ;;  %v8889_v58 = vld [vmem:[#allocation48_spill] sm:$0xff] }
 0x32e   : > { %4788 = vmatprep.subr.msk.mxu0 %vm845_vm1, %v4115_v62  ;;  %v8087_v22 = vmax.f32 %v8074_v20, %v7996_v14  ;;  %v3810_v8 = vmax.f32 %v3554_v40, %v3684_v25  ;;  %v3678_v27 = vrot.slane %v3552_v12, 2  ;;  %v8098_v10 = vmax.f32 %v8886_v43, %v8026_v2  ;;  %4764 = vmatprep.subr.msk.mxu1 %vm845_vm1, %v8887_v47  ;;  %v8890_v4 = vld [vmem:[#allocation28_spill] sm:$0xff]  ;;  %v8892_v62 = vld [vmem:[#allocation3_spill] sm:$0xff] }
 0x32f   : > { %v8093_v28 = vmax.f32 %v8079_v52, %v7978_v17  ;;  %v3397_v38 = vrot.slane %v3271_v26, 1  ;;  %v3861_v23 = vsel %vm1510_vm6, %v3858_v5, %v3860_v29  ;;  %v3857_v9 = vrot.slane %v3271_v26, 4  ;;  %v8893_v29 = vld [vmem:[#allocation39_spill] sm:$0xff] }
 0x330   : > { %v4067_v39 = vmax.f32 %v8087_v22, %v7898_v41  ;;  %v8104_v3 = vmax.f32 %v3810_v8, %v3864_v0  ;;  %v3681_v11 = vsel %vm1329_vm5, %v3678_v27, %v3680_v21  ;;  %v4081_v60 = vmax.f32 %v8098_v10, %v7940_v24  ;;  %v8143_v0 = vld [vmem:[#allocation2 + $0x30] sm:$0xff] }
 0x331   : > { %v4082_v57 = vmax.f32 %v8093_v28, %v8888_v35  ;;  %v3809_v40 = vmax.f32 %v3552_v12, %v3681_v11  ;;  %v3399_v32 = vsel %vm1048_vm4, %v3397_v38, %v3398_v54  ;;  %4765 = vmatpush3.xpose.msk.msra.mxu1 %vm845_vm1, %v7912_v59  ;;  %v8891_v54 = vld [vmem:[#allocation13_spill] sm:$0xff]  ;;  %v3393_v59 = vrot.slane %v8112_v6, 1  ;;  %v8894_v38 = vld [vmem:[#allocation7_spill] sm:$0xff] }
 0x332   : > { %v4099_v19 = vmax.f32 %v4067_v39, %v8889_v58  ;;  %v8117_v41 = vmax.f32 %v8104_v3, %v8035_v45  ;;  %v3551_v51 = vmax.f32 %v3271_v26, %v3399_v32  ;;  %v8127_v63 = vmax.f32 %v8891_v54, %v8079_v52  ;;  %4766 = vmatprep.subr.msk.mxu1 %vm845_vm1, %v8892_v62  ;;  %v8895_v32 = vld [vmem:[#allocation30_spill] sm:$0xff] }
 0x333   : > { %v4114_v24 = vmax.f32 %v4082_v57, %v8890_v4  ;;  %v8123_v48 = vmax.f32 %v3809_v40, %v3861_v23  ;;  %v3395_v25 = vrot.slane %v3270_v15, 1  ;;  %v4113_v8 = vmax.f32 %v4081_v60, %v8893_v29  ;;  %v3267_v4 = vld [vmem:[#allocation2 + $0x28] sm:$0xf] }
 0x334   : > { %4789 = vmatpush3.xpose.msk.msra.mxu0 %vm845_vm1, %v4099_v19  ;;  %v4066_v12 = vmax.f32 %v8117_v41, %v7926_v42  ;;  %v3677_v56 = vrot.slane %v3551_v51, 2  ;;  %v4080_v26 = vmax.f32 %v8127_v63, %v7990_v61  ;;  %v3859_v57 = vsel %vm1510_vm6, %v3857_v9, %v3858_v5  ;;  %v8153_v61 = vld [vmem:[#allocation2 + $0x20] sm:$0xff] }
 0x335   : > { %4790 = vmatprep.subr.msk.mxu0 %vm845_vm1, %v4114_v24  ;;  %v8139_v21 = vmax.f32 %v8123_v48, %v8074_v20  ;;  %v3396_v39 = vsel %vm1048_vm4, %v3393_v59, %v3395_v25  ;;  %v3550_v11 = vmax.f32 %v3270_v15, %v3395_v25  ;;  %4767 = vmatpush3.xpose.msk.msra.mxu1 %vm845_vm1, %v7909_v49  ;;  %v3853_v40 = vrot.slane %v8112_v6, 4  ;;  %v8896_v5 = vld [vmem:[#allocation59_spill] sm:$0xff] }
 0x336   : > { %v4098_v47 = vmax.f32 %v4066_v12, %v8894_v38  ;;  %v3679_v42 = vsel %vm1329_vm5, %v3677_v56, %v3678_v27  ;;  %v3549_v60 = vmax.f32 %v8112_v6, %v3396_v39  ;;  %4768 = vmatprep.subr.msk.mxu1 %vm845_vm1, %v8895_v32  ;;  %v3855_v19 = vrot.slane %v3270_v15, 4 }
 0x337   : > { %v3808_v35 = vmax.f32 %v3551_v51, %v3679_v42  ;;  %v4065_v27 = vmax.f32 %v8139_v21, %v8011_v18  ;;  %v3675_v58 = vrot.slane %v3550_v11, 2  ;;  %v3392_v49 = vrot.slane %v8143_v0, 1  ;;  %v3265_v42 = vld [vmem:[#allocation2 + $0x18] sm:$0xff] }
 0x338   : > { %4791 = vmatpush3.xpose.msk.msra.mxu0 %vm845_vm1, %v4098_v47  ;;  %v4112_v23 = vmax.f32 %v4080_v26, %v8896_v5  ;;  %v3673_v6 = vrot.slane %v3549_v60, 2  ;;  %v8166_v9 = vmax.f32 %v8865_v34, %v8886_v43  ;;  %v3388_v18 = vrot.slane %v8153_v61, 1  ;;  %v8897_v34 = vld [vmem:[#allocation45_spill] sm:$0xff] }
 0x339   : > { %4792 = vmatprep.subr.msk.mxu0 %vm845_vm1, %v4113_v8  ;;  %v3988_v51 = vmax.f32 %v3808_v35, %v3859_v57  ;;  %v4097_v24 = vmax.f32 %v4065_v27, %v8860_v7  ;;  %v3394_v62 = vsel %vm1048_vm4, %v3392_v49, %v3393_v59  ;;  %4769 = vmatpush3.xpose.msk.msra.mxu1 %vm845_vm1, %v7906_v1  ;;  %v3390_v25 = vrot.slane %v3267_v4, 1  ;;  %v8202_v35 = vld [vmem:[#allocation2 + $0x8] sm:$0xff]  ;;  %v8898_v49 = vld [vmem:[#allocation19_spill] sm:$0xff] }
 0x33a   : > { %v3676_v12 = vsel %vm1329_vm5, %v3673_v6, %v3675_v58  ;;  %v8178_v56 = vmax.f32 %v7565_v33, %v8891_v54  ;;  %v3548_v7 = vmax.f32 %v8143_v0, %v3394_v62  ;;  %4770 = vmatprep.subr.msk.mxu1 %vm845_vm1, %v8897_v34  ;;  %v4079_v43 = vmax.f32 %v8166_v9, %v8042_v50  ;;  %v4556_v57 = vld [vmem:[%s8304_s3 + $0x28] sm:$0xff] }
 0x33b   : > { %v8173_v15 = vmax.f32 %v3988_v51, %v8104_v3  ;;  %v3807_v1 = vmax.f32 %v3549_v60, %v3676_v12  ;;  %v3856_v59 = vsel %vm1510_vm6, %v3853_v40, %v3855_v19  ;;  %v3852_v8 = vrot.slane %v8143_v0, 4  ;;  %v3264_v0 = vld [vmem:[#allocation2 + $0x10] sm:$0xf] }
 0x33c   : > { %4793 = vmatpush3.xpose.msk.msra.mxu0 %vm845_vm1, %v4097_v24  ;;  %v4078_v54 = vmax.f32 %v8178_v56, %v8093_v28  ;;  %v3672_v29 = vrot.slane %v3548_v7, 2  ;;  %v3391_v38 = vsel %vm1048_vm4, %v3388_v18, %v3390_v25  ;;  %v3547_v50 = vmax.f32 %v3267_v4, %v3390_v25 }
 0x33d   : > { %4794 = vmatprep.subr.msk.mxu0 %vm845_vm1, %v4112_v23  ;;  %v4064_v33 = vmax.f32 %v8173_v15, %v8049_v36  ;;  %v8193_v26 = vmax.f32 %v3807_v1, %v3856_v59  ;;  %v3848_v47 = vrot.slane %v8153_v61, 4  ;;  %4771 = vmatpush3.xpose.msk.msra.mxu1 %vm845_vm1, %v7903_v30  ;;  %v3546_v28 = vmax.f32 %v8153_v61, %v3391_v38 }
 0x33e   : > { %v3674_v36 = vsel %vm1329_vm5, %v3672_v29, %v3673_v6  ;;  %v3850_v11 = vrot.slane %v3267_v4, 4  ;;  %v4111_v60 = vmax.f32 %v4079_v43, %v7623_v46  ;;  %v4110_v61 = vmax.f32 %v4078_v54, %v7813_v55 }
 0x33f   : > { %v4096_v39 = vmax.f32 %v4064_v33, %v7542_v37  ;;  %v8210_v32 = vmax.f32 %v8193_v26, %v8123_v48  ;;  %v3806_v30 = vmax.f32 %v3548_v7, %v3674_v36  ;;  %v3670_v37 = vrot.slane %v3547_v50, 2 }
 0x340   : > { %v3854_v27 = vsel %vm1510_vm6, %v3852_v8, %v3853_v40  ;;  %v3668_v58 = vrot.slane %v3546_v28, 2  ;;  %v3387_v19 = vrot.slane %v3265_v42, 1  ;;  %4773 = vmatmul.mubr.msk.f32.vlgmr.msra.gmra.mxu1 %vm845_vm1, %v8898_v49  ;;  %v3383_v5 = vrot.slane %v8202_v35, 1  ;;  %v8900_v8 = vld [vmem:[#allocation14_spill] sm:$0xff] }
 0x341   : > { %4795 = vmatpush3.xpose.msk.msra.mxu0 %vm845_vm1, %v4096_v39  ;;  %v4063_v46 = vmax.f32 %v8210_v32, %v8087_v22  ;;  %v3986_v48 = vmax.f32 %v3806_v30, %v3854_v27  ;;  %v3385_v23 = vrot.slane %v3264_v0, 1  ;;  %4774 = vmatprep.mubr.msk.f32.mxu1 %vm845_vm1, %v4556_v57  ;;  %v3851_v40 = vsel %vm1510_vm6, %v3848_v47, %v3850_v11  ;;  %v8902_v11 = vld [vmem:[#allocation24_spill] sm:$0xff] }
 0x342   : > { %4796 = vmatprep.subr.msk.mxu0 %vm845_vm1, %v4111_v60  ;;  %v3671_v55 = vsel %vm1329_vm5, %v3668_v58, %v3670_v37  ;;  %v3389_v6 = vsel %vm1048_vm4, %v3387_v19, %v3388_v18  ;;  %v3847_v4 = vrot.slane %v3265_v42, 4  ;;  %v3843_v43 = vrot.slane %v8202_v35, 4 }
 0x343   : > { %v4095_v24 = vmax.f32 %v4063_v46, %v7876_v13  ;;  %v8226_v62 = vmax.f32 %v3986_v48, %v3988_v51  ;;  %v3805_v12 = vmax.f32 %v3546_v28, %v3671_v55  ;;  %v3545_v7 = vmax.f32 %v3265_v42, %v3389_v6  ;;  %v8899_v51 = vld [vmem:[#allocation53_spill] sm:$0xff]  ;;  %v4309_v46 = vld [vmem:[%s8305_s4 + $0x8] sm:$0xff] }
 0x344   : > { %v3386_v22 = vsel %vm1048_vm4, %v3383_v5, %v3385_v23  ;;  %v3544_v34 = vmax.f32 %v3264_v0, %v3385_v23  ;;  %v3845_v1 = vrot.slane %v3264_v0, 4  ;;  %4775 = vmatmul.mubr.msk.f32.gmra.mxu1 %vm845_vm1, %v4556_v57  ;;  %v4077_v33 = vmax.f32 %v8899_v51, %v8098_v10  ;;  %v4308_v0 = vld [vmem:[%s8305_s4] sm:$0xff] }
 0x345   : > { %4797 = vmatpush3.xpose.msk.msra.mxu0 %vm845_vm1, %v4095_v24  ;;  %v4062_v18 = vmax.f32 %v8226_v62, %v8117_v41  ;;  %v3985_v59 = vmax.f32 %v3805_v12, %v3851_v40  ;;  %v3667_v25 = vrot.slane %v3545_v7, 2  ;;  %v3543_v13 = vmax.f32 %v8202_v35, %v3386_v22 }
 0x346   : > { %4798 = vmatprep.subr.msk.mxu0 %vm845_vm1, %v4110_v61  ;;  %v3849_v54 = vsel %vm1510_vm6, %v3847_v4, %v3848_v47  ;;  %v3665_v29 = vrot.slane %v3544_v34, 2  ;;  %v8901_v38 = vrot.slane %v8900_v8, 1  ;;  %v4109_v28 = vmax.f32 %v4077_v33, %v7879_v44 }
 0x347   : > { %v4094_v42 = vmax.f32 %v4062_v18, %v7900_v31  ;;  %v4025_v41 = vmax.f32 %v3985_v59, %v8193_v26  ;;  %v3669_v39 = vsel %vm1329_vm5, %v3667_v25, %v3668_v58  ;;  %v3663_v36 = vrot.slane %v3543_v13, 2 }
 0x348   : > { %v3384_v50 = vsel %vm1048_vm4, %v8901_v38, %v3383_v5  ;;  %v4076_v35 = vmax.f32 %v8902_v11, %v8127_v63  ;;  %v3804_v10 = vmax.f32 %v3545_v7, %v3669_v39  ;;  %v3846_v57 = vsel %vm1510_vm6, %v3843_v43, %v3845_v1 }
 0x349   : > { %v3542_v47 = vmax.f32 %v8900_v8, %v3384_v50  ;;  %4799 = vmatpush3.xpose.msk.msra.mxu0 %vm845_vm1, %v4094_v42  ;;  %v4061_v31 = vmax.f32 %v4025_v41, %v8139_v21  ;;  %v3666_v26 = vsel %vm1329_vm5, %v3663_v36, %v3665_v29  ;;  %v5034_v30 = vmov 0  }
 0x34a   : > { %4800 = vmatprep.subr.msk.mxu0 %vm845_vm1, %v4109_v28  ;;  %v3984_v44 = vmax.f32 %v3804_v10, %v3849_v54  ;;  %v3803_v60 = vmax.f32 %v3543_v13, %v3666_v26  ;;  %4873 = vset.pattern.permute.xlu1 %v5034_v30  ;;  %v4108_v61 = vmax.f32 %v4076_v35, %v7978_v17  ;;  %v8903_v19 = vrot.slane %v8900_v8, 4 }
 0x34b   : > { %v3662_v63 = vrot.slane %v3542_v47, 2  ;;  %v4093_v37 = vmax.f32 %v4061_v31, %v7996_v14  ;;  %4312 = vperm.xlu1 %4873, %v4308_v0   ;;  %4874 = vset.pattern.permute.xlu0 %v5034_v30 }
 0x34c   : > { %v4024_v27 = vmax.f32 %v3984_v44, %v3986_v48  ;;  %v3983_v58 = vmax.f32 %v3803_v60, %v3846_v57  ;;  %v3844_v49 = vsel %vm1510_vm6, %v8903_v19, %v3843_v43  ;;  %v4075_v48 = vmax.f32 %v7703_v53, %v8166_v9  ;;  %v4592_v9 = vld [vmem:[%s8304_s3 + $0x38] sm:$0xff] }
 0x34d   : > { %v3664_v21 = vsel %vm1329_vm5, %v3662_v63, %v3663_v36  ;;  %4801 = vmatpush3.xpose.msk.msra.mxu0 %vm845_vm1, %v4093_v37 }
 0x34e   : > { %v3802_v5 = vmax.f32 %v3542_v47, %v3664_v21  ;;  %4802 = vmatprep.subr.msk.mxu0 %vm845_vm1, %v4108_v61  ;;  %v4060_v17 = vmax.f32 %v4024_v27, %v8173_v15  ;;  %v4023_v14 = vmax.f32 %v3983_v58, %v3985_v59  ;;  %v4107_v40 = vmax.f32 %v4075_v48, %v8026_v2 }
 0x34f   : > { %4317 = vperm.xlu1 %4873, %v4309_v46   ;;  %v4074_v15 = vmax.f32 %v7748_v16, %v8178_v56  ;;  %v5024_v16 = vld [vmem:[%s8304_s3 + $0x30] sm:$0xff] }
 0x350   : > { %v3982_v23 = vmax.f32 %v3802_v5, %v3844_v49  ;;  %v4092_v55 = vmax.f32 %v4060_v17, %v8035_v45  ;;  %v4059_v6 = vmax.f32 %v4023_v14, %v8210_v32  ;;  %v2173_v32 = vpop.f32.mrf.mxu0 }
 0x351   : > { %v4106_v53 = vmax.f32 %v4074_v15, %v8079_v52 }
 0x352   : > { %4803 = vmatpush3.xpose.msk.msra.mxu0 %vm845_vm1, %v4092_v55  ;;  %v4022_v4 = vmax.f32 %v3982_v23, %v3984_v44  ;;  %v4091_v24 = vmax.f32 %v4059_v6, %v8074_v20  ;;  %v2175_v12 = vpop.f32.mrf.mxu0 }
 0x353   : > { %4804 = vmatprep.subr.msk.mxu0 %vm845_vm1, %v4107_v40 }
 0x354   : > { %v4058_v45 = vmax.f32 %v4022_v4, %v8226_v62 }
 0x356   : > { %4805 = vmatpush3.xpose.msk.msra.mxu0 %vm845_vm1, %v4091_v24  ;;  %v4090_v2 = vmax.f32 %v4058_v45, %v8104_v3 }
 0x357   : > { %4806 = vmatprep.subr.msk.mxu0 %vm845_vm1, %v4106_v53 }
 0x35a   : > { %4807 = vmatpush3.xpose.msk.msra.mxu0 %vm845_vm1, %v4090_v2 }
 0x35d   : > { %4809 = vmatmul.mubr.msk.f32.vlgmr.msra.gmra.mxu0 %vm845_vm1, %v5024_v16 }
 0x35e   : > { %4810 = vmatprep.mubr.msk.f32.mxu0 %vm845_vm1, %v4592_v9 }
 0x361   : > { %4811 = vmatmul.mubr.msk.f32.gmra.mxu0 %vm845_vm1, %v4592_v9 }
 0x394   : > { %v2179_v22 = vpop.f32.mrf.mxu0 }
 0x396   : > { %v2181_v59 = vpop.f32.mrf.mxu0 }
 0x3bf   : > { %v1994_v20 = vpop.f32.mrf.mxu1 }
 0x3c0   : > { %v2174_v34 = vadd.f32 %v2173_v32, %v1994_v20 }
 0x3c1   : > { %v1996_v52 = vpop.f32.mrf.mxu1 }
 0x3c2   : > { %v2176_v1 = vadd.f32 %v2175_v12, %v1996_v52 }
 0x3c3   : > { %v2000_v56 = vpop.f32.mrf.mxu1 }
 0x3c4   : > { %v2180_v25 = vadd.f32 %v2179_v22, %v2000_v56 }
 0x3c5   : > { %v2002_v3 = vpop.f32.mrf.mxu1 }
 0x3c6   : > { %v4313_v13 = vpop.permute.xlu1 %4312  ;;  %v2182_v29 = vadd.f32 %v2181_v59, %v2002_v3 }
 0x3ca   : > { %v4318_v10 = vpop.permute.xlu1 %4317 }
 0x400   : > { %v3247_v62 = vpop.f32.mrf.mxu1 }
 0x401   : > { %v3258_v18 = vadd.f32 %v3247_v62, %v2174_v34 }
 0x402   : > { %v3249_v7 = vpop.f32.mrf.mxu1 }
 0x403   : > { %v3259_v51 = vadd.f32 %v3249_v7, %v2176_v1 }
 0x404   : > { %v3253_v43 = vpop.f32.mrf.mxu1 }
 0x405   : > { %v3260_v38 = vadd.f32 %v3253_v43, %v2180_v25 }
 0x406   : > { %v3255_v54 = vpop.f32.mrf.mxu1 }
 0x407   : > { %v3261_v39 = vadd.f32 %v3255_v54, %v2182_v29 }
 0x41d   : > { %v4293_v33 = vpop.f32.mrf.mxu0 }
 0x41e   : > { %v4304_v8 = vadd.f32 %v4293_v33, %v3258_v18 }
 0x41f   : > { %v4295_v50 = vpop.f32.mrf.mxu0 }
 0x420   : > { %v4320_v42 = vadd.f32 %v4313_v13, %v4304_v8  ;;  %v4305_v41 = vadd.f32 %v4295_v50, %v3259_v51 }
 0x421   : > { %v4299_v36 = vpop.f32.mrf.mxu0 }
 0x422   : > { %v4627_v28 = vmul.f32 -1.442695, %v4320_v42  ;;  %v4321_v11 = vadd.f32 %v4313_v13, %v4305_v41  ;;  %v4306_v35 = vadd.f32 %v4299_v36, %v3260_v38 }
 0x423   : > { %v4301_v47 = vpop.f32.mrf.mxu0 }
 0x424   : > { %5003 = vpow2.f32 %v4627_v28  ;;  %v4628_v0 = vmul.f32 -1.442695, %v4321_v11  ;;  %v4322_v31 = vadd.f32 %v4318_v10, %v4306_v35  ;;  %v4307_v26 = vadd.f32 %v4301_v47, %v3261_v39 }
 0x426   : > { %5005 = vpow2.f32 %v4628_v0  ;;  %v4629_v57 = vmul.f32 -1.442695, %v4322_v31  ;;  %v4323_v44 = vadd.f32 %v4318_v10, %v4307_v26 }
 0x428   : > { %5007 = vpow2.f32 %v4629_v57  ;;  %v4630_v60 = vmul.f32 -1.442695, %v4323_v44 }
 0x42a   : > { %5009 = vpow2.f32 %v4630_v60 }
 0x431   : > { %v5004_v63 = vpop.eup %5003 }
 0x432   : > { %v4336_v30 = vadd.f32 1.0, %v5004_v63 }
 0x433   : > { %v5006_v37 = vpop.eup %5005 }
 0x434   : > { %5011 = vrcp.f32 %v4336_v30  ;;  %v4337_v61 = vadd.f32 1.0, %v5006_v37 }
 0x435   : > { %v5008_v27 = vpop.eup %5007 }
 0x436   : > { %5013 = vrcp.f32 %v4337_v61  ;;  %v4338_v58 = vadd.f32 1.0, %v5008_v27 }
 0x437   : > { %v5010_v21 = vpop.eup %5009 }
 0x438   : > { %5015 = vrcp.f32 %v4338_v58  ;;  %v4339_v19 = vadd.f32 1.0, %v5010_v21 }
 0x43a   : > { %5017 = vrcp.f32 %v4339_v19 }
 0x441   : > { %v5012_v49 = vpop.eup %5011 }
 0x442   : > { %v4348_v46 = vmul.f32 %v5012_v49, %v4320_v42 }
 0x443   : > { %v5014_v5 = vpop.eup %5013 }
 0x444   : > { %4352 = vst [vmem:[%s224_s30] sm:$0xff] %v4348_v46  ;;  %v4349_v17 = vmul.f32 %v5014_v5, %v4321_v11 }
 0x445   : > { %v5016_v14 = vpop.eup %5015 }
 0x446   : > { %4353 = vst [vmem:[%s224_s30 + $0x8] sm:$0xff] %v4349_v17  ;;  %v4350_v48 = vmul.f32 %v5016_v14, %v4322_v31 }
 0x447   : > { %v5018_v23 = vpop.eup %5017 }
 0x448   : > { %4354 = vst [vmem:[%s224_s30 + $0x10] sm:$0xff] %v4350_v48  ;;  %v4351_v55 = vmul.f32 %v5018_v23, %v4323_v44 }
 0x44a   : > { %4355 = vst [vmem:[%s224_s30 + $0x18] sm:$0xff] %v4351_v55 }
 0x44b PF: > { %s15_s18 = sadd.s32 1, %s5031_s18  }
 0x44c   : > { %p12_p4 = scmp.ge.s32.totalorder %s15_s18, 4  }
 0x44e   :  { %14 = sbr.rel (!%p12_p4) target bundleno = 1 (0x1), region = 75 }

</bundles_post_ra>
